<compile_context>
chip_gen: v5e
topology: v5e:2x2
jax: 0.10.0
libtpu: 0.0.40
codegen_flags: <defaults>
</compile_context>

<pallas_src>
import functools

import jax
import jax.numpy as jnp
import numpy as np
from jax import lax
from jax.experimental import pallas as pl
from jax.experimental.pallas import tpu as pltpu


# ----------------------------------------------------------------------------
# Fused Pallas kernel
# ----------------------------------------------------------------------------
def _fused_kernel(audio_ref, video_ref,
                  t1_ref, c1b_ref, t2_ref, c2b_ref, t3_ref, c3b_ref,
                  wap_ref, wvp_ref, bfc_ref,
                  watt_ref, batt_ref,
                  wff_ref, bff_ref,
                  wh_ref, bh_ref, w2_ref, b2_ref,
                  q_ref, *, hidden, action_dim):
    def mm(x, w_ref):
        # bf16 operands, f32 accumulation on the MXU.
        return jnp.dot(x.astype(jnp.bfloat16), w_ref[...],
                       preferred_element_type=jnp.float32)

    def dense_relu(x, w_ref, b_ref):
        return jnp.maximum(mm(x, w_ref) + b_ref[...], 0.0)

    # --- conv stack as three dense matmuls (Toeplitz weights, /255 folded) ----
    x = dense_relu(video_ref[...], t1_ref, c1b_ref)   # (tb, 16*OH1*OW1)
    x = dense_relu(x, t2_ref, c2b_ref)                # (tb, 32*OH2*OW2)
    x = dense_relu(x, t3_ref, c3b_ref)                # (tb, 64*OH3*OW3) == Flatten

    # --- fused feature extractors: fcat == [audio_feature | video_feature] ----
    # zero-padded weight halves place each branch in its own column range, so
    # no in-kernel concatenation is needed.
    fcat = jnp.maximum(mm(audio_ref[...], wap_ref) + mm(x, wvp_ref)
                       + bfc_ref[...], 0.0)           # (tb, 2*hidden)

    # --- fused bimodal attention gating ---------------------------------------
    # Single block-diagonal matmul gives [audio_logits | video_logits]; softmax
    # is applied independently over each half via an iota mask (no slices).
    # TODO(synk): PyTorch applies torch.sum(weights*feature, dim=1) then
    # cat(dim=1) into Linear(hidden*2, hidden); those shapes are mutually
    # inconsistent, so we keep the only shape-consistent reading:
    # element-wise gating (requires attention_dim == hidden_dim).
    logits = mm(fcat, watt_ref) + batt_ref[...]       # (tb, 2*hidden)
    col = lax.broadcasted_iota(jnp.int32, logits.shape, 1)
    is_a = col < hidden
    neg = jnp.float32(-1e30)
    m_a = jnp.max(jnp.where(is_a, logits, neg), axis=1, keepdims=True)
    m_v = jnp.max(jnp.where(is_a, neg, logits), axis=1, keepdims=True)
    e = jnp.exp(logits - jnp.where(is_a, m_a, m_v))
    s_a = jnp.sum(jnp.where(is_a, e, 0.0), axis=1, keepdims=True)
    s_v = jnp.sum(jnp.where(is_a, 0.0, e), axis=1, keepdims=True)
    att = e * pl.reciprocal(jnp.where(is_a, s_a, s_v), approx=True)
    gated = att * fcat                                # == cat([aa, va], dim=1)

    # --- feature fusion --------------------------------------------------------
    feat = dense_relu(gated, wff_ref, bff_ref)        # (tb, hidden)

    # --- fused dueling head -----------------------------------------------------
    # adv/val hidden layers fused into one (hidden, 2*hidden) matmul; their
    # output layers fused into one block-diagonal (2*hidden, action_dim+1) matmul.
    h2 = dense_relu(feat, wh_ref, bh_ref)             # (tb, 2*hidden)
    av = mm(h2, w2_ref) + b2_ref[...]                 # (tb, action_dim+1)
    adv = av[:, :action_dim]
    val = av[:, action_dim:action_dim + 1]
    q_ref[...] = val + adv - jnp.mean(adv, axis=1, keepdims=True)


# ----------------------------------------------------------------------------
# One-time parameter packing (host side, numpy)
# ----------------------------------------------------------------------------
def _conv_as_dense(w, b, h_in, w_in, stride):
    """Lower Conv2d(stride, VALID) to a dense matrix on CHW-flattened activations:
       out_flat = in_flat @ T + bias_vec   (out_flat also CHW-flattened)."""
    w = np.asarray(w, np.float32)
    b = np.asarray(b, np.float32)
    cout, cin, k, _ = w.shape
    oh = (h_in - k) // stride + 1
    ow = (w_in - k) // stride + 1
    t = np.zeros((cin * h_in * w_in, cout * oh * ow), np.float32)
    for oy in range(oh):
        for ox in range(ow):
            o_idx = oy * ow + ox
            for kh in range(k):
                for kw in range(k):
                    i_idx = (oy * stride + kh) * w_in + (ox * stride + kw)
                    # rows: ci*h_in*w_in + i_idx ; cols: co*oh*ow + o_idx
                    t[i_idx::h_in * w_in, o_idx::oh * ow] = w[:, :, kh, kw].T
    return t, np.repeat(b, oh * ow), oh, ow


def pack_params(params, state_dim, kernel_size, stride):
    """Pre-transpose / pre-fuse / pre-cast all weights (done once, not per call)."""
    _, h, w = state_dim
    assert int(params["conv"][0][0].shape[2]) == kernel_size

    def bf(x):
        return jnp.asarray(np.asarray(x, np.float32), jnp.bfloat16)

    def row(x):
        return jnp.asarray(np.asarray(x, np.float32).reshape(1, -1))

    packed = []
    hh, ww = h, w
    for li, (cw, cb) in enumerate(params["conv"]):
        t, bvec, hh, ww = _conv_as_dense(cw, cb, hh, ww, stride)
        if li == 0:
            t = t / 255.0            # fold video.float()/255.0 into conv-1 weights
        packed += [bf(t), row(bvec)]

    f32 = lambda p: np.asarray(p, np.float32)
    wa, ba = f32(params["audio_feature"][0]), f32(params["audio_feature"][1])
    wv, bv = f32(params["video_feature"][0]), f32(params["video_feature"][1])
    waa, baa = f32(params["audio_attention"][0]), f32(params["audio_attention"][1])
    wva, bva = f32(params["video_attention"][0]), f32(params["video_attention"][1])
    wf, bfe = f32(params["feature"][0]), f32(params["feature"][1])
    wA1, bA1 = f32(params["adv1"][0]), f32(params["adv1"][1])
    wA2, bA2 = f32(params["adv2"][0]), f32(params["adv2"][1])
    wV1, bV1 = f32(params["val1"][0]), f32(params["val1"][1])
    wV2, bV2 = f32(params["val2"][0]), f32(params["val2"][1])

    hidden = int(wa.shape[0])
    sound = int(wa.shape[1])
    conv_out = int(wv.shape[1])
    action_dim = int(wA2.shape[0])
    assert int(waa.shape[0]) == hidden and int(wva.shape[0]) == hidden, \
        "attention_dim must equal hidden_dim (see TODO(synk) in kernel)"

    # fused feature extractors: outputs land directly in the [af | vf] layout.
    wap = np.zeros((sound, 2 * hidden), np.float32)
    wap[:, :hidden] = wa.T
    wvp = np.zeros((conv_out, 2 * hidden), np.float32)
    wvp[:, hidden:] = wv.T
    bfc = np.concatenate([ba, bv])
    packed += [bf(wap), bf(wvp), row(bfc)]

    # fused block-diagonal attention projection.
    watt = np.zeros((2 * hidden, 2 * hidden), np.float32)
    watt[:hidden, :hidden] = waa.T
    watt[hidden:, hidden:] = wva.T
    batt = np.concatenate([baa, bva])
    packed += [bf(watt), row(batt)]

    # feature fusion (full (2h, h) weight — gated tensor is already concatenated).
    packed += [bf(wf.T), row(bfe)]

    # fused dueling head.
    wh = np.concatenate([wA1.T, wV1.T], axis=1)
    bh = np.concatenate([bA1, bV1])
    w2 = np.zeros((2 * hidden, action_dim + 1), np.float32)
    w2[:hidden, :action_dim] = wA2.T
    w2[hidden:, action_dim:] = wV2.T
    b2 = np.concatenate([bA2, bV2])
    packed += [bf(wh), row(bh), bf(w2), row(b2)]
    return tuple(packed), action_dim, hidden


# ----------------------------------------------------------------------------
# Forward wrapper (single pallas_call)
# ----------------------------------------------------------------------------
def _pick_batch_tile(b):
    for t in (256, 128, 64, 32, 16):
        if b >= t and b % t == 0:
            return t
    return b


@functools.partial(jax.jit, static_argnames=("action_dim", "hidden"))
def forward(audio, video, weights, *, action_dim, hidden):
    """audio: (B, sound_dim) float; video: (B, C, H, W), uint8 or float pixels."""
    b = audio.shape[0]
    # NCHW flatten matches the CHW ordering baked into the Toeplitz matrices, so
    # the only per-call layout work is a reshape + a cast to bf16 (exact for
    # 0..255 pixel values) — 2x less HBM traffic than an f32 upload.
    video2d = video.reshape(b, -1).astype(jnp.bfloat16)
    audio2d = audio.astype(jnp.float32)
    tb = _pick_batch_tile(b)
    grid = (b // tb,)

    in_specs = [pl.BlockSpec((tb, audio2d.shape[1]), lambda i: (i, 0)),
                pl.BlockSpec((tb, video2d.shape[1]), lambda i: (i, 0))]
    # constant index_map -> weight blocks are DMA'd once, not per batch tile.
    in_specs += [pl.BlockSpec(w.shape, lambda i: (0, 0)) for w in weights]

    return pl.pallas_call(
        functools.partial(_fused_kernel, hidden=hidden, action_dim=action_dim),
        out_shape=jax.ShapeDtypeStruct((b, action_dim), jnp.float32),
        grid=grid,
        in_specs=in_specs,
        out_specs=pl.BlockSpec((tb, action_dim), lambda i: (i, 0)),
        compiler_params=pltpu.CompilerParams(
            dimension_semantics=("parallel",)),   # batch tiles shard across TCs on v7x
    )(audio2d, video2d, *weights)


# ----------------------------------------------------------------------------
# Pure-JAX f32 reference (correctness check against the module semantics)
# ----------------------------------------------------------------------------
def reference_forward(audio, video, params, *, kernel_size, stride):
    x = video.astype(jnp.float32) / 255.0
    for (w, b) in params["conv"]:
        x = lax.conv_general_dilated(x, w, (stride, stride), "VALID",
                                     dimension_numbers=("NCHW", "OIHW", "NCHW"))
        x = jax.nn.relu(x + b[None, :, None, None])
    bsz = x.shape[0]
    vflat = x.reshape(bsz, -1)

    wa, ba = params["audio_feature"]
    af = jax.nn.relu(audio @ wa.T + ba)
    wv, bv = params["video_feature"]
    vf = jax.nn.relu(vflat @ wv.T + bv)

    def attend(f, w, bb):
        wts = jax.nn.softmax(f @ w.T + bb, axis=1)
        return wts * f

    aa = attend(af, *params["audio_attention"])
    va = attend(vf, *params["video_attention"])
    wf, bfe = params["feature"]
    feat = jax.nn.relu(jnp.concatenate([aa, va], axis=1) @ wf.T + bfe)
    wA1, bA1 = params["adv1"]
    wA2, bA2 = params["adv2"]
    wV1, bV1 = params["val1"]
    wV2, bV2 = params["val2"]
    adv = jax.nn.relu(feat @ wA1.T + bA1) @ wA2.T + bA2
    val = jax.nn.relu(feat @ wV1.T + bV1) @ wV2.T + bV2
    return val + adv - jnp.mean(adv, axis=1, keepdims=True)


# ----------------------------------------------------------------------------
# Deterministic parameter init (PyTorch-default-like uniform)
# ----------------------------------------------------------------------------
def _linear_init(key, fan_in, fan_out):
    kw, kb = jax.random.split(key)
    bound = 1.0 / np.sqrt(fan_in)
    w = jax.random.uniform(kw, (fan_out, fan_in), jnp.float32, -bound, bound)
    b = jax.random.uniform(kb, (fan_out,), jnp.float32, -bound, bound)
    return w, b


def _conv_init(key, cin, cout, k):
    kw, kb = jax.random.split(key)
    bound = 1.0 / np.sqrt(cin * k * k)
    w = jax.random.uniform(kw, (cout, cin, k, k), jnp.float32, -bound, bound)
    b = jax.random.uniform(kb, (cout,), jnp.float32, -bound, bound)
    return w, b


if __name__ == "__main__":
    state_dim = (4, 16, 16)     # (C, H, W)
    sound_dim = (8,)
    action_dim = 4
    kernel_size = 3
    stride = 2
    hidden_dim = 32
    attention_dim = 32          # must equal hidden_dim (see TODO(synk) above)
    batch = 2
    assert attention_dim == hidden_dim

    # conv output size (mirrors _get_conv_output)
    hh, ww = state_dim[1], state_dim[2]
    for _ in range(3):
        hh = (hh - kernel_size) // stride + 1
        ww = (ww - kernel_size) // stride + 1
    conv_out_size = 64 * hh * ww

    keys = jax.random.split(jax.random.PRNGKey(0), 16)
    params = {
        "conv": [
            _conv_init(keys[0], state_dim[0], 16, kernel_size),
            _conv_init(keys[1], 16, 32, kernel_size),
            _conv_init(keys[2], 32, 64, kernel_size),
        ],
        "audio_feature": _linear_init(keys[3], sound_dim[0], hidden_dim),
        "video_feature": _linear_init(keys[4], conv_out_size, hidden_dim),
        "audio_attention": _linear_init(keys[5], hidden_dim, attention_dim),
        "video_attention": _linear_init(keys[6], hidden_dim, attention_dim),
        "attention_combine": _linear_init(keys[7], attention_dim, 1),  # defined but unused in forward (matches PyTorch)
        "feature": _linear_init(keys[8], hidden_dim * 2, hidden_dim),
        "adv1": _linear_init(keys[9], hidden_dim, hidden_dim),
        "adv2": _linear_init(keys[10], hidden_dim, action_dim),
        "val1": _linear_init(keys[11], hidden_dim, hidden_dim),
        "val2": _linear_init(keys[12], hidden_dim, 1),
    }

    audio = jax.random.normal(keys[13], (batch, sound_dim[0]), jnp.float32)
    video = jax.random.randint(keys[14], (batch,) + state_dim, 0, 256,
                               dtype=jnp.int32).astype(jnp.uint8)

    weights, adim, hid = pack_params(params, state_dim, kernel_size, stride)

    q = forward(audio, video, weights, action_dim=adim, hidden=hid)
    q = jax.block_until_ready(q)

    q_ref = reference_forward(audio, video, params,
                              kernel_size=kernel_size, stride=stride)
    # Tolerance sized for bf16 matmul operands (f32 accumulation) + approx
    # reciprocal vs the pure-f32 reference; an all-f32 kernel matches to ~1e-5.
    np.testing.assert_allclose(np.asarray(q), np.asarray(q_ref),
                               rtol=2e-2, atol=2e-2)
    print("KERNEL_OK")
</pallas_src>

<mosaic_0001>
module attributes {stable_mosaic.version = 11 : i64} {
  func.func @_fused_kernel(%arg0: i32, %arg1: memref<2x8xf32, #tpu.memory_space<vmem>>, %arg2: memref<2x1024xbf16, #tpu.memory_space<vmem>>, %arg3: memref<1024x784xbf16, #tpu.memory_space<vmem>>, %arg4: memref<1x784xf32, #tpu.memory_space<vmem>>, %arg5: memref<784x288xbf16, #tpu.memory_space<vmem>>, %arg6: memref<1x288xf32, #tpu.memory_space<vmem>>, %arg7: memref<288x64xbf16, #tpu.memory_space<vmem>>, %arg8: memref<1x64xf32, #tpu.memory_space<vmem>>, %arg9: memref<8x64xbf16, #tpu.memory_space<vmem>>, %arg10: memref<64x64xbf16, #tpu.memory_space<vmem>>, %arg11: memref<1x64xf32, #tpu.memory_space<vmem>>, %arg12: memref<64x64xbf16, #tpu.memory_space<vmem>>, %arg13: memref<1x64xf32, #tpu.memory_space<vmem>>, %arg14: memref<64x32xbf16, #tpu.memory_space<vmem>>, %arg15: memref<1x32xf32, #tpu.memory_space<vmem>>, %arg16: memref<32x64xbf16, #tpu.memory_space<vmem>>, %arg17: memref<1x64xf32, #tpu.memory_space<vmem>>, %arg18: memref<64x5xbf16, #tpu.memory_space<vmem>>, %arg19: memref<1x5xf32, #tpu.memory_space<vmem>>, %arg20: memref<2x4xf32, #tpu.memory_space<vmem>>) attributes {dimension_semantics = [#tpu.dimension_semantics<parallel>], iteration_bounds = array<i64: 1>, scalar_prefetch = 0 : i64, scratch_operands = 0 : i64, tpu.core_type = #tpu.core_type<tc>, window_params = [{transform_indices = @transform_0, window_bounds = array<i64: 2, 8>}, {transform_indices = @transform_1, window_bounds = array<i64: 2, 1024>}, {pipeline_mode = #tpu.pipeline_mode<synchronous>, transform_indices = @transform_2, window_bounds = array<i64: 1024, 784>}, {pipeline_mode = #tpu.pipeline_mode<synchronous>, transform_indices = @transform_3, window_bounds = array<i64: 1, 784>}, {pipeline_mode = #tpu.pipeline_mode<synchronous>, transform_indices = @transform_4, window_bounds = array<i64: 784, 288>}, {pipeline_mode = #tpu.pipeline_mode<synchronous>, transform_indices = @transform_5, window_bounds = array<i64: 1, 288>}, {pipeline_mode = #tpu.pipeline_mode<synchronous>, transform_indices = @transform_6, window_bounds = array<i64: 288, 64>}, {pipeline_mode = #tpu.pipeline_mode<synchronous>, transform_indices = @transform_7, window_bounds = array<i64: 1, 64>}, {pipeline_mode = #tpu.pipeline_mode<synchronous>, transform_indices = @transform_8, window_bounds = array<i64: 8, 64>}, {pipeline_mode = #tpu.pipeline_mode<synchronous>, transform_indices = @transform_9, window_bounds = array<i64: 64, 64>}, {pipeline_mode = #tpu.pipeline_mode<synchronous>, transform_indices = @transform_10, window_bounds = array<i64: 1, 64>}, {pipeline_mode = #tpu.pipeline_mode<synchronous>, transform_indices = @transform_11, window_bounds = array<i64: 64, 64>}, {pipeline_mode = #tpu.pipeline_mode<synchronous>, transform_indices = @transform_12, window_bounds = array<i64: 1, 64>}, {pipeline_mode = #tpu.pipeline_mode<synchronous>, transform_indices = @transform_13, window_bounds = array<i64: 64, 32>}, {pipeline_mode = #tpu.pipeline_mode<synchronous>, transform_indices = @transform_14, window_bounds = array<i64: 1, 32>}, {pipeline_mode = #tpu.pipeline_mode<synchronous>, transform_indices = @transform_15, window_bounds = array<i64: 32, 64>}, {pipeline_mode = #tpu.pipeline_mode<synchronous>, transform_indices = @transform_16, window_bounds = array<i64: 1, 64>}, {pipeline_mode = #tpu.pipeline_mode<synchronous>, transform_indices = @transform_17, window_bounds = array<i64: 64, 5>}, {pipeline_mode = #tpu.pipeline_mode<synchronous>, transform_indices = @transform_18, window_bounds = array<i64: 1, 5>}, {transform_indices = @transform_19, window_bounds = array<i64: 2, 4>}]} {
    %c0 = arith.constant 0 : index
    %c0_0 = arith.constant 0 : index
    %0 = vector.load %arg2[%c0, %c0_0] : memref<2x1024xbf16, #tpu.memory_space<vmem>>, vector<2x1024xbf16>
    %c0_1 = arith.constant 0 : index
    %c0_2 = arith.constant 0 : index
    %1 = vector.load %arg3[%c0_1, %c0_2] : memref<1024x784xbf16, #tpu.memory_space<vmem>>, vector<1024x784xbf16>
    %cst = arith.constant dense<0.000000e+00> : vector<2x784xf32>
    %2 = tpu.matmul %0, %1, %cst {dimension_numbers = #tpu.dot_dimension_numbers<[1], [0], [0], [1], [0, 0, 1, 1], [], []>} : vector<2x1024xbf16>, vector<1024x784xbf16>, vector<2x784xf32> -> vector<2x784xf32>
    %c0_3 = arith.constant 0 : index
    %c0_4 = arith.constant 0 : index
    %3 = vector.load %arg4[%c0_3, %c0_4] : memref<1x784xf32, #tpu.memory_space<vmem>>, vector<1x784xf32>
    %4 = vector.broadcast %3 : vector<1x784xf32> to vector<2x784xf32>
    %5 = arith.addf %2, %4 : vector<2x784xf32>
    %cst_5 = arith.constant 0.000000e+00 : f32
    %6 = vector.broadcast %cst_5 : f32 to vector<2x784xf32>
    %7 = arith.maximumf %5, %6 : vector<2x784xf32>
    %8 = arith.truncf %7 : vector<2x784xf32> to vector<2x784xbf16>
    %c0_6 = arith.constant 0 : index
    %c0_7 = arith.constant 0 : index
    %9 = vector.load %arg5[%c0_6, %c0_7] : memref<784x288xbf16, #tpu.memory_space<vmem>>, vector<784x288xbf16>
    %cst_8 = arith.constant dense<0.000000e+00> : vector<2x288xf32>
    %10 = tpu.matmul %8, %9, %cst_8 {dimension_numbers = #tpu.dot_dimension_numbers<[1], [0], [0], [1], [0, 0, 1, 1], [], []>} : vector<2x784xbf16>, vector<784x288xbf16>, vector<2x288xf32> -> vector<2x288xf32>
    %c0_9 = arith.constant 0 : index
    %c0_10 = arith.constant 0 : index
    %11 = vector.load %arg6[%c0_9, %c0_10] : memref<1x288xf32, #tpu.memory_space<vmem>>, vector<1x288xf32>
    %12 = vector.broadcast %11 : vector<1x288xf32> to vector<2x288xf32>
    %13 = arith.addf %10, %12 : vector<2x288xf32>
    %cst_11 = arith.constant 0.000000e+00 : f32
    %14 = vector.broadcast %cst_11 : f32 to vector<2x288xf32>
    %15 = arith.maximumf %13, %14 : vector<2x288xf32>
    %16 = arith.truncf %15 : vector<2x288xf32> to vector<2x288xbf16>
    %c0_12 = arith.constant 0 : index
    %c0_13 = arith.constant 0 : index
    %17 = vector.load %arg7[%c0_12, %c0_13] : memref<288x64xbf16, #tpu.memory_space<vmem>>, vector<288x64xbf16>
    %cst_14 = arith.constant dense<0.000000e+00> : vector<2x64xf32>
    %18 = tpu.matmul %16, %17, %cst_14 {dimension_numbers = #tpu.dot_dimension_numbers<[1], [0], [0], [1], [0, 0, 1, 1], [], []>} : vector<2x288xbf16>, vector<288x64xbf16>, vector<2x64xf32> -> vector<2x64xf32>
    %c0_15 = arith.constant 0 : index
    %c0_16 = arith.constant 0 : index
    %19 = vector.load %arg8[%c0_15, %c0_16] : memref<1x64xf32, #tpu.memory_space<vmem>>, vector<1x64xf32>
    %20 = vector.broadcast %19 : vector<1x64xf32> to vector<2x64xf32>
    %21 = arith.addf %18, %20 : vector<2x64xf32>
    %cst_17 = arith.constant 0.000000e+00 : f32
    %22 = vector.broadcast %cst_17 : f32 to vector<2x64xf32>
    %23 = arith.maximumf %21, %22 : vector<2x64xf32>
    %c0_18 = arith.constant 0 : index
    %c0_19 = arith.constant 0 : index
    %24 = vector.load %arg1[%c0_18, %c0_19] : memref<2x8xf32, #tpu.memory_space<vmem>>, vector<2x8xf32>
    %25 = arith.truncf %24 : vector<2x8xf32> to vector<2x8xbf16>
    %c0_20 = arith.constant 0 : index
    %c0_21 = arith.constant 0 : index
    %26 = vector.load %arg9[%c0_20, %c0_21] : memref<8x64xbf16, #tpu.memory_space<vmem>>, vector<8x64xbf16>
    %cst_22 = arith.constant dense<0.000000e+00> : vector<2x64xf32>
    %27 = tpu.matmul %25, %26, %cst_22 {dimension_numbers = #tpu.dot_dimension_numbers<[1], [0], [0], [1], [0, 0, 1, 1], [], []>} : vector<2x8xbf16>, vector<8x64xbf16>, vector<2x64xf32> -> vector<2x64xf32>
    %28 = arith.truncf %23 : vector<2x64xf32> to vector<2x64xbf16>
    %c0_23 = arith.constant 0 : index
    %c0_24 = arith.constant 0 : index
    %29 = vector.load %arg10[%c0_23, %c0_24] : memref<64x64xbf16, #tpu.memory_space<vmem>>, vector<64x64xbf16>
    %cst_25 = arith.constant dense<0.000000e+00> : vector<2x64xf32>
    %30 = tpu.matmul %28, %29, %cst_25 {dimension_numbers = #tpu.dot_dimension_numbers<[1], [0], [0], [1], [0, 0, 1, 1], [], []>} : vector<2x64xbf16>, vector<64x64xbf16>, vector<2x64xf32> -> vector<2x64xf32>
    %31 = arith.addf %27, %30 : vector<2x64xf32>
    %c0_26 = arith.constant 0 : index
    %c0_27 = arith.constant 0 : index
    %32 = vector.load %arg11[%c0_26, %c0_27] : memref<1x64xf32, #tpu.memory_space<vmem>>, vector<1x64xf32>
    %33 = vector.broadcast %32 : vector<1x64xf32> to vector<2x64xf32>
    %34 = arith.addf %31, %33 : vector<2x64xf32>
    %cst_28 = arith.constant 0.000000e+00 : f32
    %35 = vector.broadcast %cst_28 : f32 to vector<2x64xf32>
    %36 = arith.maximumf %34, %35 : vector<2x64xf32>
    %37 = arith.truncf %36 : vector<2x64xf32> to vector<2x64xbf16>
    %c0_29 = arith.constant 0 : index
    %c0_30 = arith.constant 0 : index
    %38 = vector.load %arg12[%c0_29, %c0_30] : memref<64x64xbf16, #tpu.memory_space<vmem>>, vector<64x64xbf16>
    %cst_31 = arith.constant dense<0.000000e+00> : vector<2x64xf32>
    %39 = tpu.matmul %37, %38, %cst_31 {dimension_numbers = #tpu.dot_dimension_numbers<[1], [0], [0], [1], [0, 0, 1, 1], [], []>} : vector<2x64xbf16>, vector<64x64xbf16>, vector<2x64xf32> -> vector<2x64xf32>
    %c0_32 = arith.constant 0 : index
    %c0_33 = arith.constant 0 : index
    %40 = vector.load %arg13[%c0_32, %c0_33] : memref<1x64xf32, #tpu.memory_space<vmem>>, vector<1x64xf32>
    %41 = vector.broadcast %40 : vector<1x64xf32> to vector<2x64xf32>
    %42 = arith.addf %39, %41 : vector<2x64xf32>
    %43 = tpu.iota {dimensions = array<i32: 1>} : vector<2x64xi32>
    %c32_i32 = arith.constant 32 : i32
    %44 = vector.broadcast %c32_i32 : i32 to vector<2x64xi32>
    %45 = arith.cmpi slt, %43, %44 : vector<2x64xi32>
    %cst_34 = arith.constant -1.000000e+30 : f32
    %46 = vector.broadcast %cst_34 : f32 to vector<2x64xf32>
    %47 = arith.select %45, %42, %46 : vector<2x64xi1>, vector<2x64xf32>
    %cst_35 = arith.constant dense<0xFF800000> : vector<2xf32>
    %48 = vector.multi_reduction <maximumf>, %47, %cst_35 [1] : vector<2x64xf32> to vector<2xf32>
    %49 = vector.shape_cast %48 : vector<2xf32> to vector<2x1xf32>
    %cst_36 = arith.constant -1.000000e+30 : f32
    %50 = vector.broadcast %cst_36 : f32 to vector<2x64xf32>
    %51 = arith.select %45, %50, %42 : vector<2x64xi1>, vector<2x64xf32>
    %cst_37 = arith.constant dense<0xFF800000> : vector<2xf32>
    %52 = vector.multi_reduction <maximumf>, %51, %cst_37 [1] : vector<2x64xf32> to vector<2xf32>
    %53 = vector.shape_cast %52 : vector<2xf32> to vector<2x1xf32>
    %54 = vector.shape_cast %49 : vector<2x1xf32> to vector<2x1xf32>
    %55 = vector.broadcast %54 : vector<2x1xf32> to vector<2x64xf32>
    %56 = vector.shape_cast %53 : vector<2x1xf32> to vector<2x1xf32>
    %57 = vector.broadcast %56 : vector<2x1xf32> to vector<2x64xf32>
    %58 = arith.select %45, %55, %57 : vector<2x64xi1>, vector<2x64xf32>
    %59 = arith.subf %42, %58 : vector<2x64xf32>
    %60 = math.exp %59 : vector<2x64xf32>
    %cst_38 = arith.constant 0.000000e+00 : f32
    %61 = vector.broadcast %cst_38 : f32 to vector<2x64xf32>
    %62 = arith.select %45, %60, %61 : vector<2x64xi1>, vector<2x64xf32>
    %cst_39 = arith.constant dense<0.000000e+00> : vector<2xf32>
    %63 = vector.multi_reduction <add>, %62, %cst_39 [1] : vector<2x64xf32> to vector<2xf32>
    %64 = vector.shape_cast %63 : vector<2xf32> to vector<2x1xf32>
    %cst_40 = arith.constant 0.000000e+00 : f32
    %65 = vector.broadcast %cst_40 : f32 to vector<2x64xf32>
    %66 = arith.select %45, %65, %60 : vector<2x64xi1>, vector<2x64xf32>
    %cst_41 = arith.constant dense<0.000000e+00> : vector<2xf32>
    %67 = vector.multi_reduction <add>, %66, %cst_41 [1] : vector<2x64xf32> to vector<2xf32>
    %68 = vector.shape_cast %67 : vector<2xf32> to vector<2x1xf32>
    %69 = vector.shape_cast %64 : vector<2x1xf32> to vector<2x1xf32>
    %70 = vector.broadcast %69 : vector<2x1xf32> to vector<2x64xf32>
    %71 = vector.shape_cast %68 : vector<2x1xf32> to vector<2x1xf32>
    %72 = vector.broadcast %71 : vector<2x1xf32> to vector<2x64xf32>
    %73 = arith.select %45, %70, %72 : vector<2x64xi1>, vector<2x64xf32>
    %74 = tpu.reciprocal %73 {approx = true} : vector<2x64xf32> -> vector<2x64xf32>
    %75 = arith.mulf %60, %74 : vector<2x64xf32>
    %76 = arith.mulf %75, %36 : vector<2x64xf32>
    %77 = arith.truncf %76 : vector<2x64xf32> to vector<2x64xbf16>
    %c0_42 = arith.constant 0 : index
    %c0_43 = arith.constant 0 : index
    %78 = vector.load %arg14[%c0_42, %c0_43] : memref<64x32xbf16, #tpu.memory_space<vmem>>, vector<64x32xbf16>
    %cst_44 = arith.constant dense<0.000000e+00> : vector<2x32xf32>
    %79 = tpu.matmul %77, %78, %cst_44 {dimension_numbers = #tpu.dot_dimension_numbers<[1], [0], [0], [1], [0, 0, 1, 1], [], []>} : vector<2x64xbf16>, vector<64x32xbf16>, vector<2x32xf32> -> vector<2x32xf32>
    %c0_45 = arith.constant 0 : index
    %c0_46 = arith.constant 0 : index
    %80 = vector.load %arg15[%c0_45, %c0_46] : memref<1x32xf32, #tpu.memory_space<vmem>>, vector<1x32xf32>
    %81 = vector.broadcast %80 : vector<1x32xf32> to vector<2x32xf32>
    %82 = arith.addf %79, %81 : vector<2x32xf32>
    %cst_47 = arith.constant 0.000000e+00 : f32
    %83 = vector.broadcast %cst_47 : f32 to vector<2x32xf32>
    %84 = arith.maximumf %82, %83 : vector<2x32xf32>
    %85 = arith.truncf %84 : vector<2x32xf32> to vector<2x32xbf16>
    %c0_48 = arith.constant 0 : index
    %c0_49 = arith.constant 0 : index
    %86 = vector.load %arg16[%c0_48, %c0_49] : memref<32x64xbf16, #tpu.memory_space<vmem>>, vector<32x64xbf16>
    %cst_50 = arith.constant dense<0.000000e+00> : vector<2x64xf32>
    %87 = tpu.matmul %85, %86, %cst_50 {dimension_numbers = #tpu.dot_dimension_numbers<[1], [0], [0], [1], [0, 0, 1, 1], [], []>} : vector<2x32xbf16>, vector<32x64xbf16>, vector<2x64xf32> -> vector<2x64xf32>
    %c0_51 = arith.constant 0 : index
    %c0_52 = arith.constant 0 : index
    %88 = vector.load %arg17[%c0_51, %c0_52] : memref<1x64xf32, #tpu.memory_space<vmem>>, vector<1x64xf32>
    %89 = vector.broadcast %88 : vector<1x64xf32> to vector<2x64xf32>
    %90 = arith.addf %87, %89 : vector<2x64xf32>
    %cst_53 = arith.constant 0.000000e+00 : f32
    %91 = vector.broadcast %cst_53 : f32 to vector<2x64xf32>
    %92 = arith.maximumf %90, %91 : vector<2x64xf32>
    %93 = arith.truncf %92 : vector<2x64xf32> to vector<2x64xbf16>
    %c0_54 = arith.constant 0 : index
    %c0_55 = arith.constant 0 : index
    %94 = vector.load %arg18[%c0_54, %c0_55] : memref<64x5xbf16, #tpu.memory_space<vmem>>, vector<64x5xbf16>
    %cst_56 = arith.constant dense<0.000000e+00> : vector<2x5xf32>
    %95 = tpu.matmul %93, %94, %cst_56 {dimension_numbers = #tpu.dot_dimension_numbers<[1], [0], [0], [1], [0, 0, 1, 1], [], []>} : vector<2x64xbf16>, vector<64x5xbf16>, vector<2x5xf32> -> vector<2x5xf32>
    %c0_57 = arith.constant 0 : index
    %c0_58 = arith.constant 0 : index
    %96 = vector.load %arg19[%c0_57, %c0_58] : memref<1x5xf32, #tpu.memory_space<vmem>>, vector<1x5xf32>
    %97 = vector.broadcast %96 : vector<1x5xf32> to vector<2x5xf32>
    %98 = arith.addf %95, %97 : vector<2x5xf32>
    %99 = vector.extract_strided_slice %98 {offsets = [0, 0], sizes = [2, 4], strides = [1, 1]} : vector<2x5xf32> to vector<2x4xf32>
    %100 = vector.extract_strided_slice %98 {offsets = [0, 4], sizes = [2, 1], strides = [1, 1]} : vector<2x5xf32> to vector<2x1xf32>
    %101 = vector.broadcast %100 : vector<2x1xf32> to vector<2x4xf32>
    %102 = arith.addf %101, %99 : vector<2x4xf32>
    %cst_59 = arith.constant dense<0.000000e+00> : vector<2xf32>
    %103 = vector.multi_reduction <add>, %99, %cst_59 [1] : vector<2x4xf32> to vector<2xf32>
    %104 = vector.shape_cast %103 : vector<2xf32> to vector<2x1xf32>
    %cst_60 = arith.constant 4.000000e+00 : f32
    %105 = vector.broadcast %cst_60 : f32 to vector<2x1xf32>
    %106 = arith.divf %104, %105 : vector<2x1xf32>
    %107 = vector.broadcast %106 : vector<2x1xf32> to vector<2x4xf32>
    %108 = arith.subf %102, %107 : vector<2x4xf32>
    %c0_61 = arith.constant 0 : index
    %c0_62 = arith.constant 0 : index
    %109 = vector.load %arg20[%c0_61, %c0_62] : memref<2x4xf32, #tpu.memory_space<vmem>>, vector<2x4xf32>
    tpu.vector_store %arg20[%c0_61, %c0_62], %108 {strides = array<i32>} : memref<2x4xf32, #tpu.memory_space<vmem>>, vector<2x4xf32>,
    return
  }
  func.func @transform_0(%arg0: i32) -> (i32, i32) {
    %c0_i32 = arith.constant 0 : i32
    %c0_i32_0 = arith.constant 0 : i32
    return %arg0, %c0_i32 : i32, i32
  }
  func.func @transform_1(%arg0: i32) -> (i32, i32) {
    %c0_i32 = arith.constant 0 : i32
    %c0_i32_0 = arith.constant 0 : i32
    return %arg0, %c0_i32 : i32, i32
  }
  func.func @transform_2(%arg0: i32) -> (i32, i32) {
    %c0_i32 = arith.constant 0 : i32
    %c0_i32_0 = arith.constant 0 : i32
    %c0_i32_1 = arith.constant 0 : i32
    return %c0_i32, %c0_i32_0 : i32, i32
  }
  func.func @transform_3(%arg0: i32) -> (i32, i32) {
    %c0_i32 = arith.constant 0 : i32
    %c0_i32_0 = arith.constant 0 : i32
    %c0_i32_1 = arith.constant 0 : i32
    return %c0_i32, %c0_i32_0 : i32, i32
  }
  func.func @transform_4(%arg0: i32) -> (i32, i32) {
    %c0_i32 = arith.constant 0 : i32
    %c0_i32_0 = arith.constant 0 : i32
    %c0_i32_1 = arith.constant 0 : i32
    return %c0_i32, %c0_i32_0 : i32, i32
  }
  func.func @transform_5(%arg0: i32) -> (i32, i32) {
    %c0_i32 = arith.constant 0 : i32
    %c0_i32_0 = arith.constant 0 : i32
    %c0_i32_1 = arith.constant 0 : i32
    return %c0_i32, %c0_i32_0 : i32, i32
  }
  func.func @transform_6(%arg0: i32) -> (i32, i32) {
    %c0_i32 = arith.constant 0 : i32
    %c0_i32_0 = arith.constant 0 : i32
    %c0_i32_1 = arith.constant 0 : i32
    return %c0_i32, %c0_i32_0 : i32, i32
  }
  func.func @transform_7(%arg0: i32) -> (i32, i32) {
    %c0_i32 = arith.constant 0 : i32
    %c0_i32_0 = arith.constant 0 : i32
    %c0_i32_1 = arith.constant 0 : i32
    return %c0_i32, %c0_i32_0 : i32, i32
  }
  func.func @transform_8(%arg0: i32) -> (i32, i32) {
    %c0_i32 = arith.constant 0 : i32
    %c0_i32_0 = arith.constant 0 : i32
    %c0_i32_1 = arith.constant 0 : i32
    return %c0_i32, %c0_i32_0 : i32, i32
  }
  func.func @transform_9(%arg0: i32) -> (i32, i32) {
    %c0_i32 = arith.constant 0 : i32
    %c0_i32_0 = arith.constant 0 : i32
    %c0_i32_1 = arith.constant 0 : i32
    return %c0_i32, %c0_i32_0 : i32, i32
  }
  func.func @transform_10(%arg0: i32) -> (i32, i32) {
    %c0_i32 = arith.constant 0 : i32
    %c0_i32_0 = arith.constant 0 : i32
    %c0_i32_1 = arith.constant 0 : i32
    return %c0_i32, %c0_i32_0 : i32, i32
  }
  func.func @transform_11(%arg0: i32) -> (i32, i32) {
    %c0_i32 = arith.constant 0 : i32
    %c0_i32_0 = arith.constant 0 : i32
    %c0_i32_1 = arith.constant 0 : i32
    return %c0_i32, %c0_i32_0 : i32, i32
  }
  func.func @transform_12(%arg0: i32) -> (i32, i32) {
    %c0_i32 = arith.constant 0 : i32
    %c0_i32_0 = arith.constant 0 : i32
    %c0_i32_1 = arith.constant 0 : i32
    return %c0_i32, %c0_i32_0 : i32, i32
  }
  func.func @transform_13(%arg0: i32) -> (i32, i32) {
    %c0_i32 = arith.constant 0 : i32
    %c0_i32_0 = arith.constant 0 : i32
    %c0_i32_1 = arith.constant 0 : i32
    return %c0_i32, %c0_i32_0 : i32, i32
  }
  func.func @transform_14(%arg0: i32) -> (i32, i32) {
    %c0_i32 = arith.constant 0 : i32
    %c0_i32_0 = arith.constant 0 : i32
    %c0_i32_1 = arith.constant 0 : i32
    return %c0_i32, %c0_i32_0 : i32, i32
  }
  func.func @transform_15(%arg0: i32) -> (i32, i32) {
    %c0_i32 = arith.constant 0 : i32
    %c0_i32_0 = arith.constant 0 : i32
    %c0_i32_1 = arith.constant 0 : i32
    return %c0_i32, %c0_i32_0 : i32, i32
  }
  func.func @transform_16(%arg0: i32) -> (i32, i32) {
    %c0_i32 = arith.constant 0 : i32
    %c0_i32_0 = arith.constant 0 : i32
    %c0_i32_1 = arith.constant 0 : i32
    return %c0_i32, %c0_i32_0 : i32, i32
  }
  func.func @transform_17(%arg0: i32) -> (i32, i32) {
    %c0_i32 = arith.constant 0 : i32
    %c0_i32_0 = arith.constant 0 : i32
    %c0_i32_1 = arith.constant 0 : i32
    return %c0_i32, %c0_i32_0 : i32, i32
  }
  func.func @transform_18(%arg0: i32) -> (i32, i32) {
    %c0_i32 = arith.constant 0 : i32
    %c0_i32_0 = arith.constant 0 : i32
    %c0_i32_1 = arith.constant 0 : i32
    return %c0_i32, %c0_i32_0 : i32, i32
  }
  func.func @transform_19(%arg0: i32) -> (i32, i32) {
    %c0_i32 = arith.constant 0 : i32
    %c0_i32_0 = arith.constant 0 : i32
    return %arg0, %c0_i32 : i32, i32
  }
}

</mosaic_0001>

<bundles_post_ra>
// kernel: forward.1
= control target key start
LH: loop header
LB: loop body
LE: loop exit
PB: predicated region body
PF: predicated region fallthrough
CT: control target
= control target key end

     0   :  { %s12764_s0 = inlined_call_operand.vmem [shape: f32[2,8], index: 0, kind: input, shape index: {}]   ;;  %s12765_s1 = inlined_call_operand.vmem [shape: bf16[2,1024], index: 1, kind: input, shape index: {}]   ;;  %s12766_s2 = inlined_call_operand.vmem [shape: bf16[1024,784], index: 2, kind: input, shape index: {}]   ;;  %s12767_s3 = inlined_call_operand.vmem [shape: f32[1,784], index: 3, kind: input, shape index: {}]   ;;  %s12768_s4 = inlined_call_operand.vmem [shape: bf16[784,288], index: 4, kind: input, shape index: {}]   ;;  %s12769_s5 = inlined_call_operand.vmem [shape: f32[1,288], index: 5, kind: input, shape index: {}]   ;;  %s12770_s6 = inlined_call_operand.vmem [shape: bf16[288,64], index: 6, kind: input, shape index: {}]   ;;  %s12771_s7 = inlined_call_operand.vmem [shape: f32[1,64], index: 7, kind: input, shape index: {}]   ;;  %s12772_s8 = inlined_call_operand.vmem [shape: bf16[8,64], index: 8, kind: input, shape index: {}]   ;;  %s12773_s9 = inlined_call_operand.vmem [shape: bf16[64,64], index: 9, kind: input, shape index: {}]   ;;  %s12774_s10 = inlined_call_operand.vmem [shape: f32[1,64], index: 10, kind: input, shape index: {}]   ;;  %s12775_s11 = inlined_call_operand.vmem [shape: bf16[64,64], index: 11, kind: input, shape index: {}]   ;;  %s12776_s12 = inlined_call_operand.vmem [shape: f32[1,64], index: 12, kind: input, shape index: {}]   ;;  %s12777_s13 = inlined_call_operand.vmem [shape: bf16[64,32], index: 13, kind: input, shape index: {}]   ;;  %s12778_s14 = inlined_call_operand.vmem [shape: f32[1,32], index: 14, kind: input, shape index: {}]   ;;  %s12779_s15 = inlined_call_operand.vmem [shape: bf16[32,64], index: 15, kind: input, shape index: {}]   ;;  %s12780_s16 = inlined_call_operand.vmem [shape: f32[1,64], index: 16, kind: input, shape index: {}]   ;;  %s12781_s17 = inlined_call_operand.vmem [shape: bf16[64,5], index: 17, kind: input, shape index: {}]   ;;  %s12782_s18 = inlined_call_operand.vmem [shape: f32[1,5], index: 18, kind: input, shape index: {}]   ;;  %s12783_s19 = inlined_call_operand.hbm [shape: f32[2,4], index: 19, kind: output, shape index: {}]  }
   0x1   :  { %12786 = sst [smem:[#allocation5_spill]] %s12764_s0 }
   0x2   :  { %12787 = sst [smem:[#allocation6_spill]] %s12765_s1 }
   0x3   :  { %12788 = sst [smem:[#allocation7_spill]] %s12766_s2 }
   0x4   :  { %12789 = sst [smem:[#allocation8_spill]] %s12767_s3 }
   0x5   :  { %s12790_s20 = sld [smem:[#allocation7_spill]] }
   0x6   :  { %s12791_s28 = sld [smem:[#allocation6_spill]] }
   0xb   :  { %v5660_v0 = vld [vmem:[%s12790_s20 + $0x188] sm:$0xf]  ;;  %v8048_v1 = vld [vmem:[%s12790_s20 + $0x1a0] sm:$0xf0]  ;;  %v5632_v11 = vld [vmem:[%s12790_s20 + $0x150] sm:$0xf] }
   0xc   :  { %v5884_v2 = vld [vmem:[%s12790_s20 + $0x348] sm:$0xf]  ;;  %v5661_v3 = vor.u32 %v8048_v1, %v5660_v0  ;;  %v8104_v4 = vld [vmem:[%s12790_s20 + $0x360] sm:$0xf0]  ;;  %v8041_v13 = vld [vmem:[%s12790_s20 + $0x168] sm:$0xf0] }
   0xd   :  { %v6108_v5 = vld [vmem:[%s12790_s20 + $0x508] sm:$0xf]  ;;  %v8160_v6 = vld [vmem:[%s12790_s20 + $0x520] sm:$0xf0]  ;;  %v5885_v7 = vor.u32 %v8104_v4, %v5884_v2  ;;  %v5856_v14 = vld [vmem:[%s12790_s20 + $0x310] sm:$0xf]  ;;  %v5633_v16 = vor.u32 %v8041_v13, %v5632_v11 }
   0xe   :  { %v6109_v8 = vor.u32 %v8160_v6, %v6108_v5  ;;  %v6332_v9 = vld [vmem:[%s12790_s20 + $0x6c8] sm:$0xf]  ;;  %v8216_v10 = vld [vmem:[%s12790_s20 + $0x6e0] sm:$0xf0]  ;;  %2915 = vmatpush.bf16.msra.mxu0 %v5661_v3  ;;  %v8097_v15 = vld [vmem:[%s12790_s20 + $0x328] sm:$0xf0] }
   0xf   :  { %v6333_v12 = vor.u32 %v8216_v10, %v6332_v9  ;;  %2928 = vmatpush.bf16.msra.mxu1 %v5885_v7  ;;  %v5857_v17 = vor.u32 %v8097_v15, %v5856_v14  ;;  %v6080_v18 = vld [vmem:[%s12790_s20 + $0x4d0] sm:$0xf]  ;;  %v8153_v19 = vld [vmem:[%s12790_s20 + $0x4e8] sm:$0xf0]  ;;  %v5604_v23 = vld [vmem:[%s12790_s20 + $0x118] sm:$0xf] }
  0x10   :  { %2941 = vmatpush.bf16.msra.mxu2 %v6109_v8  ;;  %v6304_v20 = vld [vmem:[%s12790_s20 + $0x690] sm:$0xf]  ;;  %v6081_v21 = vor.u32 %v8153_v19, %v6080_v18  ;;  %v8209_v22 = vld [vmem:[%s12790_s20 + $0x6a8] sm:$0xf0]  ;;  %v8034_v24 = vld [vmem:[%s12790_s20 + $0x130] sm:$0xf0] }
  0x11   :  { %2954 = vmatpush.bf16.msra.mxu3 %v6333_v12  ;;  %v6305_v25 = vor.u32 %v8209_v22, %v6304_v20  ;;  %v5828_v26 = vld [vmem:[%s12790_s20 + $0x2d8] sm:$0xf]  ;;  %v8090_v27 = vld [vmem:[%s12790_s20 + $0x2f0] sm:$0xf0]  ;;  %v5605_v29 = vor.u32 %v8034_v24, %v5604_v23  ;;  %v5576_v35 = vld [vmem:[%s12790_s20 + $0xe0] sm:$0xf] }
  0x12   :  { %v6052_v28 = vld [vmem:[%s12790_s20 + $0x498] sm:$0xf]  ;;  %2916 = vmatpush.bf16.msra.mxu0 %v5633_v16  ;;  %v8146_v30 = vld [vmem:[%s12790_s20 + $0x4b0] sm:$0xf0]  ;;  %v5829_v33 = vor.u32 %v8090_v27, %v5828_v26  ;;  %v8027_v36 = vld [vmem:[%s12790_s20 + $0xf8] sm:$0xf0] }
  0x13   :  { %v6276_v31 = vld [vmem:[%s12790_s20 + $0x658] sm:$0xf]  ;;  %v8202_v32 = vld [vmem:[%s12790_s20 + $0x670] sm:$0xf0]  ;;  %2929 = vmatpush.bf16.msra.mxu1 %v5857_v17  ;;  %v6053_v34 = vor.u32 %v8146_v30, %v6052_v28  ;;  %v5800_v37 = vld [vmem:[%s12790_s20 + $0x2a0] sm:$0xf]  ;;  %v5577_v44 = vor.u32 %v8027_v36, %v5576_v35 }
  0x14   :  { %2942 = vmatpush.bf16.msra.mxu2 %v6081_v21  ;;  %v6277_v38 = vor.u32 %v8202_v32, %v6276_v31  ;;  %v8083_v39 = vld [vmem:[%s12790_s20 + $0x2b8] sm:$0xf0]  ;;  %v6024_v40 = vld [vmem:[%s12790_s20 + $0x460] sm:$0xf]  ;;  %v5548_v47 = vld [vmem:[%s12790_s20 + $0xa8] sm:$0xf] }
  0x15   :  { %2955 = vmatpush.bf16.msra.mxu3 %v6305_v25  ;;  %v8139_v41 = vld [vmem:[%s12790_s20 + $0x478] sm:$0xf0]  ;;  %v6248_v42 = vld [vmem:[%s12790_s20 + $0x620] sm:$0xf]  ;;  %v5801_v45 = vor.u32 %v8083_v39, %v5800_v37  ;;  %v8020_v48 = vld [vmem:[%s12790_s20 + $0xc0] sm:$0xf0] }
  0x16   :  { %v8195_v43 = vld [vmem:[%s12790_s20 + $0x638] sm:$0xf0]  ;;  %2917 = vmatpush.bf16.msra.mxu0 %v5605_v29  ;;  %v6025_v46 = vor.u32 %v8139_v41, %v6024_v40  ;;  %v5772_v49 = vld [vmem:[%s12790_s20 + $0x268] sm:$0xf]  ;;  %v8076_v51 = vld [vmem:[%s12790_s20 + $0x280] sm:$0xf0]  ;;  %v5549_v56 = vor.u32 %v8020_v48, %v5548_v47 }
  0x17   :  { %2930 = vmatpush.bf16.msra.mxu1 %v5829_v33  ;;  %v6249_v50 = vor.u32 %v8195_v43, %v6248_v42  ;;  %v5996_v52 = vld [vmem:[%s12790_s20 + $0x428] sm:$0xf]  ;;  %v8132_v53 = vld [vmem:[%s12790_s20 + $0x440] sm:$0xf0]  ;;  %v5773_v57 = vor.u32 %v8076_v51, %v5772_v49  ;;  %v5520_v59 = vld [vmem:[%s12790_s20 + $0x70] sm:$0xf] }
  0x18   :  { %2943 = vmatpush.bf16.msra.mxu2 %v6053_v34  ;;  %v6220_v54 = vld [vmem:[%s12790_s20 + $0x5e8] sm:$0xf]  ;;  %v8188_v55 = vld [vmem:[%s12790_s20 + $0x600] sm:$0xf0]  ;;  %v5997_v58 = vor.u32 %v8132_v53, %v5996_v52  ;;  %v8013_v60 = vld [vmem:[%s12790_s20 + $0x88] sm:$0xf0] }
  0x19   :  { %2956 = vmatpush.bf16.msra.mxu3 %v6277_v38  ;;  %v5744_v61 = vld [vmem:[%s12790_s20 + $0x230] sm:$0xf]  ;;  %v6221_v62 = vor.u32 %v8188_v55, %v6220_v54  ;;  %v8069_v63 = vld [vmem:[%s12790_s20 + $0x248] sm:$0xf0]  ;;  %v5521_v4 = vor.u32 %v8013_v60, %v5520_v59  ;;  %v5492_v7 = vld [vmem:[%s12790_s20 + $0x38] sm:$0xf] }
  0x1a   :  { %2918 = vmatpush.bf16.msra.mxu0 %v5577_v44  ;;  %v5968_v0 = vld [vmem:[%s12790_s20 + $0x3f0] sm:$0xf]  ;;  %v8125_v1 = vld [vmem:[%s12790_s20 + $0x408] sm:$0xf0]  ;;  %v5745_v5 = vor.u32 %v8069_v63, %v5744_v61  ;;  %v8006_v8 = vld [vmem:[%s12790_s20 + $0x50] sm:$0xf0] }
  0x1b   :  { %2931 = vmatpush.bf16.msra.mxu1 %v5801_v45  ;;  %v6192_v2 = vld [vmem:[%s12790_s20 + $0x5b0] sm:$0xf]  ;;  %v8181_v3 = vld [vmem:[%s12790_s20 + $0x5c8] sm:$0xf0]  ;;  %v5969_v6 = vor.u32 %v8125_v1, %v5968_v0  ;;  %v5716_v9 = vld [vmem:[%s12790_s20 + $0x1f8] sm:$0xf]  ;;  %v5493_v16 = vor.u32 %v8006_v8, %v5492_v7 }
  0x1c   :  { %2944 = vmatpush.bf16.msra.mxu2 %v6025_v46  ;;  %v6193_v10 = vor.u32 %v8181_v3, %v6192_v2  ;;  %v8062_v11 = vld [vmem:[%s12790_s20 + $0x210] sm:$0xf0]  ;;  %v5940_v12 = vld [vmem:[%s12790_s20 + $0x3b8] sm:$0xf]  ;;  %v5464_v17 = vld [vmem:[%s12790_s20] sm:$0xf] }
  0x1d   :  { %2957 = vmatpush.bf16.msra.mxu3 %v6249_v50  ;;  %v8118_v13 = vld [vmem:[%s12790_s20 + $0x3d0] sm:$0xf0]  ;;  %v6164_v14 = vld [vmem:[%s12790_s20 + $0x578] sm:$0xf]  ;;  %v7999_v18 = vld [vmem:[%s12790_s20 + $0x18] sm:$0xf0]  ;;  %v5717_v19 = vor.u32 %v8062_v11, %v5716_v9 }
  0x1e   :  { %2919 = vmatpush.bf16.msra.mxu0 %v5549_v56  ;;  %v8174_v15 = vld [vmem:[%s12790_s20 + $0x590] sm:$0xf0]  ;;  %v5941_v20 = vor.u32 %v8118_v13, %v5940_v12  ;;  %v5688_v21 = vld [vmem:[%s12790_s20 + $0x1c0] sm:$0xf]  ;;  %v8055_v22 = vld [vmem:[%s12790_s20 + $0x1d8] sm:$0xf0]  ;;  %v5465_v31 = vor.u32 %v7999_v18, %v5464_v17 }
  0x1f   :  { %2932 = vmatpush.bf16.msra.mxu1 %v5773_v57  ;;  %v5912_v23 = vld [vmem:[%s12790_s20 + $0x380] sm:$0xf]  ;;  %v6165_v24 = vor.u32 %v8174_v15, %v6164_v14  ;;  %v8111_v25 = vld [vmem:[%s12790_s20 + $0x398] sm:$0xf0]  ;;  %v6556_v28 = vld [vmem:[%s12790_s20 + $0x888] sm:$0xf]  ;;  %v5689_v35 = vor.u32 %v8055_v22, %v5688_v21 }
  0x20   :  { %2945 = vmatpush.bf16.msra.mxu2 %v5997_v58  ;;  %v6136_v26 = vld [vmem:[%s12790_s20 + $0x540] sm:$0xf]  ;;  %v8167_v27 = vld [vmem:[%s12790_s20 + $0x558] sm:$0xf0]  ;;  %v8272_v29 = vld [vmem:[%s12790_s20 + $0x8a0] sm:$0xf0]  ;;  %v5913_v36 = vor.u32 %v8111_v25, %v5912_v23 }
  0x21   :  { %2958 = vmatpush.bf16.msra.mxu3 %v6221_v62  ;;  %v6780_v30 = vld [vmem:[%s12790_s20 + $0xa48] sm:$0xf]  ;;  %v8328_v32 = vld [vmem:[%s12790_s20 + $0xa60] sm:$0xf0]  ;;  %v6137_v39 = vor.u32 %v8167_v27, %v6136_v26  ;;  %v6557_v40 = vor.u32 %v8272_v29, %v6556_v28  ;;  %v6528_v43 = vld [vmem:[%s12790_s20 + $0x850] sm:$0xf] }
  0x22   :  { %2920 = vmatpush.bf16.msra.mxu0 %v5521_v4  ;;  %v7004_v33 = vld [vmem:[%s12790_s20 + $0xc08] sm:$0xf]  ;;  %v8384_v34 = vld [vmem:[%s12790_s20 + $0xc20] sm:$0xf0]  ;;  %v6781_v41 = vor.u32 %v8328_v32, %v6780_v30  ;;  %v8265_v44 = vld [vmem:[%s12790_s20 + $0x868] sm:$0xf0] }
  0x23   :  { %2933 = vmatpush.bf16.msra.mxu1 %v5745_v5  ;;  %v7228_v37 = vld [vmem:[%s12790_s20 + $0xdc8] sm:$0xf]  ;;  %v8440_v38 = vld [vmem:[%s12790_s20 + $0xde0] sm:$0xf0]  ;;  %v7005_v42 = vor.u32 %v8384_v34, %v7004_v33  ;;  %v6752_v45 = vld [vmem:[%s12790_s20 + $0xa10] sm:$0xf]  ;;  %v6529_v52 = vor.u32 %v8265_v44, %v6528_v43 }
  0x24   :  { %2946 = vmatpush.bf16.msra.mxu2 %v5969_v6  ;;  %v7229_v46 = vor.u32 %v8440_v38, %v7228_v37  ;;  %v8321_v47 = vld [vmem:[%s12790_s20 + $0xa28] sm:$0xf0]  ;;  %v6976_v48 = vld [vmem:[%s12790_s20 + $0xbd0] sm:$0xf]  ;;  %v6500_v55 = vld [vmem:[%s12790_s20 + $0x818] sm:$0xf] }
  0x25   :  { %2959 = vmatpush.bf16.msra.mxu3 %v6193_v10  ;;  %v8377_v49 = vld [vmem:[%s12790_s20 + $0xbe8] sm:$0xf0]  ;;  %v7200_v50 = vld [vmem:[%s12790_s20 + $0xd90] sm:$0xf]  ;;  %v6753_v53 = vor.u32 %v8321_v47, %v6752_v45  ;;  %v8258_v56 = vld [vmem:[%s12790_s20 + $0x830] sm:$0xf0] }
  0x26   :  { %2921 = vmatpush.bf16.msra.mxu0 %v5493_v16  ;;  %v8433_v51 = vld [vmem:[%s12790_s20 + $0xda8] sm:$0xf0]  ;;  %v6977_v54 = vor.u32 %v8377_v49, %v6976_v48  ;;  %v6724_v57 = vld [vmem:[%s12790_s20 + $0x9d8] sm:$0xf]  ;;  %v8314_v59 = vld [vmem:[%s12790_s20 + $0x9f0] sm:$0xf0]  ;;  %v6501_v0 = vor.u32 %v8258_v56, %v6500_v55 }
  0x27   :  { %2934 = vmatpush.bf16.msra.mxu1 %v5717_v19  ;;  %v7201_v58 = vor.u32 %v8433_v51, %v7200_v50  ;;  %v6948_v60 = vld [vmem:[%s12790_s20 + $0xb98] sm:$0xf]  ;;  %v8370_v61 = vld [vmem:[%s12790_s20 + $0xbb0] sm:$0xf0]  ;;  %v6472_v1 = vld [vmem:[%s12790_s20 + $0x7e0] sm:$0xf]  ;;  %v6725_v3 = vor.u32 %v8314_v59, %v6724_v57 }
  0x28   :  { %2947 = vmatpush.bf16.msra.mxu2 %v5941_v20  ;;  %v7172_v62 = vld [vmem:[%s12790_s20 + $0xd58] sm:$0xf]  ;;  %v8426_v63 = vld [vmem:[%s12790_s20 + $0xd70] sm:$0xf0]  ;;  %v64_v2 = vld [vmem:[%s12791_s28] sm:$0xff]  ;;  %v6949_v4 = vor.u32 %v8370_v61, %v6948_v60 }
  0x29   :  { %2960 = vmatpush.bf16.msra.mxu3 %v6165_v24  ;;  %v8251_v5 = vld [vmem:[%s12790_s20 + $0x7f8] sm:$0xf0]  ;;  %v6696_v6 = vld [vmem:[%s12790_s20 + $0x9a0] sm:$0xf]  ;;  %594 = vst [vmem:[#allocation1] ss:$9 sm:$0xff] %v64_v2  ;;  %v7173_v7 = vor.u32 %v8426_v63, %v7172_v62 }
  0x2a   :  { %2922 = vmatpush.bf16.msra.mxu0 %v5465_v31  ;;  %v8307_v8 = vld [vmem:[%s12790_s20 + $0x9b8] sm:$0xf0]  ;;  %v6920_v9 = vld [vmem:[%s12790_s20 + $0xb60] sm:$0xf]  ;;  %v6473_v13 = vor.u32 %v8251_v5, %v6472_v1  ;;  %v6444_v16 = vld [vmem:[%s12790_s20 + $0x7a8] sm:$0xf] }
  0x2b   :  { %2935 = vmatpush.bf16.msra.mxu1 %v5689_v35  ;;  %v8363_v10 = vld [vmem:[%s12790_s20 + $0xb78] sm:$0xf0]  ;;  %v7144_v11 = vld [vmem:[%s12790_s20 + $0xd20] sm:$0xf]  ;;  %v6697_v14 = vor.u32 %v8307_v8, %v6696_v6  ;;  %v8244_v17 = vld [vmem:[%s12790_s20 + $0x7c0] sm:$0xf0] }
  0x2c   :  { %2948 = vmatpush.bf16.msra.mxu2 %v5913_v36  ;;  %v8419_v12 = vld [vmem:[%s12790_s20 + $0xd38] sm:$0xf0]  ;;  %v6921_v15 = vor.u32 %v8363_v10, %v6920_v9  ;;  %v6668_v18 = vld [vmem:[%s12790_s20 + $0x968] sm:$0xf]  ;;  %v8300_v20 = vld [vmem:[%s12790_s20 + $0x980] sm:$0xf0]  ;;  %v6445_v26 = vor.u32 %v8244_v17, %v6444_v16 }
  0x2d   :  { %2961 = vmatpush.bf16.msra.mxu3 %v6137_v39  ;;  %v7145_v19 = vor.u32 %v8419_v12, %v7144_v11  ;;  %v6892_v21 = vld [vmem:[%s12790_s20 + $0xb28] sm:$0xf]  ;;  %v8356_v22 = vld [vmem:[%s12790_s20 + $0xb40] sm:$0xf0]  ;;  %v6416_v25 = vld [vmem:[%s12790_s20 + $0x770] sm:$0xf]  ;;  %v6669_v30 = vor.u32 %v8300_v20, %v6668_v18 }
  0x2e   :  { %2967 = vmatpush.bf16.msrb.mxu0 %v6557_v40  ;;  %v7116_v23 = vld [vmem:[%s12790_s20 + $0xce8] sm:$0xf]  ;;  %v8412_v24 = vld [vmem:[%s12790_s20 + $0xd00] sm:$0xf0]  ;;  %v6893_v31 = vor.u32 %v8356_v22, %v6892_v21  ;;  %v8237_v32 = vld [vmem:[%s12790_s20 + $0x788] sm:$0xf0] }
  0x2f   :  { %2980 = vmatpush.bf16.msrb.mxu1 %v6781_v41  ;;  %v6640_v33 = vld [vmem:[%s12790_s20 + $0x930] sm:$0xf]  ;;  %v7117_v35 = vor.u32 %v8412_v24, %v7116_v23  ;;  %v8293_v36 = vld [vmem:[%s12790_s20 + $0x948] sm:$0xf0]  ;;  %v6417_v41 = vor.u32 %v8237_v32, %v6416_v25  ;;  %v6388_v44 = vld [vmem:[%s12790_s20 + $0x738] sm:$0xf] }
  0x30   :  { %2993 = vmatpush.bf16.msrb.mxu2 %v7005_v42  ;;  %v9113_v27 = vld [vmem:[#allocation1 + $0x12] sm:$0xff]  ;;  %v9115_v28 = vld [vmem:[#allocation1] sm:$0xff]  ;;  %v9125_v34 = vld [vmem:[#allocation1 + $0x9] sm:$0xff]  ;;  %v6641_v42 = vor.u32 %v8293_v36, %v6640_v33 }
  0x31   :  { %3006 = vmatpush.bf16.msrb.mxu3 %v7229_v46  ;;  %v9117_v29 = vld [vmem:[#allocation1 + $0x1b] sm:$0xff]  ;;  %v6864_v37 = vld [vmem:[%s12790_s20 + $0xaf0] sm:$0xf]  ;;  %v8349_v38 = vld [vmem:[%s12790_s20 + $0xb08] sm:$0xf0]  ;;  %2949 = vmatmul.bf16.vlgmr.msra.gmra.mxu2 %v9113_v27 }
  0x32   :  { %2968 = vmatpush.bf16.msrb.mxu0 %v6529_v52  ;;  %v7088_v39 = vld [vmem:[%s12790_s20 + $0xcb0] sm:$0xf]  ;;  %v8405_v40 = vld [vmem:[%s12790_s20 + $0xcc8] sm:$0xf0]  ;;  %2962 = vmatmul.bf16.vlgmr.msra.gmra.mxu3 %v9117_v29  ;;  %v6865_v43 = vor.u32 %v8349_v38, %v6864_v37  ;;  %v8230_v45 = vld [vmem:[%s12790_s20 + $0x750] sm:$0xf0] }
  0x33   :  { %2981 = vmatpush.bf16.msrb.mxu1 %v6753_v53  ;;  %2923 = vmatmul.bf16.vlgmr.msra.gmra.mxu0 %v9115_v28  ;;  %v6612_v46 = vld [vmem:[%s12790_s20 + $0x8f8] sm:$0xf]  ;;  %v7089_v47 = vor.u32 %v8405_v40, %v7088_v39  ;;  %v8286_v48 = vld [vmem:[%s12790_s20 + $0x910] sm:$0xf0]  ;;  %v6389_v53 = vor.u32 %v8230_v45, %v6388_v44  ;;  %v8223_v55 = vld [vmem:[%s12790_s20 + $0x718] sm:$0xf0] }
  0x34   :  { %2994 = vmatpush.bf16.msrb.mxu2 %v6977_v54  ;;  %2936 = vmatmul.bf16.vlgmr.msra.gmra.mxu1 %v9125_v34  ;;  %v6836_v49 = vld [vmem:[%s12790_s20 + $0xab8] sm:$0xf]  ;;  %v8342_v50 = vld [vmem:[%s12790_s20 + $0xad0] sm:$0xf0]  ;;  %v6360_v54 = vld [vmem:[%s12790_s20 + $0x700] sm:$0xf]  ;;  %v6613_v56 = vor.u32 %v8286_v48, %v6612_v46 }
  0x35   :  { %3007 = vmatpush.bf16.msrb.mxu3 %v7201_v58  ;;  %v7060_v51 = vld [vmem:[%s12790_s20 + $0xc78] sm:$0xf]  ;;  %v8398_v52 = vld [vmem:[%s12790_s20 + $0xc90] sm:$0xf0]  ;;  %v6837_v57 = vor.u32 %v8342_v50, %v6836_v49  ;;  %v6584_v58 = vld [vmem:[%s12790_s20 + $0x8c0] sm:$0xf] }
  0x36   :  { %2969 = vmatpush.bf16.msrb.mxu0 %v6501_v0  ;;  %v8279_v59 = vld [vmem:[%s12790_s20 + $0x8d8] sm:$0xf0]  ;;  %v6808_v60 = vld [vmem:[%s12790_s20 + $0xa80] sm:$0xf]  ;;  %v7061_v61 = vor.u32 %v8398_v52, %v7060_v51  ;;  %v8045_v1 = vld [vmem:[%s12790_s20 + $0x18c] sm:$0xf] }
  0x37   :  { %2982 = vmatpush.bf16.msrb.mxu1 %v6725_v3  ;;  %v8335_v62 = vld [vmem:[%s12790_s20 + $0xa98] sm:$0xf0]  ;;  %v7032_v63 = vld [vmem:[%s12790_s20 + $0xc40] sm:$0xf]  ;;  %v5662_v2 = vld [vmem:[%s12790_s20 + $0x1a4] sm:$0xf0]  ;;  %v6585_v8 = vor.u32 %v8279_v59, %v6584_v58 }
  0x38   :  { %2995 = vmatpush.bf16.msrb.mxu2 %v6949_v4  ;;  %v8391_v0 = vld [vmem:[%s12790_s20 + $0xc58] sm:$0xf0]  ;;  %v8101_v3 = vld [vmem:[%s12790_s20 + $0x34c] sm:$0xf]  ;;  %v6361_v4 = vor.u32 %v8223_v55, %v6360_v54  ;;  %v5886_v5 = vld [vmem:[%s12790_s20 + $0x364] sm:$0xf0]  ;;  %v6809_v9 = vor.u32 %v8335_v62, %v6808_v60 }
  0x39   :  { %3008 = vmatpush.bf16.msrb.mxu3 %v7173_v7  ;;  %v8157_v6 = vld [vmem:[%s12790_s20 + $0x50c] sm:$0xf]  ;;  %v6110_v7 = vld [vmem:[%s12790_s20 + $0x524] sm:$0xf0]  ;;  %v7033_v12 = vor.u32 %v8391_v0, %v7032_v63  ;;  %v8038_v16 = vld [vmem:[%s12790_s20 + $0x154] sm:$0xf] }
  0x3a   :  { %2970 = vmatpush.bf16.msrb.mxu0 %v6473_v13  ;;  %v8213_v10 = vld [vmem:[%s12790_s20 + $0x6cc] sm:$0xf]  ;;  %v6334_v11 = vld [vmem:[%s12790_s20 + $0x6e4] sm:$0xf0]  ;;  %v5665_v13 = vor.u32 %v8045_v1, %v5662_v2  ;;  %v5634_v17 = vld [vmem:[%s12790_s20 + $0x16c] sm:$0xf0] }
  0x3b   :  { %2983 = vmatpush.bf16.msrb.mxu1 %v6697_v14  ;;  %v5889_v14 = vor.u32 %v8101_v3, %v5886_v5  ;;  %v8094_v18 = vld [vmem:[%s12790_s20 + $0x314] sm:$0xf]  ;;  %v5858_v20 = vld [vmem:[%s12790_s20 + $0x32c] sm:$0xf0]  ;;  %v9249_v32 = vld [vmem:[#allocation1 + $0x3f] sm:$0xff] }
  0x3c   :  { %2996 = vmatpush.bf16.msrb.mxu2 %v6921_v15  ;;  %v6113_v15 = vor.u32 %v8157_v6, %v6110_v7  ;;  %v8150_v21 = vld [vmem:[%s12790_s20 + $0x4d4] sm:$0xf]  ;;  %v6082_v22 = vld [vmem:[%s12790_s20 + $0x4ec] sm:$0xf0]  ;;  %v5861_v33 = vor.u32 %v8094_v18, %v5858_v20  ;;  %v5606_v36 = vld [vmem:[%s12790_s20 + $0x134] sm:$0xf0] }
  0x3d   :  { %3009 = vmatpush.bf16.msrb.mxu3 %v7145_v19  ;;  %v6337_v19 = vor.u32 %v8213_v10, %v6334_v11  ;;  %v8206_v23 = vld [vmem:[%s12790_s20 + $0x694] sm:$0xf]  ;;  %v6306_v24 = vld [vmem:[%s12790_s20 + $0x6ac] sm:$0xf0]  ;;  %v8087_v37 = vld [vmem:[%s12790_s20 + $0x2dc] sm:$0xf] }
  0x3e   :  { %2971 = vmatpush.bf16.msrb.mxu0 %v6445_v26  ;;  %v9242_v25 = vld [vmem:[#allocation1 + $0x36] sm:$0xff]  ;;  %v5637_v26 = vor.u32 %v8038_v16, %v5634_v17  ;;  %v9257_v38 = vld [vmem:[#allocation1 + $0x2d] sm:$0xff]  ;;  %v6309_v39 = vor.u32 %v8206_v23, %v6306_v24  ;;  %v8024_v48 = vld [vmem:[%s12790_s20 + $0xe4] sm:$0xf] }
  0x3f   :  { %2984 = vmatpush.bf16.msrb.mxu1 %v6669_v30  ;;  %v8031_v30 = vld [vmem:[%s12790_s20 + $0x11c] sm:$0xf]  ;;  %v5830_v40 = vld [vmem:[%s12790_s20 + $0x2f4] sm:$0xf0]  ;;  %v5578_v49 = vld [vmem:[%s12790_s20 + $0xfc] sm:$0xf0] }
  0x40   :  { %2997 = vmatpush.bf16.msrb.mxu2 %v6893_v31  ;;  %v9247_v31 = vld [vmem:[#allocation1 + $0x24] sm:$0xff]  ;;  %v6278_v44 = vld [vmem:[%s12790_s20 + $0x674] sm:$0xf0]  ;;  %v5609_v45 = vor.u32 %v8031_v30, %v5606_v36  ;;  %v5833_v46 = vor.u32 %v8087_v37, %v5830_v40  ;;  %v5802_v52 = vld [vmem:[%s12790_s20 + $0x2bc] sm:$0xf0] }
  0x41   :  { %3010 = vmatpush.bf16.msrb.mxu3 %v7117_v35  ;;  %v6085_v35 = vor.u32 %v8150_v21, %v6082_v22  ;;  %v8080_v50 = vld [vmem:[%s12790_s20 + $0x2a4] sm:$0xf]  ;;  %v6026_v54 = vld [vmem:[%s12790_s20 + $0x47c] sm:$0xf0]  ;;  %v8017_v60 = vld [vmem:[%s12790_s20 + $0xac] sm:$0xf] }
  0x42   :  { %2972 = vmatpush.bf16.msrb.mxu0 %v6417_v41  ;;  %v8143_v41 = vld [vmem:[%s12790_s20 + $0x49c] sm:$0xf]  ;;  %v8192_v55 = vld [vmem:[%s12790_s20 + $0x624] sm:$0xf]  ;;  %v5805_v58 = vor.u32 %v8080_v50, %v5802_v52  ;;  %v8073_v62 = vld [vmem:[%s12790_s20 + $0x26c] sm:$0xf] }
  0x43   :  { %2985 = vmatpush.bf16.msrb.mxu1 %v6641_v42  ;;  %v6054_v42 = vld [vmem:[%s12790_s20 + $0x4b4] sm:$0xf0]  ;;  %v5774_v0 = vld [vmem:[%s12790_s20 + $0x284] sm:$0xf0]  ;;  %v8129_v1 = vld [vmem:[%s12790_s20 + $0x42c] sm:$0xf] }
  0x44   :  { %2998 = vmatpush.bf16.msrb.mxu2 %v6865_v43  ;;  %v8199_v43 = vld [vmem:[%s12790_s20 + $0x65c] sm:$0xf]  ;;  %v5998_v2 = vld [vmem:[%s12790_s20 + $0x444] sm:$0xf0]  ;;  %v8185_v3 = vld [vmem:[%s12790_s20 + $0x5ec] sm:$0xf]  ;;  %v5777_v6 = vor.u32 %v8073_v62, %v5774_v0 }
  0x45   :  { %3011 = vmatpush.bf16.msrb.mxu3 %v7089_v47  ;;  %v6057_v47 = vor.u32 %v8143_v41, %v6054_v42  ;;  %v6281_v51 = vor.u32 %v8199_v43, %v6278_v44  ;;  %v6001_v7 = vor.u32 %v8129_v1, %v5998_v2  ;;  %v8066_v10 = vld [vmem:[%s12790_s20 + $0x234] sm:$0xf]  ;;  %v6194_v16 = vld [vmem:[%s12790_s20 + $0x5cc] sm:$0xf0]  ;;  %v8003_v18 = vld [vmem:[%s12790_s20 + $0x3c] sm:$0xf] }
  0x46   :  { %2973 = vmatpush.bf16.msrb.mxu0 %v6389_v53  ;;  %v8136_v53 = vld [vmem:[%s12790_s20 + $0x464] sm:$0xf]  ;;  %v5494_v21 = vld [vmem:[%s12790_s20 + $0x54] sm:$0xf0]  ;;  %v8059_v22 = vld [vmem:[%s12790_s20 + $0x1fc] sm:$0xf] }
  0x47   :  { %2986 = vmatpush.bf16.msrb.mxu1 %v6613_v56  ;;  %v6250_v56 = vld [vmem:[%s12790_s20 + $0x63c] sm:$0xf0]  ;;  %v6029_v59 = vor.u32 %v8136_v53, %v6026_v54  ;;  %v5718_v23 = vld [vmem:[%s12790_s20 + $0x214] sm:$0xf0]  ;;  %v7996_v36 = vld [vmem:[%s12790_s20 + $0x4] sm:$0xf] }
  0x48   :  { %2999 = vmatpush.bf16.msrb.mxu2 %v6837_v57  ;;  %v5581_v57 = vor.u32 %v8024_v48, %v5578_v49  ;;  %v6253_v63 = vor.u32 %v8192_v55, %v6250_v56  ;;  %v5942_v30 = vld [vmem:[%s12790_s20 + $0x3d4] sm:$0xf0]  ;;  %v5466_v37 = vld [vmem:[%s12790_s20 + $0x1c] sm:$0xf0]  ;;  %v8052_v40 = vld [vmem:[%s12790_s20 + $0x1c4] sm:$0xf]  ;;  %v5721_v44 = vor.u32 %v8059_v22, %v5718_v23 }
  0x49   :  { %3012 = vmatpush.bf16.msrb.mxu3 %v7061_v61  ;;  %v5550_v61 = vld [vmem:[%s12790_s20 + $0xc4] sm:$0xf0]  ;;  %v5690_v41 = vld [vmem:[%s12790_s20 + $0x1dc] sm:$0xf0]  ;;  %v8108_v42 = vld [vmem:[%s12790_s20 + $0x384] sm:$0xf]  ;;  %v5469_v53 = vor.u32 %v7996_v36, %v5466_v37 }
  0x4a   :  { %2974 = vmatpush.bf16.msrb.mxu0 %v6361_v4  ;;  %v6222_v4 = vld [vmem:[%s12790_s20 + $0x604] sm:$0xf0]  ;;  %v5553_v5 = vor.u32 %v8017_v60, %v5550_v61  ;;  %v5914_v43 = vld [vmem:[%s12790_s20 + $0x39c] sm:$0xf0]  ;;  %v8269_v48 = vld [vmem:[%s12790_s20 + $0x88c] sm:$0xf]  ;;  %v5693_v56 = vor.u32 %v8052_v40, %v5690_v41 }
  0x4b   :  { %2987 = vmatpush.bf16.msrb.mxu1 %v6585_v8  ;;  %v8010_v8 = vld [vmem:[%s12790_s20 + $0x74] sm:$0xf]  ;;  %v6225_v11 = vor.u32 %v8185_v3, %v6222_v4  ;;  %v6558_v50 = vld [vmem:[%s12790_s20 + $0x8a4] sm:$0xf0]  ;;  %v8381_v54 = vld [vmem:[%s12790_s20 + $0xc0c] sm:$0xf] }
  0x4c   :  { %3000 = vmatpush.bf16.msrb.mxu2 %v6809_v9  ;;  %v5522_v9 = vld [vmem:[%s12790_s20 + $0x8c] sm:$0xf0]  ;;  %v6782_v52 = vld [vmem:[%s12790_s20 + $0xa64] sm:$0xf0]  ;;  %v6561_v61 = vor.u32 %v8269_v48, %v6558_v50  ;;  %v8262_v0 = vld [vmem:[%s12790_s20 + $0x854] sm:$0xf] }
  0x4d   :  { %3013 = vmatpush.bf16.msrb.mxu3 %v7033_v12  ;;  %2975 = vmatmul.bf16.vlgmr.msrb.gmra.mxu0 %v9247_v31  ;;  %v5746_v12 = vld [vmem:[%s12790_s20 + $0x24c] sm:$0xf0]  ;;  %v5525_v17 = vor.u32 %v8010_v8, %v5522_v9  ;;  %v7006_v55 = vld [vmem:[%s12790_s20 + $0xc24] sm:$0xf0]  ;;  %v8318_v2 = vld [vmem:[%s12790_s20 + $0xa14] sm:$0xf] }
  0x4e   :  { %3019 = vmatpush.bf16.msra.mxu0 %v5665_v13  ;;  %2988 = vmatmul.bf16.vlgmr.msrb.gmra.mxu1 %v9257_v38  ;;  %v8122_v13 = vld [vmem:[%s12790_s20 + $0x3f4] sm:$0xf]  ;;  %v6530_v1 = vld [vmem:[%s12790_s20 + $0x86c] sm:$0xf0] }
  0x4f   :  { %3032 = vmatpush.bf16.msra.mxu1 %v5889_v14  ;;  %3001 = vmatmul.bf16.vlgmr.msrb.gmra.mxu2 %v9242_v25  ;;  %v5970_v14 = vld [vmem:[%s12790_s20 + $0x40c] sm:$0xf0]  ;;  %v6533_v9 = vor.u32 %v8262_v0, %v6530_v1 }
  0x50   :  { %3045 = vmatpush.bf16.msra.mxu2 %v6113_v15  ;;  %3014 = vmatmul.bf16.vlgmr.msrb.gmra.mxu3 %v9249_v32  ;;  %v8178_v15 = vld [vmem:[%s12790_s20 + $0x5b4] sm:$0xf]  ;;  %v5973_v20 = vor.u32 %v8122_v13, %v5970_v14  ;;  %v6754_v4 = vld [vmem:[%s12790_s20 + $0xa2c] sm:$0xf0]  ;;  %v6502_v13 = vld [vmem:[%s12790_s20 + $0x834] sm:$0xf0] }
  0x51   :  { %3058 = vmatpush.bf16.msra.mxu3 %v6337_v19  ;;  %v5749_v19 = vor.u32 %v8066_v10, %v5746_v12  ;;  %v6197_v24 = vor.u32 %v8178_v15, %v6194_v16  ;;  %v7202_v8 = vld [vmem:[%s12790_s20 + $0xdac] sm:$0xf0]  ;;  %v6757_v10 = vor.u32 %v8318_v2, %v6754_v4  ;;  %v8255_v12 = vld [vmem:[%s12790_s20 + $0x81c] sm:$0xf]  ;;  %v6726_v16 = vld [vmem:[%s12790_s20 + $0x9f4] sm:$0xf0] }
  0x52   :  { %3020 = vmatpush.bf16.msra.mxu0 %v5637_v26  ;;  %v8115_v26 = vld [vmem:[%s12790_s20 + $0x3bc] sm:$0xf] }
  0x53   :  { %3033 = vmatpush.bf16.msra.mxu1 %v5861_v33  ;;  %v8171_v33 = vld [vmem:[%s12790_s20 + $0x57c] sm:$0xf] }
  0x54   :  { %3046 = vmatpush.bf16.msra.mxu2 %v6085_v35  ;;  %v6166_v35 = vld [vmem:[%s12790_s20 + $0x594] sm:$0xf0]  ;;  %v8311_v14 = vld [vmem:[%s12790_s20 + $0x9dc] sm:$0xf] }
  0x55   :  { %3059 = vmatpush.bf16.msra.mxu3 %v6309_v39  ;;  %v5497_v39 = vor.u32 %v8003_v18, %v5494_v21  ;;  %v6169_v49 = vor.u32 %v8171_v33, %v6166_v35  ;;  %v6950_v18 = vld [vmem:[%s12790_s20 + $0xbb4] sm:$0xf0] }
  0x56   :  { %3021 = vmatpush.bf16.msra.mxu0 %v5609_v45  ;;  %v5945_v45 = vor.u32 %v8115_v26, %v5942_v30 }
  0x57   :  { %3034 = vmatpush.bf16.msra.mxu1 %v5833_v46  ;;  %v8164_v46 = vld [vmem:[%s12790_s20 + $0x544] sm:$0xf] }
  0x58   :  { %3047 = vmatpush.bf16.msra.mxu2 %v6057_v47  ;;  %v6138_v47 = vld [vmem:[%s12790_s20 + $0x55c] sm:$0xf0] }
  0x59   :  { %3060 = vmatpush.bf16.msra.mxu3 %v6281_v51  ;;  %v8325_v51 = vld [vmem:[%s12790_s20 + $0xa4c] sm:$0xf]  ;;  %v6141_v60 = vor.u32 %v8164_v46, %v6138_v47 }
  0x5a   :  { %3022 = vmatpush.bf16.msra.mxu0 %v5581_v57  ;;  %v5917_v57 = vor.u32 %v8108_v42, %v5914_v43  ;;  %v6785_v62 = vor.u32 %v8325_v51, %v6782_v52 }
  0x5b   :  { %3035 = vmatpush.bf16.msra.mxu1 %v5805_v58  ;;  %v8437_v58 = vld [vmem:[%s12790_s20 + $0xdcc] sm:$0xf] }
  0x5c   :  { %3048 = vmatpush.bf16.msra.mxu2 %v6029_v59  ;;  %v7230_v59 = vld [vmem:[%s12790_s20 + $0xde4] sm:$0xf0] }
  0x5d   :  { %3061 = vmatpush.bf16.msra.mxu3 %v6253_v63  ;;  %v7009_v63 = vor.u32 %v8381_v54, %v7006_v55  ;;  %v7233_v3 = vor.u32 %v8437_v58, %v7230_v59 }
  0x5e   :  { %3023 = vmatpush.bf16.msra.mxu0 %v5553_v5  ;;  %v8374_v5 = vld [vmem:[%s12790_s20 + $0xbd4] sm:$0xf] }
  0x5f   :  { %3036 = vmatpush.bf16.msra.mxu1 %v5777_v6  ;;  %v6978_v6 = vld [vmem:[%s12790_s20 + $0xbec] sm:$0xf0] }
  0x60   :  { %3049 = vmatpush.bf16.msra.mxu2 %v6001_v7  ;;  %v8430_v7 = vld [vmem:[%s12790_s20 + $0xd94] sm:$0xf] }
  0x61   :  { %3062 = vmatpush.bf16.msra.mxu3 %v6225_v11  ;;  %v6981_v11 = vor.u32 %v8374_v5, %v6978_v6  ;;  %v7205_v15 = vor.u32 %v8430_v7, %v7202_v8 }
  0x62   :  { %3024 = vmatpush.bf16.msra.mxu0 %v5525_v17  ;;  %v8367_v17 = vld [vmem:[%s12790_s20 + $0xb9c] sm:$0xf] }
  0x63   :  { %3037 = vmatpush.bf16.msra.mxu1 %v5749_v19  ;;  %v8423_v19 = vld [vmem:[%s12790_s20 + $0xd5c] sm:$0xf] }
  0x64   :  { %3050 = vmatpush.bf16.msra.mxu2 %v5973_v20  ;;  %v7174_v20 = vld [vmem:[%s12790_s20 + $0xd74] sm:$0xf0] }
  0x65   :  { %3063 = vmatpush.bf16.msra.mxu3 %v6197_v24 }
  0x66   :  { %3025 = vmatpush.bf16.msra.mxu0 %v5497_v39 }
  0x67   :  { %3038 = vmatpush.bf16.msra.mxu1 %v5721_v44 }
  0x68   :  { %3051 = vmatpush.bf16.msra.mxu2 %v5945_v45 }
  0x69   :  { %3064 = vmatpush.bf16.msra.mxu3 %v6169_v49 }
  0x6a   :  { %3026 = vmatpush.bf16.msra.mxu0 %v5469_v53 }
  0x6b   :  { %3039 = vmatpush.bf16.msra.mxu1 %v5693_v56 }
  0x6c   :  { %3052 = vmatpush.bf16.msra.mxu2 %v5917_v57 }
  0x6d   :  { %3065 = vmatpush.bf16.msra.mxu3 %v6141_v60  ;;  %3027 = vmatmul.bf16.vlgmr.msra.gmra.mxu0 %v9115_v28 }
  0x6e   :  { %3071 = vmatpush.bf16.msrb.mxu0 %v6561_v61 }
  0x6f   :  { %3084 = vmatpush.bf16.msrb.mxu1 %v6785_v62  ;;  %3053 = vmatmul.bf16.vlgmr.msra.gmra.mxu2 %v9113_v27 }
  0x70   :  { %3097 = vmatpush.bf16.msrb.mxu2 %v7009_v63  ;;  %3066 = vmatmul.bf16.vlgmr.msra.gmra.mxu3 %v9117_v29 }
  0x71   :  { %3110 = vmatpush.bf16.msrb.mxu3 %v7233_v3 }
  0x72   :  { %24 = vsyncpa [#allocation3], 0  ;;  %3072 = vmatpush.bf16.msrb.mxu0 %v6533_v9  ;;  %v6505_v21 = vor.u32 %v8255_v12, %v6502_v13  ;;  %3040 = vmatmul.bf16.vlgmr.msra.gmra.mxu1 %v9125_v34  ;;  %v6729_v22 = vor.u32 %v8311_v14, %v6726_v16  ;;  %v6953_v23 = vor.u32 %v8367_v17, %v6950_v18  ;;  %v8248_v24 = vld [vmem:[%s12790_s20 + $0x7e4] sm:$0xf]  ;;  %v6474_v26 = vld [vmem:[%s12790_s20 + $0x7fc] sm:$0xf0] }
  0x73   :  { %3085 = vmatpush.bf16.msrb.mxu1 %v6757_v10  ;;  %v8304_v30 = vld [vmem:[%s12790_s20 + $0x9a4] sm:$0xf]  ;;  %v7177_v33 = vor.u32 %v8423_v19, %v7174_v20  ;;  %v6698_v35 = vld [vmem:[%s12790_s20 + $0x9bc] sm:$0xf0]  ;;  %v6477_v41 = vor.u32 %v8248_v24, %v6474_v26  ;;  %v8241_v44 = vld [vmem:[%s12790_s20 + $0x7ac] sm:$0xf] }
  0x74   :  { %3098 = vmatpush.bf16.msrb.mxu2 %v6981_v11  ;;  %v8360_v36 = vld [vmem:[%s12790_s20 + $0xb64] sm:$0xf]  ;;  %v6922_v37 = vld [vmem:[%s12790_s20 + $0xb7c] sm:$0xf0]  ;;  %v6701_v42 = vor.u32 %v8304_v30, %v6698_v35  ;;  %v6446_v45 = vld [vmem:[%s12790_s20 + $0x7c4] sm:$0xf0] }
  0x75   :  { %3111 = vmatpush.bf16.msrb.mxu3 %v7205_v15  ;;  %v8416_v39 = vld [vmem:[%s12790_s20 + $0xd24] sm:$0xf]  ;;  %v7146_v40 = vld [vmem:[%s12790_s20 + $0xd3c] sm:$0xf0]  ;;  %v6925_v43 = vor.u32 %v8360_v36, %v6922_v37  ;;  %v8297_v46 = vld [vmem:[%s12790_s20 + $0x96c] sm:$0xf]  ;;  %v6449_v53 = vor.u32 %v8241_v44, %v6446_v45 }
  0x76   :  { %3073 = vmatpush.bf16.msrb.mxu0 %v6505_v21  ;;  %v7149_v47 = vor.u32 %v8416_v39, %v7146_v40  ;;  %v6670_v48 = vld [vmem:[%s12790_s20 + $0x984] sm:$0xf0]  ;;  %v8353_v49 = vld [vmem:[%s12790_s20 + $0xb2c] sm:$0xf]  ;;  %v8234_v56 = vld [vmem:[%s12790_s20 + $0x774] sm:$0xf] }
  0x77   :  { %3086 = vmatpush.bf16.msrb.mxu1 %v6729_v22  ;;  %v6894_v50 = vld [vmem:[%s12790_s20 + $0xb44] sm:$0xf0]  ;;  %v8409_v51 = vld [vmem:[%s12790_s20 + $0xcec] sm:$0xf]  ;;  %v6673_v54 = vor.u32 %v8297_v46, %v6670_v48  ;;  %v6418_v57 = vld [vmem:[%s12790_s20 + $0x78c] sm:$0xf0] }
  0x78   :  { %3099 = vmatpush.bf16.msrb.mxu2 %v6953_v23  ;;  %v7118_v52 = vld [vmem:[%s12790_s20 + $0xd04] sm:$0xf0]  ;;  %v6897_v55 = vor.u32 %v8353_v49, %v6894_v50  ;;  %v8290_v58 = vld [vmem:[%s12790_s20 + $0x934] sm:$0xf]  ;;  %v6642_v60 = vld [vmem:[%s12790_s20 + $0x94c] sm:$0xf0]  ;;  %v6421_v1 = vor.u32 %v8234_v56, %v6418_v57 }
  0x79   :  { %3112 = vmatpush.bf16.msrb.mxu3 %v7177_v33  ;;  %v7121_v59 = vor.u32 %v8409_v51, %v7118_v52  ;;  %v8346_v61 = vld [vmem:[%s12790_s20 + $0xaf4] sm:$0xf]  ;;  %v6866_v62 = vld [vmem:[%s12790_s20 + $0xb0c] sm:$0xf0]  ;;  %v6645_v2 = vor.u32 %v8290_v58, %v6642_v60  ;;  %v8227_v4 = vld [vmem:[%s12790_s20 + $0x73c] sm:$0xf] }
  0x7a   :  { %3074 = vmatpush.bf16.msrb.mxu0 %v6477_v41  ;;  %v8402_v63 = vld [vmem:[%s12790_s20 + $0xcb4] sm:$0xf]  ;;  %v7090_v0 = vld [vmem:[%s12790_s20 + $0xccc] sm:$0xf0]  ;;  %v6869_v3 = vor.u32 %v8346_v61, %v6866_v62  ;;  %v6390_v5 = vld [vmem:[%s12790_s20 + $0x754] sm:$0xf0] }
  0x7b   :  { %3087 = vmatpush.bf16.msrb.mxu1 %v6701_v42  ;;  %v8283_v6 = vld [vmem:[%s12790_s20 + $0x8fc] sm:$0xf]  ;;  %v7093_v7 = vor.u32 %v8402_v63, %v7090_v0  ;;  %v6614_v8 = vld [vmem:[%s12790_s20 + $0x914] sm:$0xf0]  ;;  %v6393_v13 = vor.u32 %v8227_v4, %v6390_v5  ;;  %v8220_v14 = vld [vmem:[%s12790_s20 + $0x704] sm:$0xf] }
  0x7c   :  { %3100 = vmatpush.bf16.msrb.mxu2 %v6925_v43  ;;  %v8339_v9 = vld [vmem:[%s12790_s20 + $0xabc] sm:$0xf]  ;;  %v6838_v10 = vld [vmem:[%s12790_s20 + $0xad4] sm:$0xf0]  ;;  %v6362_v15 = vld [vmem:[%s12790_s20 + $0x71c] sm:$0xf0]  ;;  %v6617_v16 = vor.u32 %v8283_v6, %v6614_v8 }
  0x7d   :  { %3113 = vmatpush.bf16.msrb.mxu3 %v7149_v47  ;;  %v8395_v11 = vld [vmem:[%s12790_s20 + $0xc7c] sm:$0xf]  ;;  %v7062_v12 = vld [vmem:[%s12790_s20 + $0xc94] sm:$0xf0]  ;;  %v6841_v17 = vor.u32 %v8339_v9, %v6838_v10  ;;  %v8276_v18 = vld [vmem:[%s12790_s20 + $0x8c4] sm:$0xf]  ;;  %v6365_v35 = vor.u32 %v8220_v14, %v6362_v15 }
  0x7e   :  { %3075 = vmatpush.bf16.msrb.mxu0 %v6449_v53  ;;  %v6586_v19 = vld [vmem:[%s12790_s20 + $0x8dc] sm:$0xf0]  ;;  %v8332_v20 = vld [vmem:[%s12790_s20 + $0xa84] sm:$0xf]  ;;  %v7065_v21 = vor.u32 %v8395_v11, %v7062_v12  ;;  %v5668_v26 = vld [vmem:[%s12790_s20 + $0x190] sm:$0xf] }
  0x7f   :  { %3088 = vmatpush.bf16.msrb.mxu1 %v6673_v54  ;;  %v6810_v22 = vld [vmem:[%s12790_s20 + $0xa9c] sm:$0xf0]  ;;  %v8388_v23 = vld [vmem:[%s12790_s20 + $0xc44] sm:$0xf]  ;;  %v8049_v30 = vld [vmem:[%s12790_s20 + $0x1a8] sm:$0xf0]  ;;  %v6589_v40 = vor.u32 %v8276_v18, %v6586_v19 }
  0x80   :  { %3101 = vmatpush.bf16.msrb.mxu2 %v6897_v55  ;;  %v7034_v24 = vld [vmem:[%s12790_s20 + $0xc5c] sm:$0xf0]  ;;  %v5892_v33 = vld [vmem:[%s12790_s20 + $0x350] sm:$0xf]  ;;  %v8105_v36 = vld [vmem:[%s12790_s20 + $0x368] sm:$0xf0]  ;;  %v6813_v41 = vor.u32 %v8332_v20, %v6810_v22  ;;  %v5669_v45 = vor.u32 %v8049_v30, %v5668_v26 }
  0x81   :  { %3114 = vmatpush.bf16.msrb.mxu3 %v7121_v59  ;;  %v6116_v37 = vld [vmem:[%s12790_s20 + $0x510] sm:$0xf]  ;;  %v8161_v39 = vld [vmem:[%s12790_s20 + $0x528] sm:$0xf0]  ;;  %v7037_v44 = vor.u32 %v8388_v23, %v7034_v24  ;;  %v5893_v46 = vor.u32 %v8105_v36, %v5892_v33  ;;  %v5640_v48 = vld [vmem:[%s12790_s20 + $0x158] sm:$0xf] }
  0x82   :  { %3076 = vmatpush.bf16.msrb.mxu0 %v6421_v1  ;;  %v6340_v42 = vld [vmem:[%s12790_s20 + $0x6d0] sm:$0xf]  ;;  %v8217_v43 = vld [vmem:[%s12790_s20 + $0x6e8] sm:$0xf0]  ;;  %v6117_v47 = vor.u32 %v8161_v39, %v6116_v37  ;;  %v8042_v49 = vld [vmem:[%s12790_s20 + $0x170] sm:$0xf0] }
  0x83   :  { %3089 = vmatpush.bf16.msrb.mxu1 %v6645_v2  ;;  %v5864_v50 = vld [vmem:[%s12790_s20 + $0x318] sm:$0xf]  ;;  %v6341_v51 = vor.u32 %v8217_v43, %v6340_v42  ;;  %v8098_v52 = vld [vmem:[%s12790_s20 + $0x330] sm:$0xf0]  ;;  %v5641_v57 = vor.u32 %v8042_v49, %v5640_v48  ;;  %v5612_v60 = vld [vmem:[%s12790_s20 + $0x120] sm:$0xf] }
  0x84   :  { %3102 = vmatpush.bf16.msrb.mxu2 %v6869_v3  ;;  %v6088_v53 = vld [vmem:[%s12790_s20 + $0x4d8] sm:$0xf]  ;;  %v8154_v54 = vld [vmem:[%s12790_s20 + $0x4f0] sm:$0xf0]  ;;  %v5865_v58 = vor.u32 %v8098_v52, %v5864_v50  ;;  %v8035_v61 = vld [vmem:[%s12790_s20 + $0x138] sm:$0xf0] }
  0x85   :  { %3115 = vmatpush.bf16.msrb.mxu3 %v7093_v7  ;;  %v6312_v55 = vld [vmem:[%s12790_s20 + $0x698] sm:$0xf]  ;;  %v8210_v56 = vld [vmem:[%s12790_s20 + $0x6b0] sm:$0xf0]  ;;  %v6089_v59 = vor.u32 %v8154_v54, %v6088_v53  ;;  %v5836_v62 = vld [vmem:[%s12790_s20 + $0x2e0] sm:$0xf]  ;;  %v5613_v4 = vor.u32 %v8035_v61, %v5612_v60 }
  0x86   :  { %3077 = vmatpush.bf16.msrb.mxu0 %v6393_v13  ;;  %v6313_v63 = vor.u32 %v8210_v56, %v6312_v55  ;;  %v8091_v0 = vld [vmem:[%s12790_s20 + $0x2f8] sm:$0xf0]  ;;  %v6060_v1 = vld [vmem:[%s12790_s20 + $0x4a0] sm:$0xf]  ;;  %v5584_v7 = vld [vmem:[%s12790_s20 + $0xe8] sm:$0xf] }
  0x87   :  { %3090 = vmatpush.bf16.msrb.mxu1 %v6617_v16  ;;  %v8147_v2 = vld [vmem:[%s12790_s20 + $0x4b8] sm:$0xf0]  ;;  %v6284_v3 = vld [vmem:[%s12790_s20 + $0x660] sm:$0xf]  ;;  %v5837_v5 = vor.u32 %v8091_v0, %v5836_v62  ;;  %v8028_v8 = vld [vmem:[%s12790_s20 + $0x100] sm:$0xf0] }
  0x88   :  { %3103 = vmatpush.bf16.msrb.mxu2 %v6841_v17  ;;  %v6061_v6 = vor.u32 %v8147_v2, %v6060_v1  ;;  %v6032_v9 = vld [vmem:[%s12790_s20 + $0x468] sm:$0xf]  ;;  %v8140_v10 = vld [vmem:[%s12790_s20 + $0x480] sm:$0xf0]  ;;  %v5585_v13 = vor.u32 %v8028_v8, %v5584_v7  ;;  %v5556_v16 = vld [vmem:[%s12790_s20 + $0xb0] sm:$0xf] }
  0x89   :  { %3116 = vmatpush.bf16.msrb.mxu3 %v7065_v21  ;;  %v6256_v11 = vld [vmem:[%s12790_s20 + $0x628] sm:$0xf]  ;;  %v8196_v12 = vld [vmem:[%s12790_s20 + $0x640] sm:$0xf0]  ;;  %v6033_v15 = vor.u32 %v8140_v10, %v6032_v9  ;;  %v8021_v17 = vld [vmem:[%s12790_s20 + $0xc8] sm:$0xf0] }
  0x8a   :  { %3078 = vmatpush.bf16.msrb.mxu0 %v6365_v35  ;;  %v5780_v18 = vld [vmem:[%s12790_s20 + $0x270] sm:$0xf]  ;;  %v6257_v19 = vor.u32 %v8196_v12, %v6256_v11  ;;  %v8077_v20 = vld [vmem:[%s12790_s20 + $0x288] sm:$0xf0]  ;;  %v5557_v26 = vor.u32 %v8021_v17, %v5556_v16  ;;  %v5528_v35 = vld [vmem:[%s12790_s20 + $0x78] sm:$0xf] }
  0x8b   :  { %3091 = vmatpush.bf16.msrb.mxu1 %v6589_v40  ;;  %v6004_v21 = vld [vmem:[%s12790_s20 + $0x430] sm:$0xf]  ;;  %v8133_v22 = vld [vmem:[%s12790_s20 + $0x448] sm:$0xf0]  ;;  %v5781_v30 = vor.u32 %v8077_v20, %v5780_v18  ;;  %v8014_v36 = vld [vmem:[%s12790_s20 + $0x90] sm:$0xf0] }
  0x8c   :  { %3104 = vmatpush.bf16.msrb.mxu2 %v6813_v41  ;;  %v6228_v23 = vld [vmem:[%s12790_s20 + $0x5f0] sm:$0xf]  ;;  %v8189_v24 = vld [vmem:[%s12790_s20 + $0x608] sm:$0xf0]  ;;  %v6005_v33 = vor.u32 %v8133_v22, %v6004_v21  ;;  %v5752_v37 = vld [vmem:[%s12790_s20 + $0x238] sm:$0xf] }
  0x8d   :  { %3117 = vmatpush.bf16.msrb.mxu3 %v7037_v44  ;;  %3079 = vmatmul.bf16.vlgmr.msrb.gmra.mxu0 %v9247_v31  ;;  %v5808_v31 = vld [vmem:[%s12790_s20 + $0x2a8] sm:$0xf]  ;;  %v6229_v39 = vor.u32 %v8189_v24, %v6228_v23  ;;  %v8070_v40 = vld [vmem:[%s12790_s20 + $0x250] sm:$0xf0]  ;;  %v5976_v41 = vld [vmem:[%s12790_s20 + $0x3f8] sm:$0xf] }
  0x8e   :  { %3123 = vmatpush.bf16.msra.mxu0 %v5669_v45  ;;  %3092 = vmatmul.bf16.vlgmr.msrb.gmra.mxu1 %v9257_v38  ;;  %v8084_v38 = vld [vmem:[%s12790_s20 + $0x2c0] sm:$0xf0]  ;;  %v8126_v42 = vld [vmem:[%s12790_s20 + $0x410] sm:$0xf0]  ;;  %v6200_v43 = vld [vmem:[%s12790_s20 + $0x5b8] sm:$0xf]  ;;  %v5529_v45 = vor.u32 %v8014_v36, %v5528_v35 }
  0x8f   :  { %3136 = vmatpush.bf16.msra.mxu1 %v5893_v46  ;;  %3105 = vmatmul.bf16.vlgmr.msrb.gmra.mxu2 %v9242_v25  ;;  %v8203_v25 = vld [vmem:[%s12790_s20 + $0x678] sm:$0xf0]  ;;  %v5809_v14 = vor.u32 %v8084_v38, %v5808_v31  ;;  %v8182_v44 = vld [vmem:[%s12790_s20 + $0x5d0] sm:$0xf0]  ;;  %v5753_v46 = vor.u32 %v8070_v40, %v5752_v37  ;;  %v5500_v48 = vld [vmem:[%s12790_s20 + $0x40] sm:$0xf] }
  0x90   :  { %3149 = vmatpush.bf16.msra.mxu2 %v6117_v47  ;;  %3118 = vmatmul.bf16.vlgmr.msrb.gmra.mxu3 %v9249_v32  ;;  %v6285_v32 = vor.u32 %v8203_v25, %v6284_v3  ;;  %v5977_v47 = vor.u32 %v8126_v42, %v5976_v41  ;;  %v8007_v49 = vld [vmem:[%s12790_s20 + $0x58] sm:$0xf0]  ;;  %v5724_v50 = vld [vmem:[%s12790_s20 + $0x200] sm:$0xf]  ;;  %v5696_v62 = vld [vmem:[%s12790_s20 + $0x1c8] sm:$0xf] }
  0x91   :  { %3162 = vmatpush.bf16.msra.mxu3 %v6341_v51  ;;  %v6201_v51 = vor.u32 %v8182_v44, %v6200_v43  ;;  %v8063_v52 = vld [vmem:[%s12790_s20 + $0x218] sm:$0xf0]  ;;  %v5948_v53 = vld [vmem:[%s12790_s20 + $0x3c0] sm:$0xf]  ;;  %v5920_v0 = vld [vmem:[%s12790_s20 + $0x388] sm:$0xf] }
  0x92   :  { %3124 = vmatpush.bf16.msra.mxu0 %v5641_v57  ;;  %v8119_v54 = vld [vmem:[%s12790_s20 + $0x3d8] sm:$0xf0]  ;;  %v6172_v55 = vld [vmem:[%s12790_s20 + $0x580] sm:$0xf]  ;;  %v5501_v57 = vor.u32 %v8007_v49, %v5500_v48  ;;  %v5725_v60 = vor.u32 %v8063_v52, %v5724_v50  ;;  %v8112_v2 = vld [vmem:[%s12790_s20 + $0x3a0] sm:$0xf0] }
  0x93   :  { %3137 = vmatpush.bf16.msra.mxu1 %v5865_v58  ;;  %v8175_v56 = vld [vmem:[%s12790_s20 + $0x598] sm:$0xf0]  ;;  %v5472_v58 = vld [vmem:[%s12790_s20 + $0x8] sm:$0xf]  ;;  %v5949_v61 = vor.u32 %v8119_v54, %v5948_v53  ;;  %v8168_v25 = vld [vmem:[%s12790_s20 + $0x560] sm:$0xf0]  ;;  %v5921_v9 = vor.u32 %v8112_v2, %v5920_v0 }
  0x94   :  { %3150 = vmatpush.bf16.msra.mxu2 %v6089_v59  ;;  %v8000_v59 = vld [vmem:[%s12790_s20 + $0x20] sm:$0xf0]  ;;  %v6173_v1 = vor.u32 %v8175_v56, %v6172_v55  ;;  %v6144_v3 = vld [vmem:[%s12790_s20 + $0x548] sm:$0xf]  ;;  %v8329_v8 = vld [vmem:[%s12790_s20 + $0xa68] sm:$0xf0] }
  0x95   :  { %3163 = vmatpush.bf16.msra.mxu3 %v6313_v63  ;;  %v8056_v63 = vld [vmem:[%s12790_s20 + $0x1e0] sm:$0xf0]  ;;  %v5473_v7 = vor.u32 %v8000_v59, %v5472_v58  ;;  %v7012_v31 = vld [vmem:[%s12790_s20 + $0xc10] sm:$0xf]  ;;  %v8441_v11 = vld [vmem:[%s12790_s20 + $0xde8] sm:$0xf0]  ;;  %v6145_v12 = vor.u32 %v8168_v25, %v6144_v3 }
  0x96   :  { %3125 = vmatpush.bf16.msra.mxu0 %v5613_v4  ;;  %v6564_v4 = vld [vmem:[%s12790_s20 + $0x890] sm:$0xf]  ;;  %v5697_v38 = vor.u32 %v8056_v63, %v5696_v62  ;;  %v6536_v16 = vld [vmem:[%s12790_s20 + $0x858] sm:$0xf]  ;;  %v8266_v17 = vld [vmem:[%s12790_s20 + $0x870] sm:$0xf0] }
  0x97   :  { %3138 = vmatpush.bf16.msra.mxu1 %v5837_v5  ;;  %v8273_v5 = vld [vmem:[%s12790_s20 + $0x8a8] sm:$0xf0]  ;;  %v7236_v10 = vld [vmem:[%s12790_s20 + $0xdd0] sm:$0xf]  ;;  %v6760_v18 = vld [vmem:[%s12790_s20 + $0xa18] sm:$0xf] }
  0x98   :  { %3151 = vmatpush.bf16.msra.mxu2 %v6061_v6  ;;  %v6788_v6 = vld [vmem:[%s12790_s20 + $0xa50] sm:$0xf]  ;;  %v8322_v20 = vld [vmem:[%s12790_s20 + $0xa30] sm:$0xf0]  ;;  %v6984_v21 = vld [vmem:[%s12790_s20 + $0xbd8] sm:$0xf] }
  0x99   :  { %3164 = vmatpush.bf16.msra.mxu3 %v6285_v32  ;;  %v8385_v32 = vld [vmem:[%s12790_s20 + $0xc28] sm:$0xf0]  ;;  %v8378_v22 = vld [vmem:[%s12790_s20 + $0xbf0] sm:$0xf0]  ;;  %v7208_v23 = vld [vmem:[%s12790_s20 + $0xd98] sm:$0xf] }
  0x9a   :  { %3126 = vmatpush.bf16.msra.mxu0 %v5585_v13  ;;  %v6565_v13 = vor.u32 %v8273_v5, %v6564_v4  ;;  %v8434_v24 = vld [vmem:[%s12790_s20 + $0xdb0] sm:$0xf0]  ;;  %v6508_v35 = vld [vmem:[%s12790_s20 + $0x820] sm:$0xf]  ;;  %v8259_v36 = vld [vmem:[%s12790_s20 + $0x838] sm:$0xf0] }
  0x9b   :  { %3139 = vmatpush.bf16.msra.mxu1 %v5809_v14  ;;  %v6789_v14 = vor.u32 %v8329_v8, %v6788_v6  ;;  %v6732_v37 = vld [vmem:[%s12790_s20 + $0x9e0] sm:$0xf]  ;;  %v8315_v40 = vld [vmem:[%s12790_s20 + $0x9f8] sm:$0xf0]  ;;  %v8252_v48 = vld [vmem:[%s12790_s20 + $0x800] sm:$0xf0] }
  0x9c   :  { %3152 = vmatpush.bf16.msra.mxu2 %v6033_v15  ;;  %v7013_v15 = vor.u32 %v8385_v32, %v7012_v31  ;;  %v6956_v41 = vld [vmem:[%s12790_s20 + $0xba0] sm:$0xf]  ;;  %v8371_v42 = vld [vmem:[%s12790_s20 + $0xbb8] sm:$0xf0]  ;;  %v6928_v49 = vld [vmem:[%s12790_s20 + $0xb68] sm:$0xf] }
  0x9d   :  { %3165 = vmatpush.bf16.msra.mxu3 %v6257_v19  ;;  %v7237_v19 = vor.u32 %v8441_v11, %v7236_v10  ;;  %v7180_v43 = vld [vmem:[%s12790_s20 + $0xd60] sm:$0xf]  ;;  %v8427_v44 = vld [vmem:[%s12790_s20 + $0xd78] sm:$0xf0]  ;;  %v8364_v50 = vld [vmem:[%s12790_s20 + $0xb80] sm:$0xf0] }
  0x9e   :  { %3127 = vmatpush.bf16.msra.mxu0 %v5557_v26  ;;  %v6537_v26 = vor.u32 %v8266_v17, %v6536_v16  ;;  %v8420_v52 = vld [vmem:[%s12790_s20 + $0xd40] sm:$0xf0]  ;;  %v6929_v55 = vor.u32 %v8364_v50, %v6928_v49  ;;  %v6452_v56 = vld [vmem:[%s12790_s20 + $0x7b0] sm:$0xf]  ;;  %v8357_v62 = vld [vmem:[%s12790_s20 + $0xb48] sm:$0xf0] }
  0x9f   :  { %3140 = vmatpush.bf16.msra.mxu1 %v5781_v30  ;;  %v6761_v30 = vor.u32 %v8322_v20, %v6760_v18  ;;  %v6676_v58 = vld [vmem:[%s12790_s20 + $0x970] sm:$0xf]  ;;  %v8413_v0 = vld [vmem:[%s12790_s20 + $0xd08] sm:$0xf0]  ;;  %v6424_v2 = vld [vmem:[%s12790_s20 + $0x778] sm:$0xf] }
  0xa0   :  { %3153 = vmatpush.bf16.msra.mxu2 %v6005_v33  ;;  %v6985_v33 = vor.u32 %v8378_v22, %v6984_v21  ;;  %v7124_v63 = vld [vmem:[%s12790_s20 + $0xcf0] sm:$0xf]  ;;  %v8238_v4 = vld [vmem:[%s12790_s20 + $0x790] sm:$0xf0]  ;;  %v6648_v5 = vld [vmem:[%s12790_s20 + $0x938] sm:$0xf] }
  0xa1   :  { %3166 = vmatpush.bf16.msra.mxu3 %v6229_v39  ;;  %v7209_v39 = vor.u32 %v8434_v24, %v7208_v23  ;;  %v8294_v6 = vld [vmem:[%s12790_s20 + $0x950] sm:$0xf0]  ;;  %v6872_v8 = vld [vmem:[%s12790_s20 + $0xaf8] sm:$0xf]  ;;  %s12792_s3 = sld [smem:[#allocation8_spill]]  ;;  %v6425_v10 = vor.u32 %v8238_v4, %v6424_v2  ;;  %vm4645_vm0 = vcmask 130048  }
  0xa2   :  { %3128 = vmatpush.bf16.msra.mxu0 %v5529_v45  ;;  %v6509_v45 = vor.u32 %v8259_v36, %v6508_v35  ;;  %v8350_v31 = vld [vmem:[%s12790_s20 + $0xb10] sm:$0xf0]  ;;  %v6396_v11 = vld [vmem:[%s12790_s20 + $0x740] sm:$0xf]  ;;  %v8287_v18 = vld [vmem:[%s12790_s20 + $0x918] sm:$0xf0] }
  0xa3   :  { %3141 = vmatpush.bf16.msra.mxu1 %v5753_v46  ;;  %v6733_v46 = vor.u32 %v8315_v40, %v6732_v37  ;;  %v8343_v20 = vld [vmem:[%s12790_s20 + $0xad8] sm:$0xf0]  ;;  %v7068_v21 = vld [vmem:[%s12790_s20 + $0xc80] sm:$0xf]  ;;  %v6368_v24 = vld [vmem:[%s12790_s20 + $0x708] sm:$0xf] }
  0xa4   :  { %3154 = vmatpush.bf16.msra.mxu2 %v5977_v47  ;;  %v6480_v47 = vld [vmem:[%s12790_s20 + $0x7e8] sm:$0xf]  ;;  %v8399_v22 = vld [vmem:[%s12790_s20 + $0xc98] sm:$0xf0]  ;;  %v8280_v37 = vld [vmem:[%s12790_s20 + $0x8e0] sm:$0xf0] }
  0xa5   :  { %3167 = vmatpush.bf16.msra.mxu3 %v6201_v51  ;;  %v7152_v51 = vld [vmem:[%s12790_s20 + $0xd28] sm:$0xf]  ;;  %v6481_v53 = vor.u32 %v8252_v48, %v6480_v47  ;;  %v8102_v47 = vld [vmem:[%s12790_s20 + $0x354] sm:$0xf]  ;;  %v6118_v49 = vld [vmem:[%s12790_s20 + $0x52c] sm:$0xf0] }
  0xa6   :  { %3129 = vmatpush.bf16.msra.mxu0 %v5501_v57  ;;  %v8245_v57 = vld [vmem:[%s12790_s20 + $0x7c8] sm:$0xf0]  ;;  %v7153_v59 = vor.u32 %v8420_v52, %v7152_v51  ;;  %v6592_v36 = vld [vmem:[%s12790_s20 + $0x8c8] sm:$0xf]  ;;  %v8214_v52 = vld [vmem:[%s12790_s20 + $0x6d4] sm:$0xf] }
  0xa7   :  { %3142 = vmatpush.bf16.msra.mxu1 %v5725_v60  ;;  %v8301_v60 = vld [vmem:[%s12790_s20 + $0x988] sm:$0xf0]  ;;  %v9935_v32 = vld [vmem:[%s12792_s3] sm:$0x7f]  ;;  %v6593_v50 = vor.u32 %v8280_v37, %v6592_v36  ;;  %v8151_v2 = vld [vmem:[%s12790_s20 + $0x4dc] sm:$0xf] }
  0xa8   :  { %3155 = vmatpush.bf16.msra.mxu2 %v5949_v61  ;;  %v6900_v61 = vld [vmem:[%s12790_s20 + $0xb30] sm:$0xf]  ;;  %v6677_v3 = vor.u32 %v8301_v60, %v6676_v58  ;;  %v579_v16 = vperm.slane %v9935_v32, 0  ;;  %v8081_v36 = vld [vmem:[%s12790_s20 + $0x2ac] sm:$0xf]  ;;  %vm5076_vm1 = vcmask 261120  }
  0xa9   :  { %3168 = vmatpush.bf16.msra.mxu3 %v6173_v1  ;;  %v6453_v1 = vor.u32 %v8245_v57, %v6452_v56  ;;  %v6901_v25 = vor.u32 %v8357_v62, %v6900_v61  ;;  %v8039_v61 = vld [vmem:[%s12790_s20 + $0x15c] sm:$0xf]  ;;  %v5642_v62 = vld [vmem:[%s12790_s20 + $0x174] sm:$0xf0]  ;;  %vm5177_vm2 = vcmask 1043456   ;;  %s12793_s28 = sld [smem:[#allocation5_spill]] }
  0xaa   :  { %3130 = vmatpush.bf16.msra.mxu0 %v5473_v7  ;;  %v7125_v7 = vor.u32 %v8413_v0, %v7124_v63  ;;  %v8095_v63 = vld [vmem:[%s12790_s20 + $0x31c] sm:$0xf]  ;;  %vm5173_vm3 = vcmask 64512   ;;  %vm5156_vm4 = vcmask 523264   ;;  %vm5257_vm6 = vcmask 517120  }
  0xab   :  { %3143 = vmatpush.bf16.msra.mxu1 %v5697_v38  ;;  %v7096_v38 = vld [vmem:[%s12790_s20 + $0xcb8] sm:$0xf]  ;;  %vm5432_vm7 = vcmask 25600  }
  0xac   :  { %3156 = vmatpush.bf16.msra.mxu2 %v5921_v9  ;;  %v8406_v9 = vld [vmem:[%s12790_s20 + $0xcd0] sm:$0xf0] }
  0xad   :  { %3169 = vmatpush.bf16.msra.mxu3 %v6145_v12  ;;  %3131 = vmatmul.bf16.vlgmr.msra.gmra.mxu0 %v9115_v28  ;;  %v6704_v28 = vld [vmem:[%s12790_s20 + $0x9a8] sm:$0xf]  ;;  %v6649_v12 = vor.u32 %v8294_v6, %v6648_v5  ;;  %v7097_v17 = vor.u32 %v8406_v9, %v7096_v38  ;;  %v8207_v5 = vld [vmem:[%s12790_s20 + $0x69c] sm:$0xf]  ;;  %v6314_v6 = vld [vmem:[%s12790_s20 + $0x6b4] sm:$0xf0] }
  0xae   :  { %3175 = vmatpush.bf16.msrb.mxu0 %v6565_v13  ;;  %3144 = vmatmul.bf16.vlgmr.msra.gmra.mxu1 %v9125_v34  ;;  %v8308_v34 = vld [vmem:[%s12790_s20 + $0x9c0] sm:$0xf0]  ;;  %v6873_v13 = vor.u32 %v8350_v31, %v6872_v8  ;;  %v5645_v8 = vor.u32 %v8039_v61, %v5642_v62  ;;  %v8067_v61 = vld [vmem:[%s12790_s20 + $0x23c] sm:$0xf] }
  0xaf   :  { %3188 = vmatpush.bf16.msrb.mxu1 %v6789_v14  ;;  %3157 = vmatmul.bf16.vlgmr.msra.gmra.mxu2 %v9113_v27  ;;  %v6957_v27 = vor.u32 %v8371_v42, %v6956_v41  ;;  %v6705_v54 = vor.u32 %v8308_v34, %v6704_v28  ;;  %v8231_v14 = vld [vmem:[%s12790_s20 + $0x758] sm:$0xf0]  ;;  %v7069_v42 = vor.u32 %v8399_v22, %v7068_v21  ;;  %v8158_v34 = vld [vmem:[%s12790_s20 + $0x514] sm:$0xf]  ;;  %v8032_v9 = vld [vmem:[%s12790_s20 + $0x124] sm:$0xf] }
  0xb0   :  { %3201 = vmatpush.bf16.msrb.mxu2 %v7013_v15  ;;  %3170 = vmatmul.bf16.vlgmr.msra.gmra.mxu3 %v9117_v29  ;;  %v7181_v29 = vor.u32 %v8427_v44, %v7180_v43  ;;  %v6620_v15 = vld [vmem:[%s12790_s20 + $0x900] sm:$0xf]  ;;  %v6397_v23 = vor.u32 %v8231_v14, %v6396_v11  ;;  %v8336_v43 = vld [vmem:[%s12790_s20 + $0xaa0] sm:$0xf0]  ;;  %v7040_v44 = vld [vmem:[%s12790_s20 + $0xc48] sm:$0xf]  ;;  %v6121_v60 = vor.u32 %v8158_v34, %v6118_v49 }
  0xb1   :  { %3214 = vmatpush.bf16.msrb.mxu3 %v7237_v19  ;;  %v6844_v19 = vld [vmem:[%s12790_s20 + $0xac0] sm:$0xf]  ;;  %v2937_v41 = vpop.f32.mrf.mxu1  ;;  %v8088_v11 = vld [vmem:[%s12790_s20 + $0x2e4] sm:$0xf] }
  0xb2   :  { %3176 = vmatpush.bf16.msrb.mxu0 %v6537_v26  ;;  %v8224_v26 = vld [vmem:[%s12790_s20 + $0x720] sm:$0xf0]  ;;  %v6845_v35 = vor.u32 %v8343_v20, %v6844_v19  ;;  %v5838_v14 = vld [vmem:[%s12790_s20 + $0x2fc] sm:$0xf0] }
  0xb3   :  { %3189 = vmatpush.bf16.msrb.mxu1 %v6761_v30  ;;  %v2924_v30 = vpop.f32.mrf.mxu0  ;;  %v6369_v28 = vor.u32 %v8224_v26, %v6368_v24  ;;  %v10067_v19 = vld [vmem:[#allocation1 + $0x24] sm:$0xff]  ;;  %v5841_v26 = vor.u32 %v8088_v11, %v5838_v14 }
  0xb4   :  { %3202 = vmatpush.bf16.msrb.mxu2 %v6985_v33  ;;  %v6621_v33 = vor.u32 %v8287_v18, %v6620_v15  ;;  %v2925_v40 = vadd.f32 %v2924_v30, %v579_v16  ;;  %v8144_v15 = vld [vmem:[%s12790_s20 + $0x4a4] sm:$0xf]  ;;  %v6062_v16 = vld [vmem:[%s12790_s20 + $0x4bc] sm:$0xf0] }
  0xb5   :  { %3215 = vmatpush.bf16.msrb.mxu3 %v7209_v39  ;;  %v6816_v39 = vld [vmem:[%s12790_s20 + $0xa88] sm:$0xf]  ;;  %v2963_v58 = vpop.f32.mrf.mxu3  ;;  %v6286_v18 = vld [vmem:[%s12790_s20 + $0x67c] sm:$0xf0]  ;;  %v6065_v30 = vor.u32 %v8144_v15, %v6062_v16  ;;  %v8060_v11 = vld [vmem:[%s12790_s20 + $0x204] sm:$0xf] }
  0xb6   :  { %3177 = vmatpush.bf16.msrb.mxu0 %v6509_v45  ;;  %v8392_v45 = vld [vmem:[%s12790_s20 + $0xc60] sm:$0xf0]  ;;  %v2938_v48 = vadd.f32 %v2937_v41, %v2925_v40  ;;  %v6817_v51 = vor.u32 %v8336_v43, %v6816_v39  ;;  %v5810_v39 = vld [vmem:[%s12790_s20 + $0x2c4] sm:$0xf0]  ;;  %v8137_v40 = vld [vmem:[%s12790_s20 + $0x46c] sm:$0xf] }
  0xb7   :  { %3190 = vmatpush.bf16.msrb.mxu1 %v6733_v46  ;;  %v8046_v46 = vld [vmem:[%s12790_s20 + $0x194] sm:$0xf]  ;;  %v10070_v20 = vld [vmem:[#allocation1 + $0x3f] sm:$0xff]  ;;  %v6034_v41 = vld [vmem:[%s12790_s20 + $0x484] sm:$0xf0] }
  0xb8   :  { %3203 = vmatpush.bf16.msrb.mxu2 %v6957_v27  ;;  %v5670_v27 = vld [vmem:[%s12790_s20 + $0x1ac] sm:$0xf0]  ;;  %v6258_v43 = vld [vmem:[%s12790_s20 + $0x644] sm:$0xf0]  ;;  %v5726_v15 = vld [vmem:[%s12790_s20 + $0x21c] sm:$0xf0] }
  0xb9   :  { %3216 = vmatpush.bf16.msrb.mxu3 %v7181_v29  ;;  %v5894_v29 = vld [vmem:[%s12790_s20 + $0x36c] sm:$0xf0]  ;;  %v5673_v56 = vor.u32 %v8046_v46, %v5670_v27  ;;  %v5813_v46 = vor.u32 %v8081_v36, %v5810_v39  ;;  %v6037_v27 = vor.u32 %v8137_v40, %v6034_v41  ;;  %v8116_v16 = vld [vmem:[%s12790_s20 + $0x3c4] sm:$0xf]  ;;  %v5698_v36 = vld [vmem:[%s12790_s20 + $0x1e4] sm:$0xf0] }
  0xba   :  { %3178 = vmatpush.bf16.msrb.mxu0 %v6481_v53  ;;  %v6342_v53 = vld [vmem:[%s12790_s20 + $0x6ec] sm:$0xf0]  ;;  %v5922_v41 = vld [vmem:[%s12790_s20 + $0x3a4] sm:$0xf0] }
  0xbb   :  { %3191 = vmatpush.bf16.msrb.mxu1 %v6705_v54  ;;  %v2950_v54 = vpop.f32.mrf.mxu2  ;;  %v6345_v0 = vor.u32 %v8214_v52, %v6342_v53  ;;  %v2926_v4 = vpop.f32.mrf.mxu0  ;;  %v6006_v52 = vld [vmem:[%s12790_s20 + $0x44c] sm:$0xf0]  ;;  %v8186_v53 = vld [vmem:[%s12790_s20 + $0x5f4] sm:$0xf] }
  0xbc   :  { %3204 = vmatpush.bf16.msrb.mxu2 %v6929_v55  ;;  %v7041_v55 = vor.u32 %v8392_v45, %v7040_v44  ;;  %v2951_v57 = vadd.f32 %v2950_v54, %v2938_v48  ;;  %v5558_v48 = vld [vmem:[%s12790_s20 + $0xcc] sm:$0xf0]  ;;  %v8179_v4 = vld [vmem:[%s12790_s20 + $0x5bc] sm:$0xf] }
  0xbd   :  { %3217 = vmatpush.bf16.msrb.mxu3 %v7153_v59  ;;  %v5897_v59 = vor.u32 %v8102_v47, %v5894_v29  ;;  %v2965_v24 = vpop.f32.mrf.mxu3  ;;  %v8018_v47 = vld [vmem:[%s12790_s20 + $0xb4] sm:$0xf]  ;;  %v6230_v54 = vld [vmem:[%s12790_s20 + $0x60c] sm:$0xf0] }
  0xbe   :  { %3179 = vmatpush.bf16.msrb.mxu0 %v6453_v1  ;;  %v5866_v1 = vld [vmem:[%s12790_s20 + $0x334] sm:$0xf0]  ;;  %v7997_v24 = vld [vmem:[%s12790_s20 + $0xc] sm:$0xf] }
  0xbf   :  { %3192 = vmatpush.bf16.msrb.mxu1 %v6677_v3  ;;  %v6090_v3 = vld [vmem:[%s12790_s20 + $0x4f4] sm:$0xf0]  ;;  %v5869_v31 = vor.u32 %v8095_v63, %v5866_v1  ;;  %v6233_v63 = vor.u32 %v8186_v53, %v6230_v54  ;;  %v8123_v1 = vld [vmem:[%s12790_s20 + $0x3fc] sm:$0xf] }
  0xc0   :  { %3205 = vmatpush.bf16.msrb.mxu2 %v6901_v25  ;;  %v2964_v25 = vadd.f32 %v2963_v58, %v2951_v57  ;;  %v6093_v38 = vor.u32 %v8151_v2, %v6090_v3  ;;  %v5978_v2 = vld [vmem:[%s12790_s20 + $0x414] sm:$0xf0] }
  0xc1   :  { %3218 = vmatpush.bf16.msrb.mxu3 %v7125_v7  ;;  %v2939_v7 = vpop.f32.mrf.mxu1 }
  0xc2   :  { %3180 = vmatpush.bf16.msrb.mxu0 %v6425_v10  ;;  %v5614_v10 = vld [vmem:[%s12790_s20 + $0x13c] sm:$0xf0] }
  0xc3   :  { %3193 = vmatpush.bf16.msrb.mxu1 %v6649_v12  ;;  %v6317_v12 = vor.u32 %v8207_v5, %v6314_v6  ;;  %v2952_v21 = vpop.f32.mrf.mxu2  ;;  %v5617_v22 = vor.u32 %v8032_v9, %v5614_v10  ;;  %v6202_v5 = vld [vmem:[%s12790_s20 + $0x5d4] sm:$0xf0]  ;;  %v8004_v9 = vld [vmem:[%s12790_s20 + $0x44] sm:$0xf]  ;;  %v5502_v10 = vld [vmem:[%s12790_s20 + $0x5c] sm:$0xf0] }
  0xc4   :  { %3206 = vmatpush.bf16.msrb.mxu2 %v6873_v13  ;;  %v10049_v13 = vld [vmem:[#allocation1 + $0x36] sm:$0xff]  ;;  %v6205_v14 = vor.u32 %v8179_v4, %v6202_v5  ;;  %v6174_v21 = vld [vmem:[%s12790_s20 + $0x59c] sm:$0xf0]  ;;  %v8312_v5 = vld [vmem:[%s12790_s20 + $0x9e4] sm:$0xf] }
  0xc5   :  { %3219 = vmatpush.bf16.msrb.mxu3 %v7097_v17  ;;  %v8200_v17 = vld [vmem:[%s12790_s20 + $0x664] sm:$0xf]  ;;  %v6510_v4 = vld [vmem:[%s12790_s20 + $0x83c] sm:$0xf0] }
  0xc6   :  { %3181 = vmatpush.bf16.msrb.mxu0 %v6397_v23  ;;  %v10073_v23 = vld [vmem:[#allocation1 + $0x2d] sm:$0xff]  ;;  %v6289_v37 = vor.u32 %v8200_v17, %v6286_v18  ;;  %v5950_v17 = vld [vmem:[%s12790_s20 + $0x3dc] sm:$0xf0]  ;;  %v8172_v18 = vld [vmem:[%s12790_s20 + $0x584] sm:$0xf] }
  0xc7   :  { %3194 = vmatpush.bf16.msrb.mxu1 %v6621_v33  ;;  %v8025_v33 = vld [vmem:[%s12790_s20 + $0xec] sm:$0xf]  ;;  %v6177_v40 = vor.u32 %v8172_v18, %v6174_v21 }
  0xc8   :  { %3207 = vmatpush.bf16.msrb.mxu2 %v6845_v35  ;;  %v5586_v35 = vld [vmem:[%s12790_s20 + $0x104] sm:$0xf0] }
  0xc9   :  { %3220 = vmatpush.bf16.msrb.mxu3 %v7069_v42  ;;  %v8193_v42 = vld [vmem:[%s12790_s20 + $0x62c] sm:$0xf]  ;;  %v5589_v44 = vor.u32 %v8025_v33, %v5586_v35  ;;  %v5953_v33 = vor.u32 %v8116_v16, %v5950_v17 }
  0xca   :  { %3182 = vmatpush.bf16.msrb.mxu0 %v6369_v28  ;;  %v2976_v45 = vpop.f32.mrf.mxu0  ;;  %v8074_v28 = vld [vmem:[%s12790_s20 + $0x274] sm:$0xf]  ;;  %v6261_v49 = vor.u32 %v8193_v42, %v6258_v43  ;;  %v8053_v35 = vld [vmem:[%s12790_s20 + $0x1cc] sm:$0xf]  ;;  %v6146_v43 = vld [vmem:[%s12790_s20 + $0x564] sm:$0xf0] }
  0xcb   :  { %3195 = vmatpush.bf16.msrb.mxu1 %v6593_v50  ;;  %v2977_v29 = vadd.f32 %v2976_v45, %v2964_v25  ;;  %v2989_v34 = vpop.f32.mrf.mxu1  ;;  %v5782_v50 = vld [vmem:[%s12790_s20 + $0x28c] sm:$0xf0]  ;;  %v8165_v42 = vld [vmem:[%s12790_s20 + $0x54c] sm:$0xf]  ;;  %v8270_v45 = vld [vmem:[%s12790_s20 + $0x894] sm:$0xf] }
  0xcc   :  { %3208 = vmatpush.bf16.msrb.mxu2 %v6817_v51  ;;  %v8130_v51 = vld [vmem:[%s12790_s20 + $0x434] sm:$0xf]  ;;  %v5785_v57 = vor.u32 %v8074_v28, %v5782_v50  ;;  %v8249_v16 = vld [vmem:[%s12790_s20 + $0x7ec] sm:$0xf] }
  0xcd   :  { %3221 = vmatpush.bf16.msrb.mxu3 %v7041_v55  ;;  %3183 = vmatmul.bf16.vlgmr.msrb.gmra.mxu0 %v10067_v19  ;;  %v2990_v55 = vadd.f32 %v2989_v34, %v2977_v29  ;;  %v6009_v58 = vor.u32 %v8130_v51, %v6006_v52  ;;  %v8382_v28 = vld [vmem:[%s12790_s20 + $0xc14] sm:$0xf]  ;;  %v7014_v29 = vld [vmem:[%s12790_s20 + $0xc2c] sm:$0xf0]  ;;  %v5701_v34 = vor.u32 %v8053_v35, %v5698_v36  ;;  %v8361_v35 = vld [vmem:[%s12790_s20 + $0xb6c] sm:$0xf] }
  0xce   :  { %3227 = vmatpush.bf16.msra.mxu0 %v5673_v56  ;;  %3196 = vmatmul.bf16.vlgmr.msrb.gmra.mxu1 %v10073_v23  ;;  %v5561_v56 = vor.u32 %v8018_v47, %v5558_v48  ;;  %v6790_v48 = vld [vmem:[%s12790_s20 + $0xa6c] sm:$0xf0]  ;;  %v8438_v50 = vld [vmem:[%s12790_s20 + $0xdd4] sm:$0xf]  ;;  %v6149_v52 = vor.u32 %v8165_v42, %v6146_v43  ;;  %v6930_v36 = vld [vmem:[%s12790_s20 + $0xb84] sm:$0xf0] }
  0xcf   :  { %3240 = vmatpush.bf16.msra.mxu1 %v5897_v59  ;;  %3209 = vmatmul.bf16.vlgmr.msrb.gmra.mxu2 %v10049_v13  ;;  %v8011_v59 = vld [vmem:[%s12790_s20 + $0x7c] sm:$0xf]  ;;  %v7238_v51 = vld [vmem:[%s12790_s20 + $0xdec] sm:$0xf0]  ;;  %v6933_v42 = vor.u32 %v8361_v35, %v6930_v36  ;;  %v8242_v43 = vld [vmem:[%s12790_s20 + $0x7b4] sm:$0xf] }
  0xd0   :  { %3253 = vmatpush.bf16.msra.mxu2 %v6121_v60  ;;  %3222 = vmatmul.bf16.vlgmr.msrb.gmra.mxu3 %v10070_v20  ;;  %v5530_v60 = vld [vmem:[%s12790_s20 + $0x94] sm:$0xf0]  ;;  %v10282_v17 = vld [vmem:[#allocation1 + $0x9] sm:$0xff] }
  0xd1   :  { %3266 = vmatpush.bf16.msra.mxu3 %v6345_v0  ;;  %v5754_v0 = vld [vmem:[%s12790_s20 + $0x254] sm:$0xf0]  ;;  %v5533_v6 = vor.u32 %v8011_v59, %v5530_v60  ;;  %v7241_v59 = vor.u32 %v8438_v50, %v7238_v51  ;;  %v8277_v35 = vld [vmem:[%s12790_s20 + $0x8cc] sm:$0xf]  ;;  %v6594_v36 = vld [vmem:[%s12790_s20 + $0x8e4] sm:$0xf0] }
  0xd2   :  { %3228 = vmatpush.bf16.msra.mxu0 %v5645_v8  ;;  %v3002_v62 = vpop.f32.mrf.mxu2  ;;  %v2978_v8 = vpop.f32.mrf.mxu0  ;;  %v6762_v60 = vld [vmem:[%s12790_s20 + $0xa34] sm:$0xf0] }
  0xd3   :  { %3241 = vmatpush.bf16.msra.mxu1 %v5869_v31  ;;  %v3003_v3 = vadd.f32 %v3002_v62, %v2990_v55  ;;  %v3015_v25 = vpop.f32.mrf.mxu3  ;;  %v5757_v31 = vor.u32 %v8067_v61, %v5754_v0  ;;  %v7017_v55 = vor.u32 %v8382_v28, %v7014_v29  ;;  %v8375_v61 = vld [vmem:[%s12790_s20 + $0xbdc] sm:$0xf]  ;;  %v6986_v62 = vld [vmem:[%s12790_s20 + $0xbf4] sm:$0xf0]  ;;  %v6734_v8 = vld [vmem:[%s12790_s20 + $0x9fc] sm:$0xf0] }
  0xd4   :  { %3254 = vmatpush.bf16.msra.mxu2 %v6093_v38  ;;  %v5981_v38 = vor.u32 %v8123_v1, %v5978_v2  ;;  %v7210_v0 = vld [vmem:[%s12790_s20 + $0xdb4] sm:$0xf0]  ;;  %v6737_v18 = vor.u32 %v8312_v5, %v6734_v8  ;;  %v8354_v28 = vld [vmem:[%s12790_s20 + $0xb34] sm:$0xf]  ;;  %v6902_v29 = vld [vmem:[%s12790_s20 + $0xb4c] sm:$0xf0] }
  0xd5   :  { %3267 = vmatpush.bf16.msra.mxu3 %v6317_v12  ;;  %v10148_v7 = vadd.f32 %v3015_v25, %v3003_v3  ;;  %v2991_v12 = vpop.f32.mrf.mxu1  ;;  %v6989_v3 = vor.u32 %v8375_v61, %v6986_v62  ;;  %v8256_v25 = vld [vmem:[%s12790_s20 + $0x824] sm:$0xf]  ;;  %v6874_v61 = vld [vmem:[%s12790_s20 + $0xb14] sm:$0xf0]  ;;  %v6398_v8 = vld [vmem:[%s12790_s20 + $0x75c] sm:$0xf0] }
  0xd6   :  { %3229 = vmatpush.bf16.msra.mxu0 %v5617_v22  ;;  %v5505_v22 = vor.u32 %v8004_v9, %v5502_v10  ;;  %v10264_v9 = vld [vmem:[#allocation1 + $0x12] sm:$0xff]  ;;  %v8424_v10 = vld [vmem:[%s12790_s20 + $0xd64] sm:$0xf] }
  0xd7   :  { %3242 = vmatpush.bf16.msra.mxu1 %v5841_v26  ;;  %v5474_v26 = vld [vmem:[%s12790_s20 + $0x24] sm:$0xf0]  ;;  %v10273_v12 = vld [vmem:[#allocation1] sm:$0xff] }
  0xd8   :  { %3255 = vmatpush.bf16.msra.mxu2 %v6065_v30  ;;  %v5729_v30 = vor.u32 %v8060_v11, %v5726_v15  ;;  %v5477_v47 = vor.u32 %v7997_v24, %v5474_v26  ;;  %v7182_v11 = vld [vmem:[%s12790_s20 + $0xd7c] sm:$0xf0]  ;;  %v6513_v15 = vor.u32 %v8256_v25, %v6510_v4  ;;  %v8305_v24 = vld [vmem:[%s12790_s20 + $0x9ac] sm:$0xf]  ;;  %v580_v26 = vperm.slane %v9935_v32, 1 }
  0xd9   :  { %3268 = vmatpush.bf16.msra.mxu3 %v6289_v37  ;;  %v8109_v37 = vld [vmem:[%s12790_s20 + $0x38c] sm:$0xf]  ;;  %v7154_v32 = vld [vmem:[%s12790_s20 + $0xd44] sm:$0xf0] }
  0xda   :  { %3230 = vmatpush.bf16.msra.mxu0 %v5589_v44  ;;  %v3004_v39 = vpop.f32.mrf.mxu2 }
  0xdb   :  { %3243 = vmatpush.bf16.msra.mxu1 %v5813_v46  ;;  %v3017_v44 = vpop.f32.mrf.mxu3  ;;  %v6566_v46 = vld [vmem:[%s12790_s20 + $0x8ac] sm:$0xf0] }
  0xdc   :  { %3256 = vmatpush.bf16.msra.mxu2 %v6037_v27  ;;  %v8326_v27 = vld [vmem:[%s12790_s20 + $0xa54] sm:$0xf]  ;;  %v6569_v53 = vor.u32 %v8270_v45, %v6566_v46  ;;  %v6454_v44 = vld [vmem:[%s12790_s20 + $0x7cc] sm:$0xf0] }
  0xdd   :  { %3269 = vmatpush.bf16.msra.mxu3 %v6261_v49  ;;  %v5925_v49 = vor.u32 %v8109_v37, %v5922_v41  ;;  %v6793_v54 = vor.u32 %v8326_v27, %v6790_v48  ;;  %v8417_v37 = vld [vmem:[%s12790_s20 + $0xd2c] sm:$0xf]  ;;  %v8298_v45 = vld [vmem:[%s12790_s20 + $0x974] sm:$0xf]  ;;  %v6678_v48 = vld [vmem:[%s12790_s20 + $0x98c] sm:$0xf0]  ;;  %v6457_v51 = vor.u32 %v8242_v43, %v6454_v44 }
  0xde   :  { %3231 = vmatpush.bf16.msra.mxu0 %v5561_v56  ;;  %v8263_v56 = vld [vmem:[%s12790_s20 + $0x85c] sm:$0xf]  ;;  %v5676_v44 = vld [vmem:[%s12790_s20 + $0x198] sm:$0xf] }
  0xdf   :  { %3244 = vmatpush.bf16.msra.mxu1 %v5785_v57  ;;  %v6538_v57 = vld [vmem:[%s12790_s20 + $0x874] sm:$0xf0] }
  0xe0   :  { %3257 = vmatpush.bf16.msra.mxu2 %v6009_v58  ;;  %v8319_v58 = vld [vmem:[%s12790_s20 + $0xa1c] sm:$0xf]  ;;  %v6541_v1 = vor.u32 %v8263_v56, %v6538_v57 }
  0xe1   :  { %3270 = vmatpush.bf16.msra.mxu3 %v6233_v63  ;;  %v8431_v63 = vld [vmem:[%s12790_s20 + $0xd9c] sm:$0xf]  ;;  %v6765_v2 = vor.u32 %v8319_v58, %v6762_v60 }
  0xe2   :  { %3232 = vmatpush.bf16.msra.mxu0 %v5533_v6  ;;  %v7213_v6 = vor.u32 %v8431_v63, %v7210_v0  ;;  %v8291_v56 = vld [vmem:[%s12790_s20 + $0x93c] sm:$0xf] }
  0xe3   :  { %3245 = vmatpush.bf16.msra.mxu1 %v5757_v31  ;;  %v8368_v31 = vld [vmem:[%s12790_s20 + $0xba4] sm:$0xf]  ;;  %v8347_v60 = vld [vmem:[%s12790_s20 + $0xafc] sm:$0xf] }
  0xe4   :  { %3258 = vmatpush.bf16.msra.mxu2 %v5981_v38  ;;  %v6958_v38 = vld [vmem:[%s12790_s20 + $0xbbc] sm:$0xf0]  ;;  %v8403_v0 = vld [vmem:[%s12790_s20 + $0xcbc] sm:$0xf]  ;;  %v6877_v5 = vor.u32 %v8347_v60, %v6874_v61 }
  0xe5   :  { %3271 = vmatpush.bf16.msra.mxu3 %v6205_v14  ;;  %v10276_v14 = vld [vmem:[#allocation1 + $0x1b] sm:$0xff]  ;;  %v6961_v21 = vor.u32 %v8368_v31, %v6958_v38  ;;  %v8284_v31 = vld [vmem:[%s12790_s20 + $0x904] sm:$0xf] }
  0xe6   :  { %3233 = vmatpush.bf16.msra.mxu0 %v5505_v22  ;;  %v6482_v22 = vld [vmem:[%s12790_s20 + $0x804] sm:$0xf0]  ;;  %v6096_v60 = vld [vmem:[%s12790_s20 + $0x4e0] sm:$0xf]  ;;  %v8155_v61 = vld [vmem:[%s12790_s20 + $0x4f8] sm:$0xf0] }
  0xe7   :  { %3246 = vmatpush.bf16.msra.mxu1 %v5729_v30  ;;  %v7185_v30 = vor.u32 %v8424_v10, %v7182_v11  ;;  %v6485_v39 = vor.u32 %v8249_v16, %v6482_v22  ;;  %v6622_v11 = vld [vmem:[%s12790_s20 + $0x91c] sm:$0xf0] }
  0xe8   :  { %3259 = vmatpush.bf16.msra.mxu2 %v5953_v33  ;;  %v6706_v33 = vld [vmem:[%s12790_s20 + $0x9c4] sm:$0xf0]  ;;  %v6846_v16 = vld [vmem:[%s12790_s20 + $0xadc] sm:$0xf0] }
  0xe9   :  { %3272 = vmatpush.bf16.msra.mxu3 %v6177_v40  ;;  %v6709_v41 = vor.u32 %v8305_v24, %v6706_v33  ;;  %v8221_v24 = vld [vmem:[%s12790_s20 + $0x70c] sm:$0xf] }
  0xea   :  { %3234 = vmatpush.bf16.msra.mxu0 %v5477_v47  ;;  %v3028_v40 = vpop.f32.mrf.mxu0  ;;  %v7157_v47 = vor.u32 %v8417_v37, %v7154_v32  ;;  %v8333_v37 = vld [vmem:[%s12790_s20 + $0xa8c] sm:$0xf] }
  0xeb   :  { %3247 = vmatpush.bf16.msra.mxu1 %v5701_v34  ;;  %v3029_v46 = vadd.f32 %v3028_v40, %v580_v26  ;;  %v8410_v34 = vld [vmem:[%s12790_s20 + $0xcf4] sm:$0xf]  ;;  %v6370_v26 = vld [vmem:[%s12790_s20 + $0x724] sm:$0xf0] }
  0xec   :  { %3260 = vmatpush.bf16.msra.mxu2 %v5925_v49  ;;  %v7126_v49 = vld [vmem:[%s12790_s20 + $0xd0c] sm:$0xf0]  ;;  %v6818_v40 = vld [vmem:[%s12790_s20 + $0xaa4] sm:$0xf0] }
  0xed   :  { %3273 = vmatpush.bf16.msra.mxu3 %v6149_v52  ;;  %3235 = vmatmul.bf16.vlgmr.msra.gmra.mxu0 %v10273_v12  ;;  %v6681_v52 = vor.u32 %v8298_v45, %v6678_v48  ;;  %v7129_v58 = vor.u32 %v8410_v34, %v7126_v49  ;;  %v8050_v45 = vld [vmem:[%s12790_s20 + $0x1b0] sm:$0xf0]  ;;  %v6124_v48 = vld [vmem:[%s12790_s20 + $0x518] sm:$0xf]  ;;  %v6821_v34 = vor.u32 %v8333_v37, %v6818_v40 }
  0xee   :  { %3279 = vmatpush.bf16.msrb.mxu0 %v6569_v53  ;;  %3248 = vmatmul.bf16.vlgmr.msra.gmra.mxu1 %v10282_v17  ;;  %v6905_v53 = vor.u32 %v8354_v28, %v6902_v29  ;;  %v8162_v28 = vld [vmem:[%s12790_s20 + $0x530] sm:$0xf0]  ;;  %v6597_v29 = vor.u32 %v8277_v35, %v6594_v36  ;;  %v6348_v49 = vld [vmem:[%s12790_s20 + $0x6d8] sm:$0xf] }
  0xef   :  { %3292 = vmatpush.bf16.msrb.mxu1 %v6793_v54  ;;  %3261 = vmatmul.bf16.vlgmr.msra.gmra.mxu2 %v10264_v9  ;;  %v3041_v27 = vpop.f32.mrf.mxu1  ;;  %v8235_v54 = vld [vmem:[%s12790_s20 + $0x77c] sm:$0xf]  ;;  %v5788_v40 = vld [vmem:[%s12790_s20 + $0x278] sm:$0xf] }
  0xf0   :  { %3305 = vmatpush.bf16.msrb.mxu2 %v7017_v55  ;;  %3274 = vmatmul.bf16.vlgmr.msra.gmra.mxu3 %v10276_v14  ;;  %v3042_v50 = vadd.f32 %v3041_v27, %v3029_v46  ;;  %v6426_v55 = vld [vmem:[%s12790_s20 + $0x794] sm:$0xf0]  ;;  %v6373_v27 = vor.u32 %v8221_v24, %v6370_v26  ;;  %v8141_v24 = vld [vmem:[%s12790_s20 + $0x488] sm:$0xf0]  ;;  %v6264_v26 = vld [vmem:[%s12790_s20 + $0x630] sm:$0xf] }
  0xf1   :  { %3318 = vmatpush.bf16.msrb.mxu3 %v7241_v59  ;;  %v6650_v59 = vld [vmem:[%s12790_s20 + $0x954] sm:$0xf0] }
  0xf2   :  { %3280 = vmatpush.bf16.msrb.mxu0 %v6541_v1  ;;  %v3054_v57 = vpop.f32.mrf.mxu2  ;;  %v7098_v1 = vld [vmem:[%s12790_s20 + $0xcd4] sm:$0xf0]  ;;  %v3030_v25 = vpop.f32.mrf.mxu0  ;;  %v6653_v4 = vor.u32 %v8291_v56, %v6650_v59  ;;  %v8043_v56 = vld [vmem:[%s12790_s20 + $0x178] sm:$0xf0] }
  0xf3   :  { %3293 = vmatpush.bf16.msrb.mxu1 %v6765_v2  ;;  %v3055_v62 = vadd.f32 %v3054_v57, %v3042_v50  ;;  %v3067_v63 = vpop.f32.mrf.mxu3  ;;  %v6429_v2 = vor.u32 %v8235_v54, %v6426_v55  ;;  %v7101_v10 = vor.u32 %v8403_v0, %v7098_v1  ;;  %v5900_v46 = vld [vmem:[%s12790_s20 + $0x358] sm:$0xf]  ;;  %v8218_v50 = vld [vmem:[%s12790_s20 + $0x6f0] sm:$0xf0]  ;;  %v6125_v54 = vor.u32 %v8162_v28, %v6124_v48  ;;  %v5648_v55 = vld [vmem:[%s12790_s20 + $0x160] sm:$0xf] }
  0xf4   :  { %3306 = vmatpush.bf16.msrb.mxu2 %v6989_v3  ;;  %v5872_v57 = vld [vmem:[%s12790_s20 + $0x320] sm:$0xf]  ;;  %v8099_v59 = vld [vmem:[%s12790_s20 + $0x338] sm:$0xf0]  ;;  %v5649_v0 = vor.u32 %v8043_v56, %v5648_v55  ;;  %v5620_v25 = vld [vmem:[%s12790_s20 + $0x128] sm:$0xf] }
  0xf5   :  { %3319 = vmatpush.bf16.msrb.mxu3 %v7213_v6  ;;  %v10355_v3 = vadd.f32 %v3067_v63, %v3055_v62  ;;  %v8228_v6 = vld [vmem:[%s12790_s20 + $0x744] sm:$0xf]  ;;  %v6320_v62 = vld [vmem:[%s12790_s20 + $0x6a0] sm:$0xf]  ;;  %v8211_v63 = vld [vmem:[%s12790_s20 + $0x6b8] sm:$0xf0]  ;;  %v5873_v1 = vor.u32 %v8099_v59, %v5872_v57 }
  0xf6   :  { %3281 = vmatpush.bf16.msrb.mxu0 %v6513_v15  ;;  %v8340_v15 = vld [vmem:[%s12790_s20 + $0xac4] sm:$0xf]  ;;  %v6401_v22 = vor.u32 %v8228_v6, %v6398_v8  ;;  %v6321_v6 = vor.u32 %v8211_v63, %v6320_v62  ;;  %v8127_v55 = vld [vmem:[%s12790_s20 + $0x418] sm:$0xf0] }
  0xf7   :  { %3294 = vmatpush.bf16.msrb.mxu1 %v6737_v18  ;;  %v3043_v38 = vpop.f32.mrf.mxu1  ;;  %v8396_v18 = vld [vmem:[%s12790_s20 + $0xc84] sm:$0xf]  ;;  %v6849_v33 = vor.u32 %v8340_v15, %v6846_v16  ;;  %v8183_v59 = vld [vmem:[%s12790_s20 + $0x5d8] sm:$0xf0] }
  0xf8   :  { %3307 = vmatpush.bf16.msrb.mxu2 %v6961_v21  ;;  %v7070_v21 = vld [vmem:[%s12790_s20 + $0xc9c] sm:$0xf0]  ;;  %v8092_v8 = vld [vmem:[%s12790_s20 + $0x300] sm:$0xf0] }
  0xf9   :  { %3320 = vmatpush.bf16.msrb.mxu3 %v7185_v30  ;;  %v6625_v30 = vor.u32 %v8284_v31, %v6622_v11  ;;  %v6068_v31 = vld [vmem:[%s12790_s20 + $0x4a8] sm:$0xf]  ;;  %v8148_v38 = vld [vmem:[%s12790_s20 + $0x4c0] sm:$0xf0] }
  0xfa   :  { %3282 = vmatpush.bf16.msrb.mxu0 %v6485_v39  ;;  %v3056_v32 = vpop.f32.mrf.mxu2  ;;  %v7073_v39 = vor.u32 %v8396_v18, %v7070_v21  ;;  %v6069_v16 = vor.u32 %v8148_v38, %v6068_v31  ;;  %v5592_v18 = vld [vmem:[%s12790_s20 + $0xf0] sm:$0xf]  ;;  %v8029_v21 = vld [vmem:[%s12790_s20 + $0x108] sm:$0xf0]  ;;  %v8120_v31 = vld [vmem:[%s12790_s20 + $0x3e0] sm:$0xf0] }
  0xfb   :  { %3295 = vmatpush.bf16.msrb.mxu1 %v6709_v41  ;;  %v8389_v41 = vld [vmem:[%s12790_s20 + $0xc4c] sm:$0xf]  ;;  %v3069_v43 = vpop.f32.mrf.mxu3  ;;  %v5564_v32 = vld [vmem:[%s12790_s20 + $0xb8] sm:$0xf]  ;;  %v6180_v38 = vld [vmem:[%s12790_s20 + $0x588] sm:$0xf] }
  0xfc   :  { %3308 = vmatpush.bf16.msrb.mxu2 %v6933_v42  ;;  %v7042_v42 = vld [vmem:[%s12790_s20 + $0xc64] sm:$0xf0] }
  0xfd   :  { %3321 = vmatpush.bf16.msrb.mxu3 %v7157_v47  ;;  %v8106_v47 = vld [vmem:[%s12790_s20 + $0x370] sm:$0xf0] }
  0xfe   :  { %3283 = vmatpush.bf16.msrb.mxu0 %v6457_v51  ;;  %v7045_v51 = vor.u32 %v8389_v41, %v7042_v42 }
  0xff   :  { %3296 = vmatpush.bf16.msrb.mxu1 %v6681_v52  ;;  %v5677_v52 = vor.u32 %v8050_v45, %v5676_v44  ;;  %v8078_v44 = vld [vmem:[%s12790_s20 + $0x290] sm:$0xf0]  ;;  %v6012_v45 = vld [vmem:[%s12790_s20 + $0x438] sm:$0xf] }
 0x100   :  { %3309 = vmatpush.bf16.msrb.mxu2 %v6905_v53  ;;  %v5901_v53 = vor.u32 %v8106_v47, %v5900_v46  ;;  %v8134_v46 = vld [vmem:[%s12790_s20 + $0x450] sm:$0xf0]  ;;  %v5789_v28 = vor.u32 %v8078_v44, %v5788_v40  ;;  %v7020_v40 = vld [vmem:[%s12790_s20 + $0xc18] sm:$0xf] }
 0x101   :  { %3322 = vmatpush.bf16.msrb.mxu3 %v7129_v58  ;;  %v6349_v58 = vor.u32 %v8218_v50, %v6348_v49  ;;  %v8015_v49 = vld [vmem:[%s12790_s20 + $0x98] sm:$0xf0]  ;;  %v5760_v50 = vld [vmem:[%s12790_s20 + $0x240] sm:$0xf]  ;;  %v7244_v44 = vld [vmem:[%s12790_s20 + $0xdd8] sm:$0xf] }
 0x102   :  { %3284 = vmatpush.bf16.msrb.mxu0 %v6429_v2  ;;  %v6097_v2 = vor.u32 %v8155_v61, %v6096_v60 }
 0x103   :  { %3297 = vmatpush.bf16.msrb.mxu1 %v6653_v4  ;;  %v8036_v4 = vld [vmem:[%s12790_s20 + $0x140] sm:$0xf0] }
 0x104   :  { %3310 = vmatpush.bf16.msrb.mxu2 %v6877_v5  ;;  %v5844_v5 = vld [vmem:[%s12790_s20 + $0x2e8] sm:$0xf]  ;;  %v5621_v11 = vor.u32 %v8036_v4, %v5620_v25 }
 0x105   :  { %3323 = vmatpush.bf16.msrb.mxu3 %v7101_v10  ;;  %v6292_v10 = vld [vmem:[%s12790_s20 + $0x668] sm:$0xf]  ;;  %v5845_v15 = vor.u32 %v8092_v8, %v5844_v5 }
 0x106   :  { %3285 = vmatpush.bf16.msrb.mxu0 %v6401_v22  ;;  %v6040_v22 = vld [vmem:[%s12790_s20 + $0x470] sm:$0xf]  ;;  %v5732_v25 = vld [vmem:[%s12790_s20 + $0x208] sm:$0xf] }
 0x107   :  { %3298 = vmatpush.bf16.msrb.mxu1 %v6625_v30  ;;  %v8197_v30 = vld [vmem:[%s12790_s20 + $0x648] sm:$0xf0]  ;;  %v6041_v37 = vor.u32 %v8141_v24, %v6040_v22  ;;  %v5956_v8 = vld [vmem:[%s12790_s20 + $0x3c8] sm:$0xf] }
 0x108   :  { %3311 = vmatpush.bf16.msrb.mxu2 %v6849_v33  ;;  %v5593_v33 = vor.u32 %v8029_v21, %v5592_v18  ;;  %v6265_v43 = vor.u32 %v8197_v30, %v6264_v26  ;;  %v5957_v18 = vor.u32 %v8120_v31, %v5956_v8  ;;  %v5704_v21 = vld [vmem:[%s12790_s20 + $0x1d0] sm:$0xf]  ;;  %v8113_v24 = vld [vmem:[%s12790_s20 + $0x3a8] sm:$0xf0] }
 0x109   :  { %3324 = vmatpush.bf16.msrb.mxu3 %v7073_v39  ;;  %v8022_v39 = vld [vmem:[%s12790_s20 + $0xd0] sm:$0xf0]  ;;  %v6152_v26 = vld [vmem:[%s12790_s20 + $0x550] sm:$0xf]  ;;  %v8169_v30 = vld [vmem:[%s12790_s20 + $0x568] sm:$0xf0] }
 0x10a   :  { %3286 = vmatpush.bf16.msrb.mxu0 %v6373_v27  ;;  %v3080_v35 = vpop.f32.mrf.mxu0  ;;  %v6236_v27 = vld [vmem:[%s12790_s20 + $0x5f8] sm:$0xf]  ;;  %v5565_v48 = vor.u32 %v8022_v39, %v5564_v32  ;;  %v8330_v39 = vld [vmem:[%s12790_s20 + $0xa70] sm:$0xf0]  ;;  %v8309_v31 = vld [vmem:[%s12790_s20 + $0x9c8] sm:$0xf0] }
 0x10b   :  { %3299 = vmatpush.bf16.msrb.mxu1 %v6597_v29  ;;  %v3081_v41 = vadd.f32 %v3080_v35, %v10355_v3  ;;  %v3093_v42 = vpop.f32.mrf.mxu1  ;;  %v8190_v3 = vld [vmem:[%s12790_s20 + $0x610] sm:$0xf0]  ;;  %v6013_v29 = vor.u32 %v8134_v46, %v6012_v45  ;;  %v6572_v35 = vld [vmem:[%s12790_s20 + $0x898] sm:$0xf]  ;;  %v6153_v46 = vor.u32 %v8169_v30, %v6152_v26 }
 0x10c   :  { %3312 = vmatpush.bf16.msrb.mxu2 %v6821_v34  ;;  %v5536_v34 = vld [vmem:[%s12790_s20 + $0x80] sm:$0xf]  ;;  %v8442_v45 = vld [vmem:[%s12790_s20 + $0xdf0] sm:$0xf0] }
 0x10d   :  { %3325 = vmatpush.bf16.msrb.mxu3 %v7045_v51  ;;  %3287 = vmatmul.bf16.vlgmr.msrb.gmra.mxu0 %v10067_v19  ;;  %v5816_v19 = vld [vmem:[%s12790_s20 + $0x2b0] sm:$0xf]  ;;  %v3094_v47 = vadd.f32 %v3093_v42, %v3081_v41  ;;  %v5537_v60 = vor.u32 %v8015_v49, %v5536_v34  ;;  %v8386_v41 = vld [vmem:[%s12790_s20 + $0xc30] sm:$0xf0]  ;;  %v7245_v34 = vor.u32 %v8442_v45, %v7244_v44  ;;  %v8323_v49 = vld [vmem:[%s12790_s20 + $0xa38] sm:$0xf0] }
 0x10e   :  { %3331 = vmatpush.bf16.msra.mxu0 %v5677_v52  ;;  %3300 = vmatmul.bf16.vlgmr.msrb.gmra.mxu1 %v10073_v23  ;;  %v8085_v23 = vld [vmem:[%s12790_s20 + $0x2c8] sm:$0xf0]  ;;  %v6237_v52 = vor.u32 %v8190_v3, %v6236_v27  ;;  %v8302_v30 = vld [vmem:[%s12790_s20 + $0x990] sm:$0xf0]  ;;  %v6656_v44 = vld [vmem:[%s12790_s20 + $0x940] sm:$0xf] }
 0x10f   :  { %3344 = vmatpush.bf16.msra.mxu1 %v5901_v53  ;;  %3313 = vmatmul.bf16.vlgmr.msrb.gmra.mxu2 %v10049_v13  ;;  %v8204_v13 = vld [vmem:[%s12790_s20 + $0x680] sm:$0xf0]  ;;  %v5817_v36 = vor.u32 %v8085_v23, %v5816_v19  ;;  %v8071_v53 = vld [vmem:[%s12790_s20 + $0x258] sm:$0xf0]  ;;  %v8057_v19 = vld [vmem:[%s12790_s20 + $0x1e8] sm:$0xf0] }
 0x110   :  { %3357 = vmatpush.bf16.msra.mxu2 %v6125_v54  ;;  %3326 = vmatmul.bf16.vlgmr.msrb.gmra.mxu3 %v10070_v20  ;;  %v6293_v20 = vor.u32 %v8204_v13, %v6292_v10  ;;  %v5984_v54 = vld [vmem:[%s12790_s20 + $0x400] sm:$0xf]  ;;  %v5761_v63 = vor.u32 %v8071_v53, %v5760_v50  ;;  %v8176_v10 = vld [vmem:[%s12790_s20 + $0x5a0] sm:$0xf0]  ;;  %v5705_v42 = vor.u32 %v8057_v19, %v5704_v21  ;;  %v8435_v53 = vld [vmem:[%s12790_s20 + $0xdb8] sm:$0xf0] }
 0x111   :  { %3370 = vmatpush.bf16.msra.mxu3 %v6349_v58  ;;  %v6208_v58 = vld [vmem:[%s12790_s20 + $0x5c0] sm:$0xf]  ;;  %v6181_v22 = vor.u32 %v8176_v10, %v6180_v38  ;;  %v6936_v38 = vld [vmem:[%s12790_s20 + $0xb70] sm:$0xf]  ;;  %v8365_v10 = vld [vmem:[%s12790_s20 + $0xb88] sm:$0xf0] }
 0x112   :  { %3332 = vmatpush.bf16.msra.mxu0 %v5649_v0  ;;  %v3106_v51 = vpop.f32.mrf.mxu2  ;;  %v3082_v62 = vpop.f32.mrf.mxu0  ;;  %v5985_v0 = vor.u32 %v8127_v55, %v5984_v54  ;;  %v6209_v5 = vor.u32 %v8183_v59, %v6208_v58  ;;  %v6992_v50 = vld [vmem:[%s12790_s20 + $0xbe0] sm:$0xf]  ;;  %v8260_v58 = vld [vmem:[%s12790_s20 + $0x840] sm:$0xf0]  ;;  %v6740_v59 = vld [vmem:[%s12790_s20 + $0x9e8] sm:$0xf]  ;;  %v6937_v21 = vor.u32 %v8365_v10, %v6936_v38 }
 0x113   :  { %3345 = vmatpush.bf16.msra.mxu1 %v5873_v1  ;;  %v3107_v56 = vadd.f32 %v3106_v51, %v3094_v47  ;;  %v3119_v57 = vpop.f32.mrf.mxu3  ;;  %v5508_v1 = vld [vmem:[%s12790_s20 + $0x48] sm:$0xf]  ;;  %v3095_v4 = vpop.f32.mrf.mxu1  ;;  %v7021_v47 = vor.u32 %v8386_v41, %v7020_v40  ;;  %v8379_v51 = vld [vmem:[%s12790_s20 + $0xbf8] sm:$0xf0]  ;;  %v8316_v62 = vld [vmem:[%s12790_s20 + $0xa00] sm:$0xf0] }
 0x114   :  { %3358 = vmatpush.bf16.msra.mxu2 %v6097_v2  ;;  %v8008_v2 = vld [vmem:[%s12790_s20 + $0x60] sm:$0xf0]  ;;  %v6488_v4 = vld [vmem:[%s12790_s20 + $0x7f0] sm:$0xf]  ;;  %v6460_v19 = vld [vmem:[%s12790_s20 + $0x7b8] sm:$0xf] }
 0x115   :  { %3371 = vmatpush.bf16.msra.mxu3 %v6321_v6  ;;  %v10554_v61 = vadd.f32 %v3119_v57, %v3107_v56  ;;  %v8064_v6 = vld [vmem:[%s12790_s20 + $0x220] sm:$0xf0]  ;;  %v5509_v13 = vor.u32 %v8008_v2, %v5508_v1  ;;  %v6993_v56 = vor.u32 %v8379_v51, %v6992_v50  ;;  %v6516_v57 = vld [vmem:[%s12790_s20 + $0x828] sm:$0xf]  ;;  %v7048_v38 = vld [vmem:[%s12790_s20 + $0xc50] sm:$0xf] }
 0x116   :  { %3333 = vmatpush.bf16.msra.mxu0 %v5621_v11  ;;  %v5480_v11 = vld [vmem:[%s12790_s20 + $0x10] sm:$0xf]  ;;  %v7188_v1 = vld [vmem:[%s12790_s20 + $0xd68] sm:$0xf]  ;;  %v8428_v2 = vld [vmem:[%s12790_s20 + $0xd80] sm:$0xf0] }
 0x117   :  { %3346 = vmatpush.bf16.msra.mxu1 %v5845_v15  ;;  %v8001_v15 = vld [vmem:[%s12790_s20 + $0x28] sm:$0xf0] }
 0x118   :  { %3359 = vmatpush.bf16.msra.mxu2 %v6069_v16  ;;  %v5733_v16 = vor.u32 %v8064_v6, %v5732_v25  ;;  %v5481_v32 = vor.u32 %v8001_v15, %v5480_v11  ;;  %v6517_v25 = vor.u32 %v8260_v58, %v6516_v57  ;;  %v8253_v6 = vld [vmem:[%s12790_s20 + $0x808] sm:$0xf0] }
 0x119   :  { %3372 = vmatpush.bf16.msra.mxu3 %v6293_v20  ;;  %v5928_v20 = vld [vmem:[%s12790_s20 + $0x390] sm:$0xf]  ;;  %v8421_v11 = vld [vmem:[%s12790_s20 + $0xd48] sm:$0xf0]  ;;  %v6489_v15 = vor.u32 %v8253_v6, %v6488_v4 }
 0x11a   :  { %3334 = vmatpush.bf16.msra.mxu0 %v5593_v33  ;;  %v3108_v23 = vpop.f32.mrf.mxu2  ;;  %v8281_v6 = vld [vmem:[%s12790_s20 + $0x8e8] sm:$0xf0] }
 0x11b   :  { %3347 = vmatpush.bf16.msra.mxu1 %v5817_v36  ;;  %v3121_v33 = vpop.f32.mrf.mxu3  ;;  %v8274_v36 = vld [vmem:[%s12790_s20 + $0x8b0] sm:$0xf0]  ;;  %v6684_v23 = vld [vmem:[%s12790_s20 + $0x978] sm:$0xf]  ;;  %v8393_v10 = vld [vmem:[%s12790_s20 + $0xc68] sm:$0xf0] }
 0x11c   :  { %3360 = vmatpush.bf16.msra.mxu2 %v6041_v37  ;;  %v6796_v37 = vld [vmem:[%s12790_s20 + $0xa58] sm:$0xf]  ;;  %v6573_v27 = vor.u32 %v8274_v36, %v6572_v35  ;;  %v8358_v35 = vld [vmem:[%s12790_s20 + $0xb50] sm:$0xf0]  ;;  %v6685_v40 = vor.u32 %v8302_v30, %v6684_v23  ;;  %v7049_v30 = vor.u32 %v8393_v10, %v7048_v38  ;;  %v8075_v10 = vld [vmem:[%s12790_s20 + $0x27c] sm:$0xf] }
 0x11d   :  { %3373 = vmatpush.bf16.msra.mxu3 %v6265_v43  ;;  %v5929_v43 = vor.u32 %v8113_v24, %v5928_v20  ;;  %v6797_v3 = vor.u32 %v8330_v39, %v6796_v37  ;;  %v8246_v20 = vld [vmem:[%s12790_s20 + $0x7d0] sm:$0xf0]  ;;  %v6908_v33 = vld [vmem:[%s12790_s20 + $0xb38] sm:$0xf] }
 0x11e   :  { %3335 = vmatpush.bf16.msra.mxu0 %v5565_v48  ;;  %v6544_v48 = vld [vmem:[%s12790_s20 + $0x860] sm:$0xf]  ;;  %v7132_v36 = vld [vmem:[%s12790_s20 + $0xcf8] sm:$0xf]  ;;  %v8414_v37 = vld [vmem:[%s12790_s20 + $0xd10] sm:$0xf0]  ;;  %v6461_v39 = vor.u32 %v8246_v20, %v6460_v19  ;;  %v6909_v41 = vor.u32 %v8358_v35, %v6908_v33 }
 0x11f   :  { %3348 = vmatpush.bf16.msra.mxu1 %v5789_v28  ;;  %v8267_v28 = vld [vmem:[%s12790_s20 + $0x878] sm:$0xf0]  ;;  %v6126_v20 = vld [vmem:[%s12790_s20 + $0x534] sm:$0xf0] }
 0x120   :  { %3361 = vmatpush.bf16.msra.mxu2 %v6013_v29  ;;  %v6768_v29 = vld [vmem:[%s12790_s20 + $0xa20] sm:$0xf]  ;;  %v6545_v54 = vor.u32 %v8267_v28, %v6544_v48  ;;  %v8159_v19 = vld [vmem:[%s12790_s20 + $0x51c] sm:$0xf]  ;;  %v5566_v38 = vld [vmem:[%s12790_s20 + $0xd4] sm:$0xf0] }
 0x121   :  { %3374 = vmatpush.bf16.msra.mxu3 %v6237_v52  ;;  %v7216_v52 = vld [vmem:[%s12790_s20 + $0xda0] sm:$0xf]  ;;  %v6769_v55 = vor.u32 %v8323_v49, %v6768_v29 }
 0x122   :  { %3336 = vmatpush.bf16.msra.mxu0 %v5537_v60  ;;  %v7217_v60 = vor.u32 %v8435_v53, %v7216_v52  ;;  %v7104_v29 = vld [vmem:[%s12790_s20 + $0xcc0] sm:$0xf] }
 0x123   :  { %3349 = vmatpush.bf16.msra.mxu1 %v5761_v63  ;;  %v6964_v63 = vld [vmem:[%s12790_s20 + $0xba8] sm:$0xf] }
 0x124   :  { %3362 = vmatpush.bf16.msra.mxu2 %v5985_v0  ;;  %v8372_v0 = vld [vmem:[%s12790_s20 + $0xbc0] sm:$0xf0] }
 0x125   :  { %3375 = vmatpush.bf16.msra.mxu3 %v6209_v5  ;;  %v6965_v5 = vor.u32 %v8372_v0, %v6964_v63  ;;  %v7076_v63 = vld [vmem:[%s12790_s20 + $0xc88] sm:$0xf]  ;;  %v8400_v0 = vld [vmem:[%s12790_s20 + $0xca0] sm:$0xf0] }
 0x126   :  { %3337 = vmatpush.bf16.msra.mxu0 %v5509_v13  ;;  %v7160_v13 = vld [vmem:[%s12790_s20 + $0xd30] sm:$0xf] }
 0x127   :  { %3350 = vmatpush.bf16.msra.mxu1 %v5733_v16  ;;  %v7161_v26 = vor.u32 %v8421_v11, %v7160_v13  ;;  %v8047_v11 = vld [vmem:[%s12790_s20 + $0x19c] sm:$0xf] }
 0x128   :  { %3363 = vmatpush.bf16.msra.mxu2 %v5957_v18 }
 0x129   :  { %3376 = vmatpush.bf16.msra.mxu3 %v6181_v22 }
 0x12a   :  { %3338 = vmatpush.bf16.msra.mxu0 %v5481_v32  ;;  %v3132_v16 = vpop.f32.mrf.mxu0 }
 0x12b   :  { %3351 = vmatpush.bf16.msra.mxu1 %v5705_v42  ;;  %v3145_v24 = vpop.f32.mrf.mxu1  ;;  %v6432_v42 = vld [vmem:[%s12790_s20 + $0x780] sm:$0xf] }
 0x12c   :  { %3364 = vmatpush.bf16.msra.mxu2 %v5929_v43  ;;  %v8239_v43 = vld [vmem:[%s12790_s20 + $0x798] sm:$0xf0] }
 0x12d   :  { %3377 = vmatpush.bf16.msra.mxu3 %v6153_v46  ;;  %3339 = vmatmul.bf16.vlgmr.msra.gmra.mxu0 %v10273_v12  ;;  %v6712_v12 = vld [vmem:[%s12790_s20 + $0x9b0] sm:$0xf]  ;;  %v7133_v46 = vor.u32 %v8414_v37, %v7132_v36  ;;  %v6433_v49 = vor.u32 %v8239_v43, %v6432_v42  ;;  %v6129_v36 = vor.u32 %v8159_v19, %v6126_v20  ;;  %v8040_v37 = vld [vmem:[%s12790_s20 + $0x164] sm:$0xf]  ;;  %v6098_v43 = vld [vmem:[%s12790_s20 + $0x4fc] sm:$0xf0] }
 0x12e   :  { %3383 = vmatpush.bf16.msrb.mxu0 %v6573_v27  ;;  %3352 = vmatmul.bf16.vlgmr.msra.gmra.mxu1 %v10282_v17  ;;  %v7189_v17 = vor.u32 %v8428_v2, %v7188_v1  ;;  %v6713_v18 = vor.u32 %v8309_v31, %v6712_v12  ;;  %v8295_v27 = vld [vmem:[%s12790_s20 + $0x958] sm:$0xf0]  ;;  %v6376_v2 = vld [vmem:[%s12790_s20 + $0x710] sm:$0xf]  ;;  %v8337_v31 = vld [vmem:[%s12790_s20 + $0xaa8] sm:$0xf0] }
 0x12f   :  { %3396 = vmatpush.bf16.msrb.mxu1 %v6797_v3  ;;  %3365 = vmatmul.bf16.vlgmr.msra.gmra.mxu2 %v10264_v9  ;;  %v6741_v9 = vor.u32 %v8316_v62, %v6740_v59  ;;  %v6880_v3 = vld [vmem:[%s12790_s20 + $0xb00] sm:$0xf]  ;;  %v6657_v52 = vor.u32 %v8295_v27, %v6656_v44  ;;  %v8288_v59 = vld [vmem:[%s12790_s20 + $0x920] sm:$0xf0]  ;;  %v6824_v12 = vld [vmem:[%s12790_s20 + $0xa90] sm:$0xf] }
 0x130   :  { %3409 = vmatpush.bf16.msrb.mxu2 %v7021_v47  ;;  %3378 = vmatmul.bf16.vlgmr.msra.gmra.mxu3 %v10276_v14  ;;  %v10692_v14 = vld [vmem:[%s12792_s3] sm:$0x7f]  ;;  %v8351_v47 = vld [vmem:[%s12790_s20 + $0xb18] sm:$0xf0] }
 0x131   :  { %3422 = vmatpush.bf16.msrb.mxu3 %v7245_v34  ;;  %v581_v8 = vperm.slane %v10692_v14, 2  ;;  %v8407_v34 = vld [vmem:[%s12790_s20 + $0xcd8] sm:$0xf0]  ;;  %v6881_v53 = vor.u32 %v8351_v47, %v6880_v3  ;;  %v8344_v62 = vld [vmem:[%s12790_s20 + $0xae0] sm:$0xf0] }
 0x132   :  { %3384 = vmatpush.bf16.msrb.mxu0 %v6545_v54  ;;  %v3158_v45 = vpop.f32.mrf.mxu2  ;;  %v3134_v51 = vpop.f32.mrf.mxu0  ;;  %v6404_v54 = vld [vmem:[%s12790_s20 + $0x748] sm:$0xf]  ;;  %v7105_v58 = vor.u32 %v8407_v34, %v7104_v29  ;;  %v8152_v42 = vld [vmem:[%s12790_s20 + $0x4e4] sm:$0xf]  ;;  %v8033_v47 = vld [vmem:[%s12790_s20 + $0x12c] sm:$0xf] }
 0x133   :  { %3397 = vmatpush.bf16.msrb.mxu1 %v6769_v55  ;;  %v3133_v22 = vadd.f32 %v3132_v16, %v581_v8  ;;  %v3171_v28 = vpop.f32.mrf.mxu3  ;;  %v8232_v55 = vld [vmem:[%s12790_s20 + $0x760] sm:$0xf0]  ;;  %v3147_v57 = vpop.f32.mrf.mxu1  ;;  %v8103_v16 = vld [vmem:[%s12790_s20 + $0x35c] sm:$0xf]  ;;  %v6101_v3 = vor.u32 %v8152_v42, %v6098_v43  ;;  %v8145_v51 = vld [vmem:[%s12790_s20 + $0x4ac] sm:$0xf] }
 0x134   :  { %3410 = vmatpush.bf16.msrb.mxu2 %v6993_v56  ;;  %v6628_v56 = vld [vmem:[%s12790_s20 + $0x908] sm:$0xf]  ;;  %v6405_v1 = vor.u32 %v8232_v55, %v6404_v54  ;;  %v8208_v44 = vld [vmem:[%s12790_s20 + $0x6a4] sm:$0xf]  ;;  %v10865_v34 = vld [vmem:[#allocation1 + $0x36] sm:$0xff] }
 0x135   :  { %3423 = vmatpush.bf16.msrb.mxu3 %v7217_v60  ;;  %v3146_v32 = vadd.f32 %v3145_v24, %v3133_v22  ;;  %v6852_v60 = vld [vmem:[%s12790_s20 + $0xac8] sm:$0xf]  ;;  %v6629_v4 = vor.u32 %v8288_v59, %v6628_v56  ;;  %v6825_v22 = vor.u32 %v8337_v31, %v6824_v12  ;;  %v8215_v24 = vld [vmem:[%s12790_s20 + $0x6dc] sm:$0xf]  ;;  %v8180_v42 = vld [vmem:[%s12790_s20 + $0x5c4] sm:$0xf] }
 0x136   :  { %3385 = vmatpush.bf16.msrb.mxu0 %v6517_v25  ;;  %v8225_v25 = vld [vmem:[%s12790_s20 + $0x728] sm:$0xf0]  ;;  %v6294_v54 = vld [vmem:[%s12790_s20 + $0x684] sm:$0xf0]  ;;  %v10886_v56 = vld [vmem:[#allocation1 + $0x3f] sm:$0xff] }
 0x137   :  { %3398 = vmatpush.bf16.msrb.mxu1 %v6741_v9  ;;  %v3159_v48 = vadd.f32 %v3158_v45, %v3146_v32  ;;  %v6853_v9 = vor.u32 %v8344_v62, %v6852_v60  ;;  %v5650_v32 = vld [vmem:[%s12790_s20 + $0x17c] sm:$0xf0]  ;;  %v10883_v55 = vld [vmem:[#allocation1 + $0x24] sm:$0xff]  ;;  %v8026_v62 = vld [vmem:[%s12790_s20 + $0xf4] sm:$0xf] }
 0x138   :  { %3411 = vmatpush.bf16.msrb.mxu2 %v6965_v5  ;;  %v6600_v5 = vld [vmem:[%s12790_s20 + $0x8d0] sm:$0xf]  ;;  %v6322_v45 = vld [vmem:[%s12790_s20 + $0x6bc] sm:$0xf0]  ;;  %v8019_v31 = vld [vmem:[%s12790_s20 + $0xbc] sm:$0xf] }
 0x139   :  { %3424 = vmatpush.bf16.msrb.mxu3 %v7189_v17  ;;  %v10758_v50 = vadd.f32 %v3171_v28, %v3159_v48  ;;  %v7077_v17 = vor.u32 %v8400_v0, %v7076_v63  ;;  %v6601_v23 = vor.u32 %v8281_v6, %v6600_v5  ;;  %v5622_v48 = vld [vmem:[%s12790_s20 + $0x144] sm:$0xf0]  ;;  %v8089_v28 = vld [vmem:[%s12790_s20 + $0x2ec] sm:$0xf]  ;;  %v6325_v29 = vor.u32 %v8208_v44, %v6322_v45  ;;  %v5594_v63 = vld [vmem:[%s12790_s20 + $0x10c] sm:$0xf0] }
 0x13a   :  { %3386 = vmatpush.bf16.msrb.mxu0 %v6489_v15  ;;  %v3160_v8 = vpop.f32.mrf.mxu2  ;;  %v5678_v15 = vld [vmem:[%s12790_s20 + $0x1b4] sm:$0xf0]  ;;  %v5625_v57 = vor.u32 %v8033_v47, %v5622_v48  ;;  %v8082_v0 = vld [vmem:[%s12790_s20 + $0x2b4] sm:$0xf]  ;;  %v6266_v5 = vld [vmem:[%s12790_s20 + $0x64c] sm:$0xf0]  ;;  %v5597_v6 = vor.u32 %v8026_v62, %v5594_v63 }
 0x13b   :  { %3399 = vmatpush.bf16.msrb.mxu1 %v6713_v18  ;;  %v3173_v13 = vpop.f32.mrf.mxu3  ;;  %v6377_v18 = vor.u32 %v8225_v25, %v6376_v2  ;;  %v5681_v33 = vor.u32 %v8047_v11, %v5678_v15  ;;  %v5818_v2 = vld [vmem:[%s12790_s20 + $0x2cc] sm:$0xf0]  ;;  %v8138_v25 = vld [vmem:[%s12790_s20 + $0x474] sm:$0xf]  ;;  %v8187_v19 = vld [vmem:[%s12790_s20 + $0x5fc] sm:$0xf] }
 0x13c   :  { %3412 = vmatpush.bf16.msrb.mxu2 %v6937_v21  ;;  %v5902_v21 = vld [vmem:[%s12790_s20 + $0x374] sm:$0xf0]  ;;  %v5821_v8 = vor.u32 %v8082_v0, %v5818_v2  ;;  %v6210_v43 = vld [vmem:[%s12790_s20 + $0x5dc] sm:$0xf0]  ;;  %v8005_v47 = vld [vmem:[%s12790_s20 + $0x4c] sm:$0xf] }
 0x13d   :  { %3425 = vmatpush.bf16.msrb.mxu3 %v7161_v26  ;;  %v6350_v26 = vld [vmem:[%s12790_s20 + $0x6f4] sm:$0xf0]  ;;  %v5905_v35 = vor.u32 %v8103_v16, %v5902_v21  ;;  %v5510_v48 = vld [vmem:[%s12790_s20 + $0x64] sm:$0xf0]  ;;  %v5482_v62 = vld [vmem:[%s12790_s20 + $0x2c] sm:$0xf0] }
 0x13e   :  { %3387 = vmatpush.bf16.msrb.mxu0 %v6461_v39  ;;  %v8096_v39 = vld [vmem:[%s12790_s20 + $0x324] sm:$0xf]  ;;  %v5790_v16 = vld [vmem:[%s12790_s20 + $0x294] sm:$0xf0]  ;;  %v5706_v2 = vld [vmem:[%s12790_s20 + $0x1ec] sm:$0xf0] }
 0x13f   :  { %3400 = vmatpush.bf16.msrb.mxu1 %v6685_v40  ;;  %v6353_v40 = vor.u32 %v8215_v24, %v6350_v26  ;;  %v6014_v21 = vld [vmem:[%s12790_s20 + $0x454] sm:$0xf0]  ;;  %v8012_v26 = vld [vmem:[%s12790_s20 + $0x84] sm:$0xf] }
 0x140   :  { %3413 = vmatpush.bf16.msrb.mxu2 %v6909_v41  ;;  %v5874_v41 = vld [vmem:[%s12790_s20 + $0x33c] sm:$0xf0] }
 0x141   :  { %3426 = vmatpush.bf16.msrb.mxu3 %v7133_v46  ;;  %v5653_v46 = vor.u32 %v8040_v37, %v5650_v32  ;;  %v5877_v27 = vor.u32 %v8096_v39, %v5874_v41  ;;  %v5762_v37 = vld [vmem:[%s12790_s20 + $0x25c] sm:$0xf0]  ;;  %v8124_v32 = vld [vmem:[%s12790_s20 + $0x404] sm:$0xf] }
 0x142   :  { %3388 = vmatpush.bf16.msrb.mxu0 %v6433_v49  ;;  %v5846_v49 = vld [vmem:[%s12790_s20 + $0x304] sm:$0xf0]  ;;  %v5986_v39 = vld [vmem:[%s12790_s20 + $0x41c] sm:$0xf0] }
 0x143   :  { %3401 = vmatpush.bf16.msrb.mxu1 %v6657_v52  ;;  %v6070_v52 = vld [vmem:[%s12790_s20 + $0x4c4] sm:$0xf0]  ;;  %v5849_v59 = vor.u32 %v8089_v28, %v5846_v49  ;;  %v8061_v28 = vld [vmem:[%s12790_s20 + $0x20c] sm:$0xf]  ;;  %v6213_v49 = vor.u32 %v8180_v42, %v6210_v43 }
 0x144   :  { %3414 = vmatpush.bf16.msrb.mxu2 %v6881_v53  ;;  %v8201_v53 = vld [vmem:[%s12790_s20 + $0x66c] sm:$0xf]  ;;  %v6073_v60 = vor.u32 %v8145_v51, %v6070_v52  ;;  %v5734_v51 = vld [vmem:[%s12790_s20 + $0x224] sm:$0xf0] }
 0x145   :  { %3427 = vmatpush.bf16.msrb.mxu3 %v7105_v58  ;;  %v10889_v58 = vld [vmem:[#allocation1 + $0x2d] sm:$0xff]  ;;  %v5737_v63 = vor.u32 %v8061_v28, %v5734_v51  ;;  %v11090_v51 = vld [vmem:[#allocation1] sm:$0xff] }
 0x146   :  { %3389 = vmatpush.bf16.msrb.mxu0 %v6405_v1  ;;  %v6297_v1 = vor.u32 %v8201_v53, %v6294_v54  ;;  %v8117_v52 = vld [vmem:[%s12790_s20 + $0x3cc] sm:$0xf]  ;;  %v5958_v53 = vld [vmem:[%s12790_s20 + $0x3e4] sm:$0xf0]  ;;  %v11081_v28 = vld [vmem:[#allocation1 + $0x12] sm:$0xff] }
 0x147   :  { %3402 = vmatpush.bf16.msrb.mxu1 %v6629_v4  ;;  %v6042_v4 = vld [vmem:[%s12790_s20 + $0x48c] sm:$0xf0]  ;;  %v8173_v54 = vld [vmem:[%s12790_s20 + $0x58c] sm:$0xf]  ;;  %v5961_v0 = vor.u32 %v8117_v52, %v5958_v53  ;;  %v11093_v52 = vld [vmem:[#allocation1 + $0x1b] sm:$0xff] }
 0x148   :  { %3415 = vmatpush.bf16.msrb.mxu2 %v6853_v9  ;;  %v8194_v9 = vld [vmem:[%s12790_s20 + $0x634] sm:$0xf]  ;;  %v8257_v43 = vld [vmem:[%s12790_s20 + $0x82c] sm:$0xf] }
 0x149   :  { %3428 = vmatpush.bf16.msrb.mxu3 %v7077_v17  ;;  %v6045_v17 = vor.u32 %v8138_v25, %v6042_v4  ;;  %v6269_v15 = vor.u32 %v8194_v9, %v6266_v5  ;;  %v8110_v25 = vld [vmem:[%s12790_s20 + $0x394] sm:$0xf]  ;;  %v5930_v5 = vld [vmem:[%s12790_s20 + $0x3ac] sm:$0xf0] }
 0x14a   :  { %3390 = vmatpush.bf16.msrb.mxu0 %v6377_v18  ;;  %v3184_v12 = vpop.f32.mrf.mxu0  ;;  %v8131_v18 = vld [vmem:[%s12790_s20 + $0x43c] sm:$0xf] }
 0x14b   :  { %3403 = vmatpush.bf16.msrb.mxu1 %v6601_v23  ;;  %v3185_v13 = vadd.f32 %v3184_v12, %v10758_v50  ;;  %v3197_v11 = vpop.f32.mrf.mxu1  ;;  %v6238_v50 = vld [vmem:[%s12790_s20 + $0x614] sm:$0xf0]  ;;  %v5569_v23 = vor.u32 %v8019_v31, %v5566_v38  ;;  %v6017_v24 = vor.u32 %v8131_v18, %v6014_v21  ;;  %v6154_v12 = vld [vmem:[%s12790_s20 + $0x56c] sm:$0xf0]  ;;  %v8327_v38 = vld [vmem:[%s12790_s20 + $0xa5c] sm:$0xf]  ;;  %v5933_v18 = vor.u32 %v8110_v25, %v5930_v5 }
 0x14c   :  { %3416 = vmatpush.bf16.msrb.mxu2 %v6825_v22  ;;  %v5793_v22 = vor.u32 %v8075_v10, %v5790_v16  ;;  %v6574_v31 = vld [vmem:[%s12790_s20 + $0x8b4] sm:$0xf0]  ;;  %v8439_v21 = vld [vmem:[%s12790_s20 + $0xddc] sm:$0xf]  ;;  %v8362_v25 = vld [vmem:[%s12790_s20 + $0xb74] sm:$0xf] }
 0x14d   :  { %3429 = vmatpush.bf16.msrb.mxu3 %v7049_v30  ;;  %3391 = vmatmul.bf16.vlgmr.msrb.gmra.mxu0 %v10883_v55  ;;  %v3198_v20 = vadd.f32 %v3197_v11, %v3185_v13  ;;  %v5538_v30 = vld [vmem:[%s12790_s20 + $0x9c] sm:$0xf0]  ;;  %v6798_v13 = vld [vmem:[%s12790_s20 + $0xa74] sm:$0xf0]  ;;  %v8383_v11 = vld [vmem:[%s12790_s20 + $0xc1c] sm:$0xf] }
 0x14e   :  { %3435 = vmatpush.bf16.msra.mxu0 %v5681_v33  ;;  %3404 = vmatmul.bf16.vlgmr.msrb.gmra.mxu1 %v10889_v58  ;;  %v8068_v33 = vld [vmem:[%s12790_s20 + $0x244] sm:$0xf]  ;;  %v5541_v44 = vor.u32 %v8012_v26, %v5538_v30  ;;  %v6546_v26 = vld [vmem:[%s12790_s20 + $0x87c] sm:$0xf0] }
 0x14f   :  { %3448 = vmatpush.bf16.msra.mxu1 %v5905_v35  ;;  %3417 = vmatmul.bf16.vlgmr.msrb.gmra.mxu2 %v10865_v34  ;;  %v8320_v30 = vld [vmem:[%s12790_s20 + $0xa24] sm:$0xf] }
 0x150   :  { %3461 = vmatpush.bf16.msra.mxu2 %v6129_v36  ;;  %3430 = vmatmul.bf16.vlgmr.msrb.gmra.mxu3 %v10886_v56  ;;  %v6241_v36 = vor.u32 %v8187_v19, %v6238_v50  ;;  %v7246_v19 = vld [vmem:[%s12790_s20 + $0xdf4] sm:$0xf0] }
 0x151   :  { %3474 = vmatpush.bf16.msra.mxu3 %v6353_v40 }
 0x152   :  { %3436 = vmatpush.bf16.msra.mxu0 %v5653_v46  ;;  %v3210_v35 = vpop.f32.mrf.mxu2  ;;  %v3186_v46 = vpop.f32.mrf.mxu0 }
 0x153   :  { %3449 = vmatpush.bf16.msra.mxu1 %v5877_v27  ;;  %v3211_v40 = vadd.f32 %v3210_v35, %v3198_v20  ;;  %v3223_v41 = vpop.f32.mrf.mxu3  ;;  %v5765_v27 = vor.u32 %v8068_v33, %v5762_v37  ;;  %v7249_v33 = vor.u32 %v8439_v21, %v7246_v19  ;;  %v6770_v35 = vld [vmem:[%s12790_s20 + $0xa3c] sm:$0xf0]  ;;  %v8313_v46 = vld [vmem:[%s12790_s20 + $0x9ec] sm:$0xf]  ;;  %v8411_v21 = vld [vmem:[%s12790_s20 + $0xcfc] sm:$0xf] }
 0x154   :  { %3462 = vmatpush.bf16.msra.mxu2 %v6101_v3  ;;  %v5989_v3 = vor.u32 %v8124_v32, %v5986_v39  ;;  %v6994_v37 = vld [vmem:[%s12790_s20 + $0xbfc] sm:$0xf0]  ;;  %v8432_v32 = vld [vmem:[%s12790_s20 + $0xda4] sm:$0xf]  ;;  %v7134_v19 = vld [vmem:[%s12790_s20 + $0xd14] sm:$0xf0] }
 0x155   :  { %3475 = vmatpush.bf16.msra.mxu3 %v6325_v29  ;;  %v10965_v45 = vadd.f32 %v3223_v41, %v3211_v40  ;;  %v3199_v29 = vpop.f32.mrf.mxu1  ;;  %v7218_v39 = vld [vmem:[%s12790_s20 + $0xdbc] sm:$0xf0]  ;;  %v6773_v41 = vor.u32 %v8320_v30, %v6770_v35  ;;  %v8292_v30 = vld [vmem:[%s12790_s20 + $0x944] sm:$0xf]  ;;  %v7137_v35 = vor.u32 %v8411_v21, %v7134_v19  ;;  %v8163_v21 = vld [vmem:[%s12790_s20 + $0x538] sm:$0xf0] }
 0x156   :  { %3437 = vmatpush.bf16.msra.mxu0 %v5625_v57  ;;  %v6182_v57 = vld [vmem:[%s12790_s20 + $0x5a4] sm:$0xf0]  ;;  %v8425_v29 = vld [vmem:[%s12790_s20 + $0xd6c] sm:$0xf] }
 0x157   :  { %3450 = vmatpush.bf16.msra.mxu1 %v5849_v59  ;;  %v5513_v59 = vor.u32 %v8005_v47, %v5510_v48  ;;  %v6185_v9 = vor.u32 %v8173_v54, %v6182_v57  ;;  %v8369_v47 = vld [vmem:[%s12790_s20 + $0xbac] sm:$0xf]  ;;  %v6966_v48 = vld [vmem:[%s12790_s20 + $0xbc4] sm:$0xf0]  ;;  %v8250_v54 = vld [vmem:[%s12790_s20 + $0x7f4] sm:$0xf] }
 0x158   :  { %3463 = vmatpush.bf16.msra.mxu2 %v6073_v60  ;;  %v7998_v60 = vld [vmem:[%s12790_s20 + $0x14] sm:$0xf]  ;;  %v11099_v57 = vld [vmem:[#allocation1 + $0x9] sm:$0xff] }
 0x159   :  { %3476 = vmatpush.bf16.msra.mxu3 %v6297_v1  ;;  %v8054_v1 = vld [vmem:[%s12790_s20 + $0x1d4] sm:$0xf]  ;;  %v5485_v10 = vor.u32 %v7998_v60, %v5482_v62  ;;  %v6969_v60 = vor.u32 %v8369_v47, %v6966_v48  ;;  %v6490_v62 = vld [vmem:[%s12790_s20 + $0x80c] sm:$0xf0]  ;;  %v8229_v47 = vld [vmem:[%s12790_s20 + $0x74c] sm:$0xf] }
 0x15a   :  { %3438 = vmatpush.bf16.msra.mxu0 %v5597_v6  ;;  %v3212_v4 = vpop.f32.mrf.mxu2  ;;  %v8166_v6 = vld [vmem:[%s12790_s20 + $0x554] sm:$0xf]  ;;  %v5709_v16 = vor.u32 %v8054_v1, %v5706_v2  ;;  %v6714_v2 = vld [vmem:[%s12790_s20 + $0x9cc] sm:$0xf0]  ;;  %v6493_v5 = vor.u32 %v8250_v54, %v6490_v62  ;;  %v6406_v48 = vld [vmem:[%s12790_s20 + $0x764] sm:$0xf0] }
 0x15b   :  { %3451 = vmatpush.bf16.msra.mxu1 %v5821_v8  ;;  %v3225_v8 = vpop.f32.mrf.mxu3  ;;  %v6157_v50 = vor.u32 %v8166_v6, %v6154_v12  ;;  %v6938_v4 = vld [vmem:[%s12790_s20 + $0xb8c] sm:$0xf0]  ;;  %v6630_v54 = vld [vmem:[%s12790_s20 + $0x924] sm:$0xf0]  ;;  %v8397_v62 = vld [vmem:[%s12790_s20 + $0xc8c] sm:$0xf] }
 0x15c   :  { %3464 = vmatpush.bf16.msra.mxu2 %v6045_v17  ;;  %v8271_v17 = vld [vmem:[%s12790_s20 + $0x89c] sm:$0xf]  ;;  %v6941_v8 = vor.u32 %v8362_v25, %v6938_v4 }
 0x15d   :  { %3477 = vmatpush.bf16.msra.mxu3 %v6269_v15  ;;  %v7022_v15 = vld [vmem:[%s12790_s20 + $0xc34] sm:$0xf0]  ;;  %v6577_v20 = vor.u32 %v8271_v17, %v6574_v31  ;;  %v8243_v17 = vld [vmem:[%s12790_s20 + $0x7bc] sm:$0xf] }
 0x15e   :  { %3439 = vmatpush.bf16.msra.mxu0 %v5569_v23  ;;  %v6801_v23 = vor.u32 %v8327_v38, %v6798_v13  ;;  %v6462_v31 = vld [vmem:[%s12790_s20 + $0x7d4] sm:$0xf0]  ;;  %v8299_v38 = vld [vmem:[%s12790_s20 + $0x97c] sm:$0xf] }
 0x15f   :  { %3452 = vmatpush.bf16.msra.mxu1 %v5793_v22  ;;  %v7025_v22 = vor.u32 %v8383_v11, %v7022_v15  ;;  %v6686_v15 = vld [vmem:[%s12790_s20 + $0x994] sm:$0xf0] }
 0x160   :  { %3465 = vmatpush.bf16.msra.mxu2 %v6017_v24  ;;  %v8264_v24 = vld [vmem:[%s12790_s20 + $0x864] sm:$0xf] }
 0x161   :  { %3478 = vmatpush.bf16.msra.mxu3 %v6241_v36  ;;  %v8376_v36 = vld [vmem:[%s12790_s20 + $0xbe4] sm:$0xf]  ;;  %v6549_v40 = vor.u32 %v8264_v24, %v6546_v26  ;;  %v6434_v26 = vld [vmem:[%s12790_s20 + $0x79c] sm:$0xf0] }
 0x162   :  { %3440 = vmatpush.bf16.msra.mxu0 %v5541_v44  ;;  %v6997_v42 = vor.u32 %v8376_v36, %v6994_v37  ;;  %v6518_v44 = vld [vmem:[%s12790_s20 + $0x844] sm:$0xf0]  ;;  %v8236_v24 = vld [vmem:[%s12790_s20 + $0x784] sm:$0xf]  ;;  %v6658_v36 = vld [vmem:[%s12790_s20 + $0x95c] sm:$0xf0] }
 0x163   :  { %3453 = vmatpush.bf16.msra.mxu1 %v5765_v27  ;;  %v7221_v27 = vor.u32 %v8432_v32, %v7218_v39  ;;  %v6521_v53 = vor.u32 %v8257_v43, %v6518_v44  ;;  %v8348_v37 = vld [vmem:[%s12790_s20 + $0xb04] sm:$0xf]  ;;  %v6882_v32 = vld [vmem:[%s12790_s20 + $0xb1c] sm:$0xf0]  ;;  %v6437_v43 = vor.u32 %v8236_v24, %v6434_v26 }
 0x164   :  { %3466 = vmatpush.bf16.msra.mxu2 %v5989_v3  ;;  %v6742_v3 = vld [vmem:[%s12790_s20 + $0xa04] sm:$0xf0] }
 0x165   :  { %3479 = vmatpush.bf16.msra.mxu3 %v6213_v49  ;;  %v7190_v49 = vld [vmem:[%s12790_s20 + $0xd84] sm:$0xf0] }
 0x166   :  { %3441 = vmatpush.bf16.msra.mxu0 %v5513_v59  ;;  %v6745_v59 = vor.u32 %v8313_v46, %v6742_v3  ;;  %v7193_v1 = vor.u32 %v8425_v29, %v7190_v49  ;;  %v6885_v3 = vor.u32 %v8348_v37, %v6882_v32  ;;  %v8285_v29 = vld [vmem:[%s12790_s20 + $0x90c] sm:$0xf]  ;;  %v8100_v32 = vld [vmem:[%s12790_s20 + $0x340] sm:$0xf0] }
 0x167   :  { %3454 = vmatpush.bf16.msra.mxu1 %v5737_v63  ;;  %v8306_v63 = vld [vmem:[%s12790_s20 + $0x9b4] sm:$0xf]  ;;  %v6633_v25 = vor.u32 %v8285_v29, %v6630_v54  ;;  %v8149_v54 = vld [vmem:[%s12790_s20 + $0x4c8] sm:$0xf0] }
 0x168   :  { %3467 = vmatpush.bf16.msra.mxu2 %v5961_v0  ;;  %v582_v0 = vperm.slane %v10692_v14, 3  ;;  %v7162_v14 = vld [vmem:[%s12790_s20 + $0xd4c] sm:$0xf0]  ;;  %v6717_v12 = vor.u32 %v8306_v63, %v6714_v2  ;;  %v7078_v63 = vld [vmem:[%s12790_s20 + $0xca4] sm:$0xf0] }
 0x169   :  { %3480 = vmatpush.bf16.msra.mxu3 %v6185_v9  ;;  %v8418_v9 = vld [vmem:[%s12790_s20 + $0xd34] sm:$0xf]  ;;  %v6378_v2 = vld [vmem:[%s12790_s20 + $0x72c] sm:$0xf0] }
 0x16a   :  { %3442 = vmatpush.bf16.msra.mxu0 %v5485_v10  ;;  %v3236_v6 = vpop.f32.mrf.mxu0  ;;  %v7165_v11 = vor.u32 %v8418_v9, %v7162_v14  ;;  %v8278_v9 = vld [vmem:[%s12790_s20 + $0x8d4] sm:$0xf]  ;;  %v6602_v14 = vld [vmem:[%s12790_s20 + $0x8ec] sm:$0xf0] }
 0x16b   :  { %3455 = vmatpush.bf16.msra.mxu1 %v5709_v16  ;;  %v3237_v10 = vadd.f32 %v3236_v6, %v582_v0  ;;  %v3249_v13 = vpop.f32.mrf.mxu1  ;;  %v8355_v16 = vld [vmem:[%s12790_s20 + $0xb3c] sm:$0xf]  ;;  %v6409_v0 = vor.u32 %v8229_v47, %v6406_v48  ;;  %v6605_v19 = vor.u32 %v8278_v9, %v6602_v14  ;;  %v8037_v47 = vld [vmem:[%s12790_s20 + $0x148] sm:$0xf0]  ;;  %v5852_v48 = vld [vmem:[%s12790_s20 + $0x2f0] sm:$0xf] }
 0x16c   :  { %3468 = vmatpush.bf16.msra.mxu2 %v5933_v18  ;;  %v6910_v18 = vld [vmem:[%s12790_s20 + $0xb54] sm:$0xf0]  ;;  %v8198_v9 = vld [vmem:[%s12790_s20 + $0x650] sm:$0xf0] }
 0x16d   :  { %3481 = vmatpush.bf16.msra.mxu3 %v6157_v50  ;;  %3443 = vmatmul.bf16.vlgmr.msra.gmra.mxu0 %v11090_v51  ;;  %v3250_v50 = vadd.f32 %v3249_v13, %v3237_v10  ;;  %v5684_v10 = vld [vmem:[%s12790_s20 + $0x1a0] sm:$0xf]  ;;  %v8051_v13 = vld [vmem:[%s12790_s20 + $0x1b8] sm:$0xf0] }
 0x16e   :  { %3487 = vmatpush.bf16.msrb.mxu0 %v6577_v20  ;;  %3456 = vmatmul.bf16.vlgmr.msra.gmra.mxu1 %v11099_v57  ;;  %v6465_v20 = vor.u32 %v8243_v17, %v6462_v31  ;;  %v8390_v17 = vld [vmem:[%s12790_s20 + $0xc54] sm:$0xf]  ;;  %v7050_v31 = vld [vmem:[%s12790_s20 + $0xc6c] sm:$0xf0]  ;;  %v5685_v24 = vor.u32 %v8051_v13, %v5684_v10 }
 0x16f   :  { %3500 = vmatpush.bf16.msrb.mxu1 %v6801_v23  ;;  %3469 = vmatmul.bf16.vlgmr.msra.gmra.mxu2 %v11081_v28  ;;  %v6689_v23 = vor.u32 %v8299_v38, %v6686_v15 }
 0x170   :  { %3513 = vmatpush.bf16.msrb.mxu2 %v7025_v22  ;;  %3482 = vmatmul.bf16.vlgmr.msra.gmra.mxu3 %v11093_v52  ;;  %v6913_v22 = vor.u32 %v8355_v16, %v6910_v18  ;;  %v8107_v16 = vld [vmem:[%s12790_s20 + $0x378] sm:$0xf0]  ;;  %v6132_v18 = vld [vmem:[%s12790_s20 + $0x520] sm:$0xf] }
 0x171   :  { %3526 = vmatpush.bf16.msrb.mxu3 %v7249_v33 }
 0x172   :  { %3488 = vmatpush.bf16.msrb.mxu0 %v6549_v40  ;;  %v3262_v33 = vpop.f32.mrf.mxu2  ;;  %v3238_v46 = vpop.f32.mrf.mxu0 }
 0x173   :  { %3501 = vmatpush.bf16.msrb.mxu1 %v6773_v41  ;;  %v3263_v39 = vadd.f32 %v3262_v33, %v3250_v50  ;;  %v3275_v40 = vpop.f32.mrf.mxu3  ;;  %v8404_v41 = vld [vmem:[%s12790_s20 + $0xcc4] sm:$0xf]  ;;  %v3251_v49 = vpop.f32.mrf.mxu1  ;;  %v5656_v33 = vld [vmem:[%s12790_s20 + $0x168] sm:$0xf] }
 0x174   :  { %3514 = vmatpush.bf16.msrb.mxu2 %v6997_v42  ;;  %v7106_v42 = vld [vmem:[%s12790_s20 + $0xcdc] sm:$0xf0]  ;;  %v8093_v49 = vld [vmem:[%s12790_s20 + $0x308] sm:$0xf0] }
 0x175   :  { %3527 = vmatpush.bf16.msrb.mxu3 %v7221_v27  ;;  %v11172_v44 = vadd.f32 %v3275_v40, %v3263_v39  ;;  %v6661_v27 = vor.u32 %v8292_v30, %v6658_v36  ;;  %v6133_v30 = vor.u32 %v8163_v21, %v6132_v18  ;;  %v5880_v36 = vld [vmem:[%s12790_s20 + $0x328] sm:$0xf]  ;;  %v8156_v40 = vld [vmem:[%s12790_s20 + $0x500] sm:$0xf0]  ;;  %v6244_v18 = vld [vmem:[%s12790_s20 + $0x600] sm:$0xf] }
 0x176   :  { %3489 = vmatpush.bf16.msrb.mxu0 %v6521_v53  ;;  %v7109_v53 = vor.u32 %v8404_v41, %v7106_v42  ;;  %v6104_v39 = vld [vmem:[%s12790_s20 + $0x4e8] sm:$0xf]  ;;  %v8212_v42 = vld [vmem:[%s12790_s20 + $0x6c0] sm:$0xf0]  ;;  %v5881_v46 = vor.u32 %v8100_v32, %v5880_v36 }
 0x177   :  { %3502 = vmatpush.bf16.msrb.mxu1 %v6745_v59  ;;  %v8341_v59 = vld [vmem:[%s12790_s20 + $0xacc] sm:$0xf]  ;;  %v6328_v41 = vld [vmem:[%s12790_s20 + $0x6a8] sm:$0xf]  ;;  %v8128_v36 = vld [vmem:[%s12790_s20 + $0x420] sm:$0xf0] }
 0x178   :  { %3515 = vmatpush.bf16.msrb.mxu2 %v6969_v60  ;;  %v6854_v60 = vld [vmem:[%s12790_s20 + $0xae4] sm:$0xf0]  ;;  %v6329_v29 = vor.u32 %v8212_v42, %v6328_v41 }
 0x179   :  { %3528 = vmatpush.bf16.msrb.mxu3 %v7193_v1  ;;  %v8222_v1 = vld [vmem:[%s12790_s20 + $0x714] sm:$0xf]  ;;  %v6857_v4 = vor.u32 %v8341_v59, %v6854_v60  ;;  %v8205_v59 = vld [vmem:[%s12790_s20 + $0x688] sm:$0xf0] }
 0x17a   :  { %3490 = vmatpush.bf16.msrb.mxu0 %v6493_v5  ;;  %v8334_v5 = vld [vmem:[%s12790_s20 + $0xa94] sm:$0xf]  ;;  %v3264_v6 = vpop.f32.mrf.mxu2  ;;  %v6381_v15 = vor.u32 %v8222_v1, %v6378_v2  ;;  %v6048_v2 = vld [vmem:[%s12790_s20 + $0x478] sm:$0xf] }
 0x17b   :  { %3503 = vmatpush.bf16.msrb.mxu1 %v6717_v12  ;;  %v7081_v12 = vor.u32 %v8397_v62, %v7078_v63  ;;  %v3277_v38 = vpop.f32.mrf.mxu3  ;;  %v5853_v62 = vor.u32 %v8093_v49, %v5852_v48  ;;  %v5740_v48 = vld [vmem:[%s12790_s20 + $0x210] sm:$0xf] }
 0x17c   :  { %3516 = vmatpush.bf16.msrb.mxu2 %v6941_v8  ;;  %v6826_v8 = vld [vmem:[%s12790_s20 + $0xaac] sm:$0xf0] }
 0x17d   :  { %3529 = vmatpush.bf16.msrb.mxu3 %v7165_v11  ;;  %v5908_v11 = vld [vmem:[%s12790_s20 + $0x360] sm:$0xf]  ;;  %v6829_v50 = vor.u32 %v8334_v5, %v6826_v8 }
 0x17e   :  { %3491 = vmatpush.bf16.msrb.mxu0 %v6465_v20  ;;  %v6356_v20 = vld [vmem:[%s12790_s20 + $0x6e0] sm:$0xf]  ;;  %v5909_v26 = vor.u32 %v8107_v16, %v5908_v11  ;;  %v8079_v11 = vld [vmem:[%s12790_s20 + $0x298] sm:$0xf0] }
 0x17f   :  { %3504 = vmatpush.bf16.msrb.mxu1 %v6689_v23  ;;  %v8219_v23 = vld [vmem:[%s12790_s20 + $0x6f8] sm:$0xf0]  ;;  %v5572_v8 = vld [vmem:[%s12790_s20 + $0xc0] sm:$0xf] }
 0x180   :  { %3517 = vmatpush.bf16.msrb.mxu2 %v6913_v22  ;;  %v7053_v22 = vor.u32 %v8390_v17, %v7050_v31  ;;  %v6357_v37 = vor.u32 %v8219_v23, %v6356_v20  ;;  %v8023_v17 = vld [vmem:[%s12790_s20 + $0xd8] sm:$0xf0]  ;;  %v5796_v31 = vld [vmem:[%s12790_s20 + $0x280] sm:$0xf]  ;;  %v5544_v23 = vld [vmem:[%s12790_s20 + $0x88] sm:$0xf] }
 0x181   :  { %3530 = vmatpush.bf16.msrb.mxu3 %v7137_v35  ;;  %v8044_v35 = vld [vmem:[%s12790_s20 + $0x180] sm:$0xf0]  ;;  %v8135_v16 = vld [vmem:[%s12790_s20 + $0x458] sm:$0xf0] }
 0x182   :  { %3492 = vmatpush.bf16.msrb.mxu0 %v6437_v43  ;;  %v5657_v43 = vor.u32 %v8044_v35, %v5656_v33  ;;  %v8072_v33 = vld [vmem:[%s12790_s20 + $0x260] sm:$0xf0]  ;;  %v5992_v35 = vld [vmem:[%s12790_s20 + $0x408] sm:$0xf] }
 0x183   :  { %3505 = vmatpush.bf16.msrb.mxu1 %v6661_v27  ;;  %v6105_v27 = vor.u32 %v8156_v40, %v6104_v39  ;;  %v6216_v39 = vld [vmem:[%s12790_s20 + $0x5c8] sm:$0xf]  ;;  %v8184_v40 = vld [vmem:[%s12790_s20 + $0x5e0] sm:$0xf0] }
 0x184   :  { %3518 = vmatpush.bf16.msrb.mxu2 %v6885_v3  ;;  %v5628_v3 = vld [vmem:[%s12790_s20 + $0x130] sm:$0xf]  ;;  %v6217_v49 = vor.u32 %v8184_v40, %v6216_v39 }
 0x185   :  { %3531 = vmatpush.bf16.msrb.mxu3 %v7109_v53  ;;  %v6076_v53 = vld [vmem:[%s12790_s20 + $0x4b0] sm:$0xf]  ;;  %v5629_v60 = vor.u32 %v8037_v47, %v5628_v3  ;;  %v8009_v47 = vld [vmem:[%s12790_s20 + $0x68] sm:$0xf0] }
 0x186   :  { %3493 = vmatpush.bf16.msrb.mxu0 %v6409_v0  ;;  %v6077_v63 = vor.u32 %v8149_v54, %v6076_v53  ;;  %v5824_v0 = vld [vmem:[%s12790_s20 + $0x2b8] sm:$0xf]  ;;  %v5516_v3 = vld [vmem:[%s12790_s20 + $0x50] sm:$0xf]  ;;  %v8065_v53 = vld [vmem:[%s12790_s20 + $0x228] sm:$0xf0] }
 0x187   :  { %3506 = vmatpush.bf16.msrb.mxu1 %v6633_v25  ;;  %v8142_v25 = vld [vmem:[%s12790_s20 + $0x490] sm:$0xf0]  ;;  %v5964_v54 = vld [vmem:[%s12790_s20 + $0x3d0] sm:$0xf] }
 0x188   :  { %3519 = vmatpush.bf16.msrb.mxu2 %v6857_v4  ;;  %v6272_v4 = vld [vmem:[%s12790_s20 + $0x638] sm:$0xf]  ;;  %v6524_v40 = vld [vmem:[%s12790_s20 + $0x830] sm:$0xf] }
 0x189   :  { %3532 = vmatpush.bf16.msrb.mxu3 %v7081_v12  ;;  %v6049_v12 = vor.u32 %v8142_v25, %v6048_v2  ;;  %v6273_v13 = vor.u32 %v8198_v9, %v6272_v4  ;;  %v5936_v2 = vld [vmem:[%s12790_s20 + $0x398] sm:$0xf]  ;;  %v8114_v9 = vld [vmem:[%s12790_s20 + $0x3b0] sm:$0xf0] }
 0x18a   :  { %3494 = vmatpush.bf16.msrb.mxu0 %v6381_v15  ;;  %v3288_v5 = vpop.f32.mrf.mxu0  ;;  %v6020_v15 = vld [vmem:[%s12790_s20 + $0x440] sm:$0xf] }
 0x18b   :  { %3507 = vmatpush.bf16.msrb.mxu1 %v6605_v19  ;;  %v3289_v38 = vadd.f32 %v3288_v5, %v11172_v44  ;;  %v3301_v10 = vpop.f32.mrf.mxu1  ;;  %v8191_v44 = vld [vmem:[%s12790_s20 + $0x618] sm:$0xf0]  ;;  %v5573_v19 = vor.u32 %v8023_v17, %v5572_v8  ;;  %v6021_v20 = vor.u32 %v8135_v16, %v6020_v15  ;;  %v8170_v5 = vld [vmem:[%s12790_s20 + $0x570] sm:$0xf0]  ;;  %v6804_v17 = vld [vmem:[%s12790_s20 + $0xa60] sm:$0xf]  ;;  %v5937_v15 = vor.u32 %v8114_v9, %v5936_v2 }
 0x18c   :  { %3520 = vmatpush.bf16.msrb.mxu2 %v6829_v50  ;;  %v5797_v50 = vor.u32 %v8079_v11, %v5796_v31  ;;  %v8275_v8 = vld [vmem:[%s12790_s20 + $0x8b8] sm:$0xf0]  ;;  %v7252_v16 = vld [vmem:[%s12790_s20 + $0xde0] sm:$0xf] }
 0x18d   :  { %3533 = vmatpush.bf16.msrb.mxu3 %v7053_v22  ;;  %3495 = vmatmul.bf16.vlgmr.msrb.gmra.mxu0 %v10883_v55  ;;  %v5600_v55 = vld [vmem:[%s12790_s20 + $0xf8] sm:$0xf]  ;;  %v3302_v21 = vadd.f32 %v3301_v10, %v3289_v38  ;;  %v8016_v22 = vld [vmem:[%s12790_s20 + $0xa0] sm:$0xf0]  ;;  %v8331_v38 = vld [vmem:[%s12790_s20 + $0xa78] sm:$0xf0] }
 0x18e   :  { %3539 = vmatpush.bf16.msra.mxu0 %v5685_v24  ;;  %3508 = vmatmul.bf16.vlgmr.msrb.gmra.mxu1 %v10889_v58  ;;  %v8086_v58 = vld [vmem:[%s12790_s20 + $0x2d0] sm:$0xf0]  ;;  %v5768_v24 = vld [vmem:[%s12790_s20 + $0x248] sm:$0xf]  ;;  %v5545_v41 = vor.u32 %v8016_v22, %v5544_v23  ;;  %v7028_v10 = vld [vmem:[%s12790_s20 + $0xc20] sm:$0xf] }
 0x18f   :  { %3552 = vmatpush.bf16.msra.mxu1 %v5909_v26  ;;  %3521 = vmatmul.bf16.vlgmr.msrb.gmra.mxu2 %v10865_v34  ;;  %v6300_v34 = vld [vmem:[%s12790_s20 + $0x670] sm:$0xf]  ;;  %v5825_v6 = vor.u32 %v8086_v58, %v5824_v0  ;;  %v8058_v58 = vld [vmem:[%s12790_s20 + $0x1f0] sm:$0xf0]  ;;  %v8268_v23 = vld [vmem:[%s12790_s20 + $0x880] sm:$0xf0] }
 0x190   :  { %3565 = vmatpush.bf16.msra.mxu2 %v6133_v30  ;;  %3534 = vmatmul.bf16.vlgmr.msrb.gmra.mxu3 %v10886_v56  ;;  %v8030_v56 = vld [vmem:[%s12790_s20 + $0x110] sm:$0xf0]  ;;  %v6301_v1 = vor.u32 %v8205_v59, %v6300_v34  ;;  %v6245_v30 = vor.u32 %v8191_v44, %v6244_v18  ;;  %v8121_v34 = vld [vmem:[%s12790_s20 + $0x3e8] sm:$0xf0]  ;;  %v6188_v59 = vld [vmem:[%s12790_s20 + $0x590] sm:$0xf] }
 0x191   :  { %3578 = vmatpush.bf16.msra.mxu3 %v6357_v37  ;;  %v5601_v14 = vor.u32 %v8030_v56, %v5600_v55  ;;  %v8002_v55 = vld [vmem:[%s12790_s20 + $0x30] sm:$0xf0]  ;;  %v5741_v56 = vor.u32 %v8065_v53, %v5740_v48  ;;  %v5965_v0 = vor.u32 %v8121_v34, %v5964_v54  ;;  %v8443_v18 = vld [vmem:[%s12790_s20 + $0xdf8] sm:$0xf0]  ;;  %v6776_v22 = vld [vmem:[%s12790_s20 + $0xa28] sm:$0xf] }
 0x192   :  { %3540 = vmatpush.bf16.msra.mxu0 %v5657_v43  ;;  %v3314_v26 = vpop.f32.mrf.mxu2  ;;  %v3290_v43 = vpop.f32.mrf.mxu0  ;;  %v7196_v48 = vld [vmem:[%s12790_s20 + $0xd70] sm:$0xf]  ;;  %v6496_v54 = vld [vmem:[%s12790_s20 + $0x7f8] sm:$0xf]  ;;  %v8254_v34 = vld [vmem:[%s12790_s20 + $0x810] sm:$0xf0] }
 0x193   :  { %3553 = vmatpush.bf16.msra.mxu1 %v5881_v46  ;;  %v3315_v37 = vadd.f32 %v3314_v26, %v3302_v21  ;;  %v3327_v32 = vpop.f32.mrf.mxu3  ;;  %v5769_v46 = vor.u32 %v8072_v33, %v5768_v24  ;;  %v7253_v24 = vor.u32 %v8443_v18, %v7252_v16  ;;  %v8324_v26 = vld [vmem:[%s12790_s20 + $0xa40] sm:$0xf0]  ;;  %v6748_v43 = vld [vmem:[%s12790_s20 + $0x9f0] sm:$0xf]  ;;  %v8247_v2 = vld [vmem:[%s12790_s20 + $0x7d8] sm:$0xf0] }
 0x194   :  { %3566 = vmatpush.bf16.msra.mxu2 %v6105_v27  ;;  %v5993_v27 = vor.u32 %v8128_v36, %v5992_v35  ;;  %v8380_v33 = vld [vmem:[%s12790_s20 + $0xc00] sm:$0xf0]  ;;  %v7224_v35 = vld [vmem:[%s12790_s20 + $0xda8] sm:$0xf] }
 0x195   :  { %3579 = vmatpush.bf16.msra.mxu3 %v6329_v29  ;;  %v11371_v42 = vadd.f32 %v3327_v32, %v3315_v37  ;;  %v3303_v29 = vpop.f32.mrf.mxu1  ;;  %v8436_v36 = vld [vmem:[%s12790_s20 + $0xdc0] sm:$0xf0]  ;;  %v6777_v32 = vor.u32 %v8324_v26, %v6776_v22 }
 0x196   :  { %3541 = vmatpush.bf16.msra.mxu0 %v5629_v60  ;;  %v8177_v60 = vld [vmem:[%s12790_s20 + $0x5a8] sm:$0xf0]  ;;  %v8296_v18 = vld [vmem:[%s12790_s20 + $0x960] sm:$0xf0] }
 0x197   :  { %3554 = vmatpush.bf16.msra.mxu1 %v5853_v62  ;;  %v5517_v62 = vor.u32 %v8009_v47, %v5516_v3  ;;  %v6189_v4 = vor.u32 %v8177_v60, %v6188_v59  ;;  %v6972_v3 = vld [vmem:[%s12790_s20 + $0xbb0] sm:$0xf]  ;;  %v8373_v47 = vld [vmem:[%s12790_s20 + $0xbc8] sm:$0xf0]  ;;  %v6944_v59 = vld [vmem:[%s12790_s20 + $0xb78] sm:$0xf] }
 0x198   :  { %3567 = vmatpush.bf16.msra.mxu2 %v6077_v63  ;;  %v5488_v63 = vld [vmem:[%s12790_s20 + $0x18] sm:$0xf]  ;;  %v6973_v53 = vor.u32 %v8373_v47, %v6972_v3  ;;  %v8366_v60 = vld [vmem:[%s12790_s20 + $0xb90] sm:$0xf0] }
 0x199   :  { %3580 = vmatpush.bf16.msra.mxu3 %v6301_v1  ;;  %v5712_v1 = vld [vmem:[%s12790_s20 + $0x1d8] sm:$0xf]  ;;  %v5489_v31 = vor.u32 %v8002_v55, %v5488_v63  ;;  %v8422_v63 = vld [vmem:[%s12790_s20 + $0xd50] sm:$0xf0]  ;;  %v6497_v55 = vor.u32 %v8254_v34, %v6496_v54 }
 0x19a   :  { %3542 = vmatpush.bf16.msra.mxu0 %v5601_v14  ;;  %v3316_v25 = vpop.f32.mrf.mxu2  ;;  %v6160_v14 = vld [vmem:[%s12790_s20 + $0x558] sm:$0xf]  ;;  %v5713_v11 = vor.u32 %v8058_v58, %v5712_v1  ;;  %v6945_v1 = vor.u32 %v8366_v60, %v6944_v59  ;;  %v6468_v58 = vld [vmem:[%s12790_s20 + $0x7c0] sm:$0xf]  ;;  %v8226_v3 = vld [vmem:[%s12790_s20 + $0x730] sm:$0xf0] }
 0x19b   :  { %3555 = vmatpush.bf16.msra.mxu1 %v5825_v6  ;;  %v3329_v6 = vpop.f32.mrf.mxu3  ;;  %v6161_v44 = vor.u32 %v8170_v5, %v6160_v14  ;;  %v6692_v25 = vld [vmem:[%s12790_s20 + $0x980] sm:$0xf]  ;;  %v8303_v14 = vld [vmem:[%s12790_s20 + $0x998] sm:$0xf0]  ;;  %v8338_v34 = vld [vmem:[%s12790_s20 + $0xab0] sm:$0xf0] }
 0x19c   :  { %3568 = vmatpush.bf16.msra.mxu2 %v6049_v12  ;;  %v6580_v12 = vld [vmem:[%s12790_s20 + $0x8a0] sm:$0xf]  ;;  %v8359_v6 = vld [vmem:[%s12790_s20 + $0xb58] sm:$0xf0]  ;;  %v7340_v59 = vld [vmem:[%s12768_s4 + $0xa8] sm:$0xf] }
 0x19d   :  { %3581 = vmatpush.bf16.msra.mxu3 %v6273_v13  ;;  %v8387_v13 = vld [vmem:[%s12790_s20 + $0xc38] sm:$0xf0]  ;;  %v6581_v21 = vor.u32 %v8275_v8, %v6580_v12  ;;  %v6916_v5 = vld [vmem:[%s12790_s20 + $0xb40] sm:$0xf]  ;;  %v8466_v60 = vld [vmem:[%s12768_s4 + $0xb0] sm:$0xf0] }
 0x19e   :  { %3543 = vmatpush.bf16.msra.mxu0 %v5573_v19  ;;  %v6805_v19 = vor.u32 %v8331_v38, %v6804_v17  ;;  %v7140_v12 = vld [vmem:[%s12790_s20 + $0xd00] sm:$0xf]  ;;  %v8415_v8 = vld [vmem:[%s12790_s20 + $0xd18] sm:$0xf0]  ;;  %v6469_v17 = vor.u32 %v8247_v2, %v6468_v58  ;;  %v6917_v38 = vor.u32 %v8359_v6, %v6916_v5  ;;  %v7341_v5 = vor.u32 %v8466_v60, %v7340_v59  ;;  %v7292_v59 = vld [vmem:[%s12768_s4 + $0x48] sm:$0xf] }
 0x19f   :  { %3556 = vmatpush.bf16.msra.mxu1 %v5797_v50  ;;  %v7029_v50 = vor.u32 %v8387_v13, %v7028_v10  ;;  %v6440_v10 = vld [vmem:[%s12790_s20 + $0x788] sm:$0xf]  ;;  %v8240_v13 = vld [vmem:[%s12790_s20 + $0x7a0] sm:$0xf0]  ;;  %v7141_v16 = vor.u32 %v8415_v8, %v7140_v12  ;;  %v7328_v8 = vld [vmem:[%s12768_s4 + $0x90] sm:$0xf] }
 0x1a0   :  { %3569 = vmatpush.bf16.msra.mxu2 %v6021_v20  ;;  %v6552_v20 = vld [vmem:[%s12790_s20 + $0x868] sm:$0xf]  ;;  %v8454_v60 = vld [vmem:[%s12768_s4 + $0x50] sm:$0xf0] }
 0x1a1   :  { %3582 = vmatpush.bf16.msra.mxu3 %v6245_v30  ;;  %v7000_v30 = vld [vmem:[%s12790_s20 + $0xbe8] sm:$0xf]  ;;  %v6553_v37 = vor.u32 %v8268_v23, %v6552_v20  ;;  %v8408_v20 = vld [vmem:[%s12790_s20 + $0xce0] sm:$0xf0]  ;;  %v6441_v23 = vor.u32 %v8240_v13, %v6440_v10  ;;  %v8487_v10 = vld [vmem:[%s12768_s4 + $0x158] sm:$0xf0] }
 0x1a2   :  { %3544 = vmatpush.bf16.msra.mxu0 %v5545_v41  ;;  %v7001_v39 = vor.u32 %v8380_v33, %v7000_v30  ;;  %v8261_v41 = vld [vmem:[%s12790_s20 + $0x848] sm:$0xf0]  ;;  %v6412_v30 = vld [vmem:[%s12790_s20 + $0x750] sm:$0xf] }
 0x1a3   :  { %3557 = vmatpush.bf16.msra.mxu1 %v5769_v46  ;;  %v7225_v46 = vor.u32 %v8436_v36, %v7224_v35  ;;  %v6525_v29 = vor.u32 %v8261_v41, %v6524_v40  ;;  %v8233_v33 = vld [vmem:[%s12790_s20 + $0x768] sm:$0xf0]  ;;  %v6636_v35 = vld [vmem:[%s12790_s20 + $0x910] sm:$0xf] }
 0x1a4   :  { %3570 = vmatpush.bf16.msra.mxu2 %v5993_v27  ;;  %v8317_v27 = vld [vmem:[%s12790_s20 + $0xa08] sm:$0xf0]  ;;  %v7084_v41 = vld [vmem:[%s12790_s20 + $0xc90] sm:$0xf] }
 0x1a5   :  { %3583 = vmatpush.bf16.msra.mxu3 %v6217_v49  ;;  %v6749_v49 = vor.u32 %v8317_v27, %v6748_v43  ;;  %v8345_v40 = vld [vmem:[%s12790_s20 + $0xae8] sm:$0xf0]  ;;  %v6384_v27 = vld [vmem:[%s12790_s20 + $0x718] sm:$0xf]  ;;  %v7520_v13 = vld [vmem:[%s12768_s4 + $0x210] sm:$0xf] }
 0x1a6   :  { %3545 = vmatpush.bf16.msra.mxu0 %v5517_v62  ;;  %v7168_v62 = vld [vmem:[%s12790_s20 + $0xd38] sm:$0xf]  ;;  %v8401_v43 = vld [vmem:[%s12790_s20 + $0xca8] sm:$0xf0] }
 0x1a7   :  { %3558 = vmatpush.bf16.msra.mxu1 %v5741_v56  ;;  %v7169_v9 = vor.u32 %v8422_v63, %v7168_v62  ;;  %v7085_v54 = vor.u32 %v8401_v43, %v7084_v41  ;;  %v7436_v62 = vld [vmem:[%s12768_s4 + $0x168] sm:$0xf]  ;;  %v6385_v63 = vor.u32 %v8226_v3, %v6384_v27  ;;  %v7304_v27 = vld [vmem:[%s12768_s4 + $0x60] sm:$0xf]  ;;  %v8457_v3 = vld [vmem:[%s12768_s4 + $0x68] sm:$0xf0] }
 0x1a8   :  { %3571 = vmatpush.bf16.msra.mxu2 %v5965_v0 }
 0x1a9   :  { %3584 = vmatpush.bf16.msra.mxu3 %v6189_v4 }
 0x1aa   :  { %3546 = vmatpush.bf16.msra.mxu0 %v5489_v31  ;;  %v11521_v56 = vpop.f32.mrf.mxu0  ;;  %v6693_v31 = vor.u32 %v8303_v14, %v6692_v25  ;;  %v7628_v25 = vld [vmem:[%s12768_s4 + $0x2e8] sm:$0xf] }
 0x1ab   :  { %3559 = vmatpush.bf16.msra.mxu1 %v5713_v11  ;;  %v11532_v4 = vpop.f32.mrf.mxu1  ;;  %v6664_v11 = vld [vmem:[%s12790_s20 + $0x948] sm:$0xf] }
 0x1ac   :  { %3572 = vmatpush.bf16.msra.mxu2 %v5937_v15 }
 0x1ad   :  { %3585 = vmatpush.bf16.msra.mxu3 %v6161_v44  ;;  %3547 = vmatmul.bf16.vlgmr.msra.gmra.mxu0 %v11090_v51  ;;  %v6720_v51 = vld [vmem:[%s12790_s20 + $0x9b8] sm:$0xf]  ;;  %v6888_v44 = vld [vmem:[%s12790_s20 + $0xb08] sm:$0xf] }
 0x1ae   :  { %3591 = vmatpush.bf16.msrb.mxu0 %v6581_v21  ;;  %3560 = vmatmul.bf16.vlgmr.msra.gmra.mxu1 %v11099_v57  ;;  %v8310_v57 = vld [vmem:[%s12790_s20 + $0x9d0] sm:$0xf0]  ;;  %v8352_v21 = vld [vmem:[%s12790_s20 + $0xb20] sm:$0xf0] }
 0x1af   :  { %3604 = vmatpush.bf16.msrb.mxu1 %v6805_v19  ;;  %3573 = vmatmul.bf16.vlgmr.msra.gmra.mxu2 %v11081_v28  ;;  %v8429_v28 = vld [vmem:[%s12790_s20 + $0xd88] sm:$0xf0]  ;;  %v6721_v0 = vor.u32 %v8310_v57, %v6720_v51  ;;  %v6889_v26 = vor.u32 %v8352_v21, %v6888_v44  ;;  %v7056_v51 = vld [vmem:[%s12790_s20 + $0xc58] sm:$0xf] }
 0x1b0   :  { %3617 = vmatpush.bf16.msrb.mxu2 %v7029_v50  ;;  %3586 = vmatmul.bf16.vlgmr.msra.gmra.mxu3 %v11093_v52  ;;  %v7197_v52 = vor.u32 %v8429_v28, %v7196_v48  ;;  %v7112_v50 = vld [vmem:[%s12790_s20 + $0xcc8] sm:$0xf]  ;;  %v6608_v28 = vld [vmem:[%s12790_s20 + $0x8d8] sm:$0xf] }
 0x1b1   :  { %3630 = vmatpush.bf16.msrb.mxu3 %v7253_v24  ;;  %v6665_v24 = vor.u32 %v8296_v18, %v6664_v11  ;;  %v8511_v11 = vld [vmem:[%s12768_s4 + $0x218] sm:$0xf0] }
 0x1b2   :  { %3592 = vmatpush.bf16.msrb.mxu0 %v6553_v37  ;;  %v11558_v15 = vpop.f32.mrf.mxu2  ;;  %v3342_v22 = vpop.f32.mrf.mxu0  ;;  %v7113_v37 = vor.u32 %v8408_v20, %v7112_v50  ;;  %v8535_v18 = vld [vmem:[%s12768_s4 + $0x2d8] sm:$0xf0]  ;;  %v7521_v50 = vor.u32 %v8511_v11, %v7520_v13  ;;  %v7316_v20 = vld [vmem:[%s12768_s4 + $0x78] sm:$0xf] }
 0x1b3   :  { %3605 = vmatpush.bf16.msrb.mxu1 %v6777_v32  ;;  %v11569_v19 = vpop.f32.mrf.mxu3  ;;  %v3355_v36 = vpop.f32.mrf.mxu1  ;;  %v8289_v32 = vld [vmem:[%s12790_s20 + $0x928] sm:$0xf0]  ;;  %v7412_v22 = vld [vmem:[%s12768_s4 + $0x138] sm:$0xf]  ;;  %v8499_v13 = vld [vmem:[%s12768_s4 + $0x1b8] sm:$0xf0] }
 0x1b4   :  { %3618 = vmatpush.bf16.msrb.mxu2 %v7001_v39  ;;  %v6860_v39 = vld [vmem:[%s12790_s20 + $0xad0] sm:$0xf]  ;;  %v6637_v47 = vor.u32 %v8289_v32, %v6636_v35  ;;  %v8508_v35 = vld [vmem:[%s12768_s4 + $0x200] sm:$0xf0]  ;;  %v7604_v32 = vld [vmem:[%s12768_s4 + $0x2b8] sm:$0xf] }
 0x1b5   :  { %3631 = vmatpush.bf16.msrb.mxu3 %v7225_v46  ;;  %v6413_v46 = vor.u32 %v8233_v33, %v6412_v30  ;;  %v6861_v48 = vor.u32 %v8345_v40, %v6860_v39  ;;  %v8484_v30 = vld [vmem:[%s12768_s4 + $0x140] sm:$0xf0]  ;;  %v7508_v33 = vld [vmem:[%s12768_s4 + $0x1f8] sm:$0xf]  ;;  %v8662_v36 = vld [vmem:[#allocation1 + $0x2d] sm:$0xff] }
 0x1b6   :  { %3593 = vmatpush.bf16.msrb.mxu0 %v6525_v29  ;;  %v8282_v29 = vld [vmem:[%s12790_s20 + $0x8f0] sm:$0xf0]  ;;  %v8532_v39 = vld [vmem:[%s12768_s4 + $0x2c0] sm:$0xf0]  ;;  %v7413_v43 = vor.u32 %v8484_v30, %v7412_v22 }
 0x1b7   :  { %3606 = vmatpush.bf16.msrb.mxu1 %v6749_v49  ;;  %v6832_v49 = vld [vmem:[%s12790_s20 + $0xa98] sm:$0xf]  ;;  %v6609_v58 = vor.u32 %v8282_v29, %v6608_v28  ;;  %v8664_v40 = vld [vmem:[#allocation1 + $0x3f] sm:$0xff]  ;;  %v8481_v28 = vld [vmem:[%s12768_s4 + $0x128] sm:$0xf0] }
 0x1b8   :  { %3619 = vmatpush.bf16.msrb.mxu2 %v6973_v53  ;;  %v6833_v2 = vor.u32 %v8338_v34, %v6832_v49  ;;  %v7496_v29 = vld [vmem:[%s12768_s4 + $0x1e0] sm:$0xf]  ;;  %v8505_v49 = vld [vmem:[%s12768_s4 + $0x1e8] sm:$0xf0]  ;;  %v7305_v34 = vor.u32 %v8457_v3, %v7304_v27  ;;  %v8448_v22 = vld [vmem:[%s12768_s4 + $0x20] sm:$0xf0] }
 0x1b9   :  { %3632 = vmatpush.bf16.msrb.mxu3 %v7197_v52  ;;  %v8394_v52 = vld [vmem:[%s12790_s20 + $0xc70] sm:$0xf0] }
 0x1ba   :  { %3594 = vmatpush.bf16.msrb.mxu0 %v6497_v55  ;;  %v3368_v53 = vpop.f32.mrf.mxu2  ;;  %v8490_v55 = vld [vmem:[%s12768_s4 + $0x170] sm:$0xf0]  ;;  %v7057_v14 = vor.u32 %v8394_v52, %v7056_v51 }
 0x1bb   :  { %3607 = vmatpush.bf16.msrb.mxu1 %v6721_v0  ;;  %v3381_v57 = vpop.f32.mrf.mxu3  ;;  %v7532_v0 = vld [vmem:[%s12768_s4 + $0x228] sm:$0xf]  ;;  %v7437_v6 = vor.u32 %v8490_v55, %v7436_v62  ;;  %v7592_v53 = vld [vmem:[%s12768_s4 + $0x2a0] sm:$0xf] }
 0x1bc   :  { %3620 = vmatpush.bf16.msrb.mxu2 %v6945_v1  ;;  %v8514_v1 = vld [vmem:[%s12768_s4 + $0x230] sm:$0xf0]  ;;  %v7497_v57 = vor.u32 %v8505_v49, %v7496_v29  ;;  %v7388_v62 = vld [vmem:[%s12768_s4 + $0x108] sm:$0xf] }
 0x1bd   :  { %3633 = vmatpush.bf16.msrb.mxu3 %v7169_v9  ;;  %v8538_v9 = vld [vmem:[%s12768_s4 + $0x2f0] sm:$0xf0]  ;;  %v7533_v12 = vor.u32 %v8514_v1, %v7532_v0  ;;  %v7484_v1 = vld [vmem:[%s12768_s4 + $0x1c8] sm:$0xf] }
 0x1be   :  { %3595 = vmatpush.bf16.msrb.mxu0 %v6469_v17  ;;  %v8463_v17 = vld [vmem:[%s12768_s4 + $0x98] sm:$0xf0]  ;;  %v8478_v0 = vld [vmem:[%s12768_s4 + $0x110] sm:$0xf0] }
 0x1bf   :  { %3608 = vmatpush.bf16.msrb.mxu1 %v6693_v31  ;;  %v7424_v31 = vld [vmem:[%s12768_s4 + $0x150] sm:$0xf]  ;;  %v7329_v44 = vor.u32 %v8463_v17, %v7328_v8 }
 0x1c0   :  { %3621 = vmatpush.bf16.msrb.mxu2 %v6917_v38  ;;  %v7629_v38 = vor.u32 %v8538_v9, %v7628_v25  ;;  %v7425_v21 = vor.u32 %v8487_v10, %v7424_v31  ;;  %v8526_v25 = vld [vmem:[%s12768_s4 + $0x290] sm:$0xf0]  ;;  %v7293_v9 = vor.u32 %v8454_v60, %v7292_v59  ;;  %v7376_v8 = vld [vmem:[%s12768_s4 + $0xf0] sm:$0xf]  ;;  %v7724_v59 = vld [vmem:[%s12768_s4 + $0x3a8] sm:$0xf] }
 0x1c1   :  { %3634 = vmatpush.bf16.msrb.mxu3 %v7141_v16  ;;  %v7616_v16 = vld [vmem:[%s12768_s4 + $0x2d0] sm:$0xf]  ;;  %v8562_v60 = vld [vmem:[%s12768_s4 + $0x3b0] sm:$0xf0] }
 0x1c2   :  { %3596 = vmatpush.bf16.msrb.mxu0 %v6441_v23  ;;  %v8460_v23 = vld [vmem:[%s12768_s4 + $0x80] sm:$0xf0]  ;;  %v7472_v10 = vld [vmem:[%s12768_s4 + $0x1b0] sm:$0xf] }
 0x1c3   :  { %3609 = vmatpush.bf16.msrb.mxu1 %v6665_v24  ;;  %v8661_v24 = vld [vmem:[#allocation1 + $0x24] sm:$0xff]  ;;  %v7317_v41 = vor.u32 %v8460_v23, %v7316_v20  ;;  %v7473_v20 = vor.u32 %v8499_v13, %v7472_v10  ;;  %v7268_v23 = vld [vmem:[%s12768_s4 + $0x18] sm:$0xf]  ;;  %v7330_v10 = vld [vmem:[%s12768_s4 + $0x9c] sm:$0xf0] }
 0x1c4   :  { %3622 = vmatpush.bf16.msrb.mxu2 %v6889_v26  ;;  %v7617_v26 = vor.u32 %v8535_v18, %v7616_v16  ;;  %v7568_v16 = vld [vmem:[%s12768_s4 + $0x270] sm:$0xf]  ;;  %v8523_v18 = vld [vmem:[%s12768_s4 + $0x278] sm:$0xf0] }
 0x1c5   :  { %3635 = vmatpush.bf16.msrb.mxu3 %v7113_v37  ;;  %v8663_v37 = vld [vmem:[#allocation1 + $0x36] sm:$0xff]  ;;  %v7569_v30 = vor.u32 %v8523_v18, %v7568_v16 }
 0x1c6   :  { %3597 = vmatpush.bf16.msrb.mxu0 %v6413_v46  ;;  %v7509_v46 = vor.u32 %v8508_v35, %v7508_v33  ;;  %v8472_v33 = vld [vmem:[%s12768_s4 + $0xe0] sm:$0xf0]  ;;  %v7460_v35 = vld [vmem:[%s12768_s4 + $0x198] sm:$0xf] }
 0x1c7   :  { %3610 = vmatpush.bf16.msrb.mxu1 %v6637_v47  ;;  %v7400_v47 = vld [vmem:[%s12768_s4 + $0x120] sm:$0xf] }
 0x1c8   :  { %3623 = vmatpush.bf16.msrb.mxu2 %v6861_v48  ;;  %v7605_v48 = vor.u32 %v8532_v39, %v7604_v32  ;;  %v7401_v52 = vor.u32 %v8481_v28, %v7400_v47  ;;  %v7556_v39 = vld [vmem:[%s12768_s4 + $0x258] sm:$0xf]  ;;  %v7352_v47 = vld [vmem:[%s12768_s4 + $0xc0] sm:$0xf] }
 0x1c9   :  { %3636 = vmatpush.bf16.msrb.mxu3 %v7085_v54  ;;  %v8529_v54 = vld [vmem:[%s12768_s4 + $0x2a8] sm:$0xf0]  ;;  %v7448_v28 = vld [vmem:[%s12768_s4 + $0x180] sm:$0xf] }
 0x1ca   :  { %3598 = vmatpush.bf16.msrb.mxu0 %v6385_v63  ;;  %v11721_v51 = vpop.f32.mrf.mxu0  ;;  %v7593_v55 = vor.u32 %v8529_v54, %v7592_v53  ;;  %v8493_v53 = vld [vmem:[%s12768_s4 + $0x188] sm:$0xf0]  ;;  %v7544_v54 = vld [vmem:[%s12768_s4 + $0x240] sm:$0xf] }
 0x1cb   :  { %3611 = vmatpush.bf16.msrb.mxu1 %v6609_v58  ;;  %v11732_v63 = vpop.f32.mrf.mxu1  ;;  %v8502_v58 = vld [vmem:[%s12768_s4 + $0x1d0] sm:$0xf0] }
 0x1cc   :  { %3624 = vmatpush.bf16.msrb.mxu2 %v6833_v2  ;;  %v7580_v2 = vld [vmem:[%s12768_s4 + $0x288] sm:$0xf] }
 0x1cd   :  { %3637 = vmatpush.bf16.msrb.mxu3 %v7057_v14  ;;  %3599 = vmatmul.bf16.vlgmr.msrb.gmra.mxu0 %v8661_v24  ;;  %v7389_v14 = vor.u32 %v8478_v0, %v7388_v62  ;;  %v7581_v31 = vor.u32 %v8526_v25, %v7580_v2  ;;  %v7364_v24 = vld [vmem:[%s12768_s4 + $0xd8] sm:$0xf]  ;;  %v7820_v62 = vld [vmem:[%s12768_s4 + $0x468] sm:$0xf]  ;;  %v8586_v0 = vld [vmem:[%s12768_s4 + $0x470] sm:$0xf0] }
 0x1ce   :  { %4649 = vmatpush.bf16.msra.mxu0 %v7341_v5  ;;  %3612 = vmatmul.bf16.vlgmr.msrb.gmra.mxu1 %v8662_v36  ;;  %v7485_v5 = vor.u32 %v8502_v58, %v7484_v1  ;;  %v8496_v36 = vld [vmem:[%s12768_s4 + $0x1a0] sm:$0xf0]  ;;  %v7365_v27 = vor.u32 %v8472_v33, %v7364_v24  ;;  %v7342_v1 = vld [vmem:[%s12768_s4 + $0xb4] sm:$0xf0]  ;;  %v3643_v58 = vmax.f32 %v10148_v7, 0.0  ;;  %v3644_v2 = vmax.f32 %v10554_v61, 0.0 }
 0x1cf   :  { %4662 = vmatpush.bf16.msra.mxu1 %v7437_v6  ;;  %3625 = vmatmul.bf16.vlgmr.msrb.gmra.mxu2 %v8663_v37  ;;  %v7280_v6 = vld [vmem:[%s12768_s4 + $0x30] sm:$0xf]  ;;  %v11798_v37 = vld [vmem:[%s12792_s3] sm:$0x7f]  ;;  %v7461_v3 = vor.u32 %v8496_v36, %v7460_v35  ;;  %v8559_v61 = vld [vmem:[%s12768_s4 + $0x398] sm:$0xf0] }
 0x1d0   :  { %4675 = vmatpush.bf16.msra.mxu2 %v7533_v12  ;;  %3638 = vmatmul.bf16.vlgmr.msrb.gmra.mxu3 %v8664_v40  ;;  %v8451_v12 = vld [vmem:[%s12768_s4 + $0x38] sm:$0xf0]  ;;  %v583_v32 = vperm.slane %v11798_v37, 4  ;;  %v8520_v40 = vld [vmem:[%s12768_s4 + $0x260] sm:$0xf0]  ;;  %v11873_v13 = vpack.c.bf16 %v3643_v58, %v3643_v58  ;;  %v11875_v16 = vpack.c.bf16 %v3644_v2, %v3644_v2 }
 0x1d1   :  { %4688 = vmatpush.bf16.msra.mxu3 %v7629_v38  ;;  %v8475_v38 = vld [vmem:[%s12768_s4 + $0xf8] sm:$0xf0]  ;;  %v7557_v49 = vor.u32 %v8520_v40, %v7556_v39  ;;  %v7712_v7 = vld [vmem:[%s12768_s4 + $0x390] sm:$0xf]  ;;  %v8556_v24 = vld [vmem:[%s12768_s4 + $0x380] sm:$0xf0] }
 0x1d2   :  { %4650 = vmatpush.bf16.msra.mxu0 %v7329_v44  ;;  %v11758_v17 = vpop.f32.mrf.mxu2  ;;  %v7281_v44 = vor.u32 %v8451_v12, %v7280_v6  ;;  %v7725_v12 = vor.u32 %v8562_v60, %v7724_v59  ;;  %v7318_v33 = vld [vmem:[%s12768_s4 + $0x84] sm:$0xf0]  ;;  %v7688_v40 = vld [vmem:[%s12768_s4 + $0x360] sm:$0xf]  ;;  %v8450_v2 = vld [vmem:[%s12768_s4 + $0x34] sm:$0xf] }
 0x1d3   :  { %4663 = vmatpush.bf16.msra.mxu1 %v7425_v21  ;;  %v11769_v11 = vpop.f32.mrf.mxu3  ;;  %v3394_v21 = vpop.f32.mrf.mxu0 }
 0x1d4   :  { %4676 = vmatpush.bf16.msra.mxu2 %v7521_v50  ;;  %v7377_v50 = vor.u32 %v8475_v38, %v7376_v8  ;;  %v7713_v21 = vor.u32 %v8559_v61, %v7712_v7  ;;  %v7748_v7 = vld [vmem:[%s12768_s4 + $0x3d8] sm:$0xf] }
 0x1d5   :  { %4689 = vmatpush.bf16.msra.mxu3 %v7617_v26  ;;  %v3407_v26 = vpop.f32.mrf.mxu1 }
 0x1d6   :  { %4651 = vmatpush.bf16.msra.mxu0 %v7317_v41  ;;  %v7269_v41 = vor.u32 %v8448_v22, %v7268_v23  ;;  %v7700_v22 = vld [vmem:[%s12768_s4 + $0x378] sm:$0xf] }
 0x1d7   :  { %4664 = vmatpush.bf16.msra.mxu1 %v7413_v43  ;;  %v7256_v43 = vld [vmem:[%s12768_s4] sm:$0xf]  ;;  %v7796_v26 = vld [vmem:[%s12768_s4 + $0x438] sm:$0xf]  ;;  %v7701_v35 = vor.u32 %v8556_v24, %v7700_v22  ;;  %v8541_v22 = vld [vmem:[%s12768_s4 + $0x308] sm:$0xf0] }
 0x1d8   :  { %4677 = vmatpush.bf16.msra.mxu2 %v7509_v46  ;;  %v8445_v46 = vld [vmem:[%s12768_s4 + $0x8] sm:$0xf0]  ;;  %v7736_v24 = vld [vmem:[%s12768_s4 + $0x3c0] sm:$0xf] }
 0x1d9   :  { %4690 = vmatpush.bf16.msra.mxu3 %v7605_v48  ;;  %v8469_v48 = vld [vmem:[%s12768_s4 + $0xc8] sm:$0xf0] }
 0x1da   :  { %4652 = vmatpush.bf16.msra.mxu0 %v7305_v34  ;;  %v3420_v29 = vpop.f32.mrf.mxu2  ;;  %v8517_v34 = vld [vmem:[%s12768_s4 + $0x248] sm:$0xf0]  ;;  %v7353_v25 = vor.u32 %v8469_v48, %v7352_v47 }
 0x1db   :  { %4665 = vmatpush.bf16.msra.mxu1 %v7401_v52  ;;  %v3433_v52 = vpop.f32.mrf.mxu3  ;;  %v7545_v6 = vor.u32 %v8517_v34, %v7544_v54  ;;  %v7772_v54 = vld [vmem:[%s12768_s4 + $0x408] sm:$0xf] }
 0x1dc   :  { %4678 = vmatpush.bf16.msra.mxu2 %v7497_v57  ;;  %v3341_v57 = vadd.f32 %v11521_v56, %v583_v32  ;;  %v8465_v56 = vld [vmem:[%s12768_s4 + $0xac] sm:$0xf] }
 0x1dd   :  { %4691 = vmatpush.bf16.msra.mxu3 %v7593_v55  ;;  %v7257_v55 = vor.u32 %v8445_v46, %v7256_v43  ;;  %v7345_v38 = vor.u32 %v8465_v56, %v7342_v1  ;;  %v7784_v43 = vld [vmem:[%s12768_s4 + $0x420] sm:$0xf]  ;;  %v8456_v46 = vld [vmem:[%s12768_s4 + $0x64] sm:$0xf]  ;;  %v8453_v52 = vld [vmem:[%s12768_s4 + $0x4c] sm:$0xf] }
 0x1de   :  { %4653 = vmatpush.bf16.msra.mxu0 %v7293_v9  ;;  %v7449_v9 = vor.u32 %v8493_v53, %v7448_v28  ;;  %v3354_v8 = vadd.f32 %v11532_v4, %v3341_v57  ;;  %v8462_v4 = vld [vmem:[%s12768_s4 + $0x94] sm:$0xf]  ;;  %v7294_v57 = vld [vmem:[%s12768_s4 + $0x54] sm:$0xf0]  ;;  %v8547_v56 = vld [vmem:[%s12768_s4 + $0x338] sm:$0xf0] }
 0x1df   :  { %4666 = vmatpush.bf16.msra.mxu1 %v7389_v14  ;;  %v3645_v14 = vmax.f32 %v10965_v45, 0.0  ;;  %v7808_v45 = vld [vmem:[%s12768_s4 + $0x450] sm:$0xf]  ;;  %v7333_v23 = vor.u32 %v8462_v4, %v7330_v10  ;;  %v8550_v53 = vld [vmem:[%s12768_s4 + $0x350] sm:$0xf0]  ;;  %v584_v4 = vperm.slane %v11798_v37, 5 }
 0x1e0   :  { %4679 = vmatpush.bf16.msra.mxu2 %v7485_v5  ;;  %v3646_v5 = vmax.f32 %v11371_v42, 0.0  ;;  %v8583_v42 = vld [vmem:[%s12768_s4 + $0x458] sm:$0xf0]  ;;  %v7760_v1 = vld [vmem:[%s12768_s4 + $0x3f0] sm:$0xf] }
 0x1e1   :  { %4692 = vmatpush.bf16.msra.mxu3 %v7581_v31  ;;  %v7821_v31 = vor.u32 %v8586_v0, %v7820_v62  ;;  %v11877_v18 = vpack.c.bf16 %v3645_v14, %v3645_v14  ;;  %v7664_v0 = vld [vmem:[%s12768_s4 + $0x330] sm:$0xf] }
 0x1e2   :  { %4654 = vmatpush.bf16.msra.mxu0 %v7281_v44  ;;  %v11879_v44 = vpack.c.bf16 %v3646_v5, %v3646_v5  ;;  %v7665_v14 = vor.u32 %v8547_v56, %v7664_v0  ;;  %v7510_v56 = vld [vmem:[%s12768_s4 + $0x204] sm:$0xf0] }
 0x1e3   :  { %4667 = vmatpush.bf16.msra.mxu1 %v7377_v50  ;;  %v3367_v50 = vadd.f32 %v11558_v15, %v3354_v8  ;;  %v8580_v15 = vld [vmem:[%s12768_s4 + $0x440] sm:$0xf0] }
 0x1e4   :  { %4680 = vmatpush.bf16.msra.mxu2 %v7473_v20  ;;  %v7809_v20 = vor.u32 %v8583_v42, %v7808_v45  ;;  %v7797_v32 = vor.u32 %v8580_v15, %v7796_v26  ;;  %v8447_v45 = vld [vmem:[%s12768_s4 + $0x1c] sm:$0xf]  ;;  %v7270_v42 = vld [vmem:[%s12768_s4 + $0x24] sm:$0xf0]  ;;  %v8565_v26 = vld [vmem:[%s12768_s4 + $0x3c8] sm:$0xf0] }
 0x1e5   :  { %4693 = vmatpush.bf16.msra.mxu3 %v7569_v30  ;;  %v8459_v30 = vld [vmem:[%s12768_s4 + $0x7c] sm:$0xf]  ;;  %v3380_v36 = vadd.f32 %v11569_v19, %v3367_v50  ;;  %v8577_v19 = vld [vmem:[%s12768_s4 + $0x428] sm:$0xf0] }
 0x1e6   :  { %4655 = vmatpush.bf16.msra.mxu0 %v7269_v41  ;;  %v7321_v39 = vor.u32 %v8459_v30, %v7318_v33  ;;  %v8553_v41 = vld [vmem:[%s12768_s4 + $0x368] sm:$0xf0]  ;;  %v7785_v28 = vor.u32 %v8577_v19, %v7784_v43  ;;  %v7258_v30 = vld [vmem:[%s12768_s4 + $0xc] sm:$0xf0]  ;;  %v7726_v19 = vld [vmem:[%s12768_s4 + $0x3b4] sm:$0xf0] }
 0x1e7   :  { %4668 = vmatpush.bf16.msra.mxu1 %v7365_v27  ;;  %v7306_v27 = vld [vmem:[%s12768_s4 + $0x6c] sm:$0xf0]  ;;  %v3393_v48 = vadd.f32 %v11721_v51, %v3380_v36  ;;  %v8574_v51 = vld [vmem:[%s12768_s4 + $0x410] sm:$0xf0]  ;;  %v8513_v33 = vld [vmem:[%s12768_s4 + $0x22c] sm:$0xf] }
 0x1e8   :  { %4681 = vmatpush.bf16.msra.mxu2 %v7461_v3  ;;  %v7689_v3 = vor.u32 %v8553_v41, %v7688_v40  ;;  %v7309_v29 = vor.u32 %v8456_v46, %v7306_v27  ;;  %v7773_v62 = vor.u32 %v8574_v51, %v7772_v54  ;;  %v7630_v40 = vld [vmem:[%s12768_s4 + $0x2f4] sm:$0xf0]  ;;  %v8561_v43 = vld [vmem:[%s12768_s4 + $0x3ac] sm:$0xf]  ;;  %v7737_v27 = vor.u32 %v8565_v26, %v7736_v24  ;;  %v8534_v54 = vld [vmem:[%s12768_s4 + $0x2d4] sm:$0xf] }
 0x1e9   :  { %4694 = vmatpush.bf16.msra.mxu3 %v7557_v49  ;;  %v7676_v49 = vld [vmem:[%s12768_s4 + $0x348] sm:$0xf]  ;;  %v3406_v60 = vadd.f32 %v11732_v63, %v3393_v48  ;;  %v8571_v63 = vld [vmem:[%s12768_s4 + $0x3f8] sm:$0xf0]  ;;  %v7618_v51 = vld [vmem:[%s12768_s4 + $0x2dc] sm:$0xf0] }
 0x1ea   :  { %4656 = vmatpush.bf16.msra.mxu0 %v7257_v55  ;;  %v3444_v47 = vpop.f32.mrf.mxu0  ;;  %v7677_v59 = vor.u32 %v8550_v53, %v7676_v49  ;;  %v7297_v55 = vor.u32 %v8453_v52, %v7294_v57  ;;  %v7729_v49 = vor.u32 %v8561_v43, %v7726_v19  ;;  %v7522_v53 = vld [vmem:[%s12768_s4 + $0x21c] sm:$0xf0]  ;;  %v8558_v52 = vld [vmem:[%s12768_s4 + $0x394] sm:$0xf]  ;;  %v7678_v24 = vld [vmem:[%s12768_s4 + $0x354] sm:$0xf0] }
 0x1eb   :  { %4669 = vmatpush.bf16.msra.mxu1 %v7353_v25  ;;  %v11933_v34 = vpop.f32.mrf.mxu1  ;;  %v7282_v25 = vld [vmem:[%s12768_s4 + $0x3c] sm:$0xf0]  ;;  %v3445_v36 = vadd.f32 %v3444_v47, %v584_v4  ;;  %v8546_v43 = vld [vmem:[%s12768_s4 + $0x334] sm:$0xf] }
 0x1ec   :  { %4682 = vmatpush.bf16.msra.mxu2 %v7449_v9  ;;  %v7285_v8 = vor.u32 %v8450_v2, %v7282_v25  ;;  %v7702_v2 = vld [vmem:[%s12768_s4 + $0x384] sm:$0xf0]  ;;  %v7666_v19 = vld [vmem:[%s12768_s4 + $0x33c] sm:$0xf0] }
 0x1ed   :  { %4695 = vmatpush.bf16.msra.mxu3 %v7545_v6  ;;  %4657 = vmatmul.bf16.vlgmr.msra.gmra.mxu0 %v11873_v13  ;;  %v3419_v6 = vadd.f32 %v11758_v17, %v3406_v60  ;;  %v8568_v17 = vld [vmem:[%s12768_s4 + $0x3e0] sm:$0xf0]  ;;  %v7621_v60 = vor.u32 %v8534_v54, %v7618_v51 }
 0x1ee   :  { %4701 = vmatpush.bf16.msrb.mxu0 %v7725_v12  ;;  %4670 = vmatmul.bf16.vlgmr.msra.gmra.mxu1 %v11875_v16  ;;  %v7761_v12 = vor.u32 %v8571_v63, %v7760_v1  ;;  %v8531_v1 = vld [vmem:[%s12768_s4 + $0x2bc] sm:$0xf]  ;;  %v7606_v63 = vld [vmem:[%s12768_s4 + $0x2c4] sm:$0xf0] }
 0x1ef   :  { %4714 = vmatpush.bf16.msrb.mxu1 %v7821_v31  ;;  %4683 = vmatmul.bf16.vlgmr.msra.gmra.mxu2 %v11877_v18  ;;  %v7652_v31 = vld [vmem:[%s12768_s4 + $0x318] sm:$0xf]  ;;  %v3432_v50 = vadd.f32 %v11769_v11, %v3419_v6  ;;  %v8444_v11 = vld [vmem:[%s12768_s4 + $0x4] sm:$0xf] }
 0x1f0   :  { %4696 = vmatmul.bf16.vlgmr.msra.gmra.mxu3 %v11879_v44 }
 0x1f1   :  { %4740 = vmatpush.bf16.msrb.mxu3 %v7345_v38  ;;  %v8544_v38 = vld [vmem:[%s12768_s4 + $0x320] sm:$0xf0]  ;;  %v3647_v46 = vmax.f32 %v3432_v50, 0.0  ;;  %v7486_v50 = vld [vmem:[%s12768_s4 + $0x1d4] sm:$0xf0] }
 0x1f2   :  { %4702 = vmatpush.bf16.msrb.mxu0 %v7713_v21  ;;  %v11954_v58 = vpop.f32.mrf.mxu2  ;;  %v3446_v5 = vpop.f32.mrf.mxu0  ;;  %v7653_v10 = vor.u32 %v8544_v38, %v7652_v31  ;;  %v7640_v21 = vld [vmem:[%s12768_s4 + $0x300] sm:$0xf]  ;;  %v8528_v31 = vld [vmem:[%s12768_s4 + $0x2a4] sm:$0xf]  ;;  %v7594_v38 = vld [vmem:[%s12768_s4 + $0x2ac] sm:$0xf0] }
 0x1f3   :  { %4715 = vmatpush.bf16.msrb.mxu1 %v7809_v20  ;;  %v11965_v9 = vpop.f32.mrf.mxu3  ;;  %v3459_v61 = vpop.f32.mrf.mxu1  ;;  %v7749_v20 = vor.u32 %v8568_v17, %v7748_v7  ;;  %v7641_v41 = vor.u32 %v8541_v22, %v7640_v21  ;;  %v12043_v57 = vpack.c.bf16 %v3647_v46, %v3647_v46  ;;  %v8504_v5 = vld [vmem:[%s12768_s4 + $0x1e4] sm:$0xf]  ;;  %v7597_v17 = vor.u32 %v8528_v31, %v7594_v38  ;;  %v8549_v22 = vld [vmem:[%s12768_s4 + $0x34c] sm:$0xf]  ;;  %v7348_v31 = vld [vmem:[%s12768_s4 + $0xb0] sm:$0xf] }
 0x1f4   :  { %v8552_v7 = vld [vmem:[%s12768_s4 + $0x364] sm:$0xf]  ;;  %v8467_v38 = vld [vmem:[%s12768_s4 + $0xb8] sm:$0xf0] }
 0x1f5   :  { %4741 = vmatpush.bf16.msrb.mxu3 %v7333_v23  ;;  %v7273_v23 = vor.u32 %v8447_v45, %v7270_v42  ;;  %v8501_v42 = vld [vmem:[%s12768_s4 + $0x1cc] sm:$0xf] }
 0x1f6   :  { %4703 = vmatpush.bf16.msrb.mxu0 %v7701_v35 }
 0x1f7   :  { %4716 = vmatpush.bf16.msrb.mxu1 %v7797_v32  ;;  %v7534_v32 = vld [vmem:[%s12768_s4 + $0x234] sm:$0xf0] }
 0x1f8   :  { %v7537_v47 = vor.u32 %v8513_v33, %v7534_v32  ;;  %v7681_v33 = vor.u32 %v8549_v22, %v7678_v24  ;;  %v8522_v32 = vld [vmem:[%s12768_s4 + $0x274] sm:$0xf]  ;;  %v8464_v22 = vld [vmem:[%s12768_s4 + $0xa0] sm:$0xf0] }
 0x1f9   :  { %4742 = vmatpush.bf16.msrb.mxu3 %v7321_v39  ;;  %v8537_v39 = vld [vmem:[%s12768_s4 + $0x2ec] sm:$0xf] }
 0x1fa   :  { %4704 = vmatpush.bf16.msrb.mxu0 %v7689_v3  ;;  %v3472_v15 = vpop.f32.mrf.mxu2  ;;  %v7261_v3 = vor.u32 %v8444_v11, %v7258_v30  ;;  %v7633_v48 = vor.u32 %v8537_v39, %v7630_v40  ;;  %v8498_v30 = vld [vmem:[%s12768_s4 + $0x1b4] sm:$0xf]  ;;  %v7570_v39 = vld [vmem:[%s12768_s4 + $0x27c] sm:$0xf0] }
 0x1fb   :  { %4717 = vmatpush.bf16.msrb.mxu1 %v7785_v28  ;;  %v3485_v35 = vpop.f32.mrf.mxu3  ;;  %v8510_v28 = vld [vmem:[%s12768_s4 + $0x214] sm:$0xf]  ;;  %v7489_v15 = vor.u32 %v8501_v42, %v7486_v50  ;;  %v7426_v50 = vld [vmem:[%s12768_s4 + $0x15c] sm:$0xf0] }
 0x1fd   :  { %4743 = vmatpush.bf16.msrb.mxu3 %v7309_v29  ;;  %v3458_v29 = vadd.f32 %v11933_v34, %v3445_v36  ;;  %v7714_v34 = vld [vmem:[%s12768_s4 + $0x39c] sm:$0xf0] }
 0x1fe   :  { %4705 = vmatpush.bf16.msrb.mxu0 %v7677_v59  ;;  %v7525_v59 = vor.u32 %v8510_v28, %v7522_v53  ;;  %v7717_v0 = vor.u32 %v8558_v52, %v7714_v34  ;;  %v7474_v36 = vld [vmem:[%s12768_s4 + $0x1bc] sm:$0xf0]  ;;  %v7669_v28 = vor.u32 %v8546_v43, %v7666_v19  ;;  %v7558_v53 = vld [vmem:[%s12768_s4 + $0x264] sm:$0xf0]  ;;  %v8543_v52 = vld [vmem:[%s12768_s4 + $0x31c] sm:$0xf] }
 0x1ff   :  { %4718 = vmatpush.bf16.msrb.mxu1 %v7773_v62  ;;  %v8507_v62 = vld [vmem:[%s12768_s4 + $0x1fc] sm:$0xf]  ;;  %v7654_v34 = vld [vmem:[%s12768_s4 + $0x324] sm:$0xf0] }
 0x200   :  { %v7513_v25 = vor.u32 %v8507_v62, %v7510_v56  ;;  %v8516_v62 = vld [vmem:[%s12768_s4 + $0x244] sm:$0xf]  ;;  %v7312_v43 = vld [vmem:[%s12768_s4 + $0x68] sm:$0xf] }
 0x201   :  { %4744 = vmatpush.bf16.msrb.mxu3 %v7297_v55  ;;  %v3471_v55 = vadd.f32 %v11954_v58, %v3458_v29  ;;  %v8555_v58 = vld [vmem:[%s12768_s4 + $0x37c] sm:$0xf]  ;;  %v7462_v29 = vld [vmem:[%s12768_s4 + $0x1a4] sm:$0xf0] }
 0x202   :  { %4706 = vmatpush.bf16.msrb.mxu0 %v7665_v14  ;;  %v7609_v14 = vor.u32 %v8531_v1, %v7606_v63  ;;  %v7546_v1 = vld [vmem:[%s12768_s4 + $0x24c] sm:$0xf0]  ;;  %v7832_v63 = vld [vmem:[%s12768_s4 + $0x480] sm:$0xf] }
 0x203   :  { %4719 = vmatpush.bf16.msrb.mxu1 %v7761_v12  ;;  %v3484_v6 = vadd.f32 %v11965_v9, %v3471_v55  ;;  %v7705_v12 = vor.u32 %v8555_v58, %v7702_v2  ;;  %v7690_v9 = vld [vmem:[%s12768_s4 + $0x36c] sm:$0xf0]  ;;  %v8589_v58 = vld [vmem:[%s12768_s4 + $0x488] sm:$0xf0]  ;;  %v7657_v2 = vor.u32 %v8543_v52, %v7654_v34  ;;  %v7549_v42 = vor.u32 %v8516_v62, %v7546_v1  ;;  %v8515_v52 = vld [vmem:[%s12768_s4 + $0x238] sm:$0xf0] }
 0x204   :  { %v7693_v4 = vor.u32 %v8552_v7, %v7690_v9  ;;  %v7390_v62 = vld [vmem:[%s12768_s4 + $0x114] sm:$0xf0]  ;;  %v8455_v1 = vld [vmem:[%s12768_s4 + $0x58] sm:$0xf0] }
 0x205   :  { %4745 = vmatpush.bf16.msrb.mxu3 %v7285_v8  ;;  %v7498_v8 = vld [vmem:[%s12768_s4 + $0x1ec] sm:$0xf0] }
 0x206   :  { %4707 = vmatpush.bf16.msrb.mxu0 %v7653_v10  ;;  %v7501_v61 = vor.u32 %v8504_v5, %v7498_v8  ;;  %v7833_v5 = vor.u32 %v8589_v58, %v7832_v63  ;;  %v7642_v8 = vld [vmem:[%s12768_s4 + $0x30c] sm:$0xf0] }
 0x207   :  { %4720 = vmatpush.bf16.msrb.mxu1 %v7749_v20  ;;  %v8525_v20 = vld [vmem:[%s12768_s4 + $0x28c] sm:$0xf]  ;;  %v7396_v63 = vld [vmem:[%s12768_s4 + $0x110] sm:$0xf] }
 0x208   :  { %4734 = vmatpush.bf16.msrb.mxu2 %v7833_v5  ;;  %v7528_v5 = vld [vmem:[%s12768_s4 + $0x218] sm:$0xf] }
 0x209   :  { %4746 = vmatpush.bf16.msrb.mxu3 %v7273_v23  ;;  %v7582_v23 = vld [vmem:[%s12768_s4 + $0x294] sm:$0xf0] }
 0x20a   :  { %4708 = vmatpush.bf16.msrb.mxu0 %v7641_v41  ;;  %v3496_v45 = vpop.f32.mrf.mxu0  ;;  %v7585_v11 = vor.u32 %v8525_v20, %v7582_v23  ;;  %v7336_v23 = vld [vmem:[%s12768_s4 + $0x98] sm:$0xf] }
 0x20b   :  { %4721 = vmatpush.bf16.msrb.mxu1 %v7737_v27  ;;  %v3497_v10 = vadd.f32 %v3496_v45, %v3484_v6  ;;  %v3509_v21 = vpop.f32.mrf.mxu1  ;;  %v7477_v27 = vor.u32 %v8498_v30, %v7474_v36  ;;  %v8489_v6 = vld [vmem:[%s12768_s4 + $0x16c] sm:$0xf]  ;;  %v8483_v30 = vld [vmem:[%s12768_s4 + $0x13c] sm:$0xf]  ;;  %v7324_v36 = vld [vmem:[%s12768_s4 + $0x80] sm:$0xf] }
 0x20d   :  { %4747 = vmatpush.bf16.msrb.mxu3 %v7261_v3  ;;  %4709 = vmatmul.bf16.vlgmr.msrb.gmra.mxu0 %v12043_v57  ;;  %v3510_v26 = vadd.f32 %v3509_v21, %v3497_v10  ;;  %v7573_v3 = vor.u32 %v8522_v32, %v7570_v39  ;;  %v7349_v10 = vor.u32 %v8467_v38, %v7348_v31  ;;  %v8486_v21 = vld [vmem:[%s12768_s4 + $0x154] sm:$0xf]  ;;  %v8461_v32 = vld [vmem:[%s12768_s4 + $0x88] sm:$0xf0]  ;;  %v7378_v38 = vld [vmem:[%s12768_s4 + $0xfc] sm:$0xf0] }
 0x20e   :  { %4766 = vmatpush.bf16.msra.mxu0 %v7537_v47  ;;  %v8495_v47 = vld [vmem:[%s12768_s4 + $0x19c] sm:$0xf]  ;;  %v7429_v24 = vor.u32 %v8486_v21, %v7426_v50  ;;  %v7325_v19 = vor.u32 %v8461_v32, %v7324_v36  ;;  %v8474_v31 = vld [vmem:[%s12768_s4 + $0xf4] sm:$0xf]  ;;  %v8509_v21 = vld [vmem:[%s12768_s4 + $0x208] sm:$0xf0] }
 0x20f   :  { %4779 = vmatpush.bf16.msra.mxu1 %v7633_v48 }
 0x210   :  { %4748 = vmatmul.bf16.vlgmr.msrb.gmra.mxu3 %v11873_v13 }
 0x211   :  { %4792 = vmatpush.bf16.msra.mxu3 %v7729_v49  ;;  %v8519_v49 = vld [vmem:[%s12768_s4 + $0x25c] sm:$0xf] }
 0x212   :  { %4767 = vmatpush.bf16.msra.mxu0 %v7525_v59  ;;  %v3522_v35 = vpop.f32.mrf.mxu2  ;;  %v3498_v48 = vpop.f32.mrf.mxu0  ;;  %v8492_v59 = vld [vmem:[%s12768_s4 + $0x184] sm:$0xf]  ;;  %v7561_v56 = vor.u32 %v8519_v49, %v7558_v53  ;;  %v8482_v49 = vld [vmem:[%s12768_s4 + $0x130] sm:$0xf0] }
 0x213   :  { %4780 = vmatpush.bf16.msra.mxu1 %v7621_v60  ;;  %v3523_v40 = vadd.f32 %v3522_v35, %v3510_v26  ;;  %v3535_v41 = vpop.f32.mrf.mxu3  ;;  %v3511_v54 = vpop.f32.mrf.mxu1  ;;  %v7450_v60 = vld [vmem:[%s12768_s4 + $0x18c] sm:$0xf0]  ;;  %v7432_v26 = vld [vmem:[%s12768_s4 + $0x158] sm:$0xf]  ;;  %v7408_v48 = vld [vmem:[%s12768_s4 + $0x128] sm:$0xf] }
 0x214   :  { %v7453_v45 = vor.u32 %v8492_v59, %v7450_v60  ;;  %v8477_v60 = vld [vmem:[%s12768_s4 + $0x10c] sm:$0xf] }
 0x215   :  { %4793 = vmatpush.bf16.msra.mxu3 %v7717_v0  ;;  %v3536_v46 = vadd.f32 %v3535_v41, %v3523_v40  ;;  %v7465_v0 = vor.u32 %v8495_v47, %v7462_v29  ;;  %v7420_v40 = vld [vmem:[%s12768_s4 + $0x140] sm:$0xf]  ;;  %v8485_v41 = vld [vmem:[%s12768_s4 + $0x148] sm:$0xf0]  ;;  %v7834_v29 = vld [vmem:[%s12768_s4 + $0x48c] sm:$0xf0] }
 0x216   :  { %4768 = vmatpush.bf16.msra.mxu0 %v7513_v25  ;;  %v8540_v25 = vld [vmem:[%s12768_s4 + $0x304] sm:$0xf]  ;;  %v7421_v47 = vor.u32 %v8485_v41, %v7420_v40  ;;  %v8506_v40 = vld [vmem:[%s12768_s4 + $0x1f0] sm:$0xf0]  ;;  %v585_v41 = vperm.slane %v11798_v37, 6 }
 0x217   :  { %4781 = vmatpush.bf16.msra.mxu1 %v7609_v14  ;;  %v3648_v51 = vmax.f32 %v3536_v46, 0.0  ;;  %v8458_v46 = vld [vmem:[%s12768_s4 + $0x70] sm:$0xf0] }
 0x218   :  { %v7313_v59 = vor.u32 %v8458_v46, %v7312_v43  ;;  %v7264_v43 = vld [vmem:[%s12768_s4 + $0x8] sm:$0xf] }
 0x219   :  { %4794 = vmatpush.bf16.msra.mxu3 %v7705_v12  ;;  %v12148_v55 = vpack.c.bf16 %v3648_v51, %v3648_v51  ;;  %v7438_v12 = vld [vmem:[%s12768_s4 + $0x174] sm:$0xf0]  ;;  %v7540_v51 = vld [vmem:[%s12768_s4 + $0x230] sm:$0xf] }
 0x21a   :  { %4769 = vmatpush.bf16.msra.mxu0 %v7501_v61  ;;  %v3524_v14 = vpop.f32.mrf.mxu2  ;;  %v7441_v9 = vor.u32 %v8489_v6, %v7438_v12  ;;  %v7444_v61 = vld [vmem:[%s12768_s4 + $0x170] sm:$0xf]  ;;  %v7541_v34 = vor.u32 %v8515_v52, %v7540_v51  ;;  %v8512_v6 = vld [vmem:[%s12768_s4 + $0x220] sm:$0xf0]  ;;  %v8503_v52 = vld [vmem:[%s12768_s4 + $0x1d8] sm:$0xf0] }
 0x21b   :  { %4782 = vmatpush.bf16.msra.mxu1 %v7597_v17  ;;  %v3537_v7 = vpop.f32.mrf.mxu3  ;;  %v8491_v17 = vld [vmem:[%s12768_s4 + $0x178] sm:$0xf0]  ;;  %v7393_v14 = vor.u32 %v8477_v60, %v7390_v62  ;;  %v7529_v12 = vor.u32 %v8512_v6, %v7528_v5  ;;  %v7492_v51 = vld [vmem:[%s12768_s4 + $0x1d0] sm:$0xf]  ;;  %v8560_v5 = vld [vmem:[%s12768_s4 + $0x3a0] sm:$0xf0] }
 0x21c   :  { %4722 = vmatmul.bf16.vlgmr.msrb.gmra.mxu1 %v12148_v55  ;;  %4753 = vmatpush.bf16.msra.mxu2 %v7441_v9  ;;  %v7445_v20 = vor.u32 %v8491_v17, %v7444_v61  ;;  %v7288_v9 = vld [vmem:[%s12768_s4 + $0x38] sm:$0xf]  ;;  %v8452_v61 = vld [vmem:[%s12768_s4 + $0x40] sm:$0xf0]  ;;  %v7493_v62 = vor.u32 %v8503_v52, %v7492_v51 }
 0x21d   :  { %4795 = vmatpush.bf16.msra.mxu3 %v7693_v4  ;;  %v7645_v4 = vor.u32 %v8540_v25, %v7642_v8  ;;  %v7384_v17 = vld [vmem:[%s12768_s4 + $0xf8] sm:$0xf] }
 0x21e   :  { %4770 = vmatpush.bf16.msra.mxu0 %v7489_v15  ;;  %v8488_v15 = vld [vmem:[%s12768_s4 + $0x160] sm:$0xf0]  ;;  %v7480_v6 = vld [vmem:[%s12768_s4 + $0x1b8] sm:$0xf] }
 0x21f   :  { %4783 = vmatpush.bf16.msra.mxu1 %v7585_v11  ;;  %v7337_v11 = vor.u32 %v8464_v22, %v7336_v23  ;;  %v7433_v35 = vor.u32 %v8488_v15, %v7432_v26  ;;  %v7289_v23 = vor.u32 %v8452_v61, %v7288_v9  ;;  %v8471_v22 = vld [vmem:[%s12768_s4 + $0xdc] sm:$0xf]  ;;  %v7276_v15 = vld [vmem:[%s12768_s4 + $0x20] sm:$0xf] }
 0x220   :  { %4754 = vmatpush.bf16.msra.mxu2 %v7429_v24  ;;  %v7366_v24 = vld [vmem:[%s12768_s4 + $0xe4] sm:$0xf0] }
 0x221   :  { %4796 = vmatpush.bf16.msra.mxu3 %v7681_v33  ;;  %v7414_v33 = vld [vmem:[%s12768_s4 + $0x144] sm:$0xf0]  ;;  %v7369_v32 = vor.u32 %v8471_v22, %v7366_v24  ;;  %v8554_v24 = vld [vmem:[%s12768_s4 + $0x370] sm:$0xf0] }
 0x222   :  { %4771 = vmatpush.bf16.msra.mxu0 %v7477_v27  ;;  %v7417_v39 = vor.u32 %v8483_v30, %v7414_v33  ;;  %v8480_v27 = vld [vmem:[%s12768_s4 + $0x124] sm:$0xf]  ;;  %v7372_v30 = vld [vmem:[%s12768_s4 + $0xe0] sm:$0xf] }
 0x223   :  { %4784 = vmatpush.bf16.msra.mxu1 %v7573_v3  ;;  %v7402_v3 = vld [vmem:[%s12768_s4 + $0x12c] sm:$0xf0] }
 0x224   :  { %4755 = vmatpush.bf16.msra.mxu2 %v7417_v39  ;;  %v7405_v53 = vor.u32 %v8480_v27, %v7402_v3  ;;  %v7504_v39 = vld [vmem:[%s12768_s4 + $0x1e8] sm:$0xf]  ;;  %v8446_v27 = vld [vmem:[%s12768_s4 + $0x10] sm:$0xf0]  ;;  %v8468_v3 = vld [vmem:[%s12768_s4 + $0xc4] sm:$0xf] }
 0x225   :  { %4797 = vmatpush.bf16.msra.mxu3 %v7669_v28  ;;  %v8588_v28 = vld [vmem:[%s12768_s4 + $0x484] sm:$0xf] }
 0x226   :  { %4772 = vmatpush.bf16.msra.mxu0 %v7465_v0  ;;  %v7837_v54 = vor.u32 %v8588_v28, %v7834_v29  ;;  %v7409_v0 = vor.u32 %v8482_v49, %v7408_v48  ;;  %v7360_v48 = vld [vmem:[%s12768_s4 + $0xc8] sm:$0xf]  ;;  %v8470_v28 = vld [vmem:[%s12768_s4 + $0xd0] sm:$0xf0]  ;;  %v7732_v29 = vld [vmem:[%s12768_s4 + $0x3b0] sm:$0xf] }
 0x227   :  { %4785 = vmatpush.bf16.msra.mxu1 %v7561_v56  ;;  %v7300_v56 = vld [vmem:[%s12768_s4 + $0x50] sm:$0xf]  ;;  %v8563_v49 = vld [vmem:[%s12768_s4 + $0x3b8] sm:$0xf0] }
 0x228   :  { %4756 = vmatpush.bf16.msra.mxu2 %v7405_v53  ;;  %v7301_v8 = vor.u32 %v8455_v1, %v7300_v56  ;;  %v7361_v56 = vor.u32 %v8470_v28, %v7360_v48  ;;  %v7733_v1 = vor.u32 %v8563_v49, %v7732_v29  ;;  %v8572_v48 = vld [vmem:[%s12768_s4 + $0x400] sm:$0xf0] }
 0x229   :  { %4798 = vmatpush.bf16.msra.mxu3 %v7657_v2  ;;  %v8479_v2 = vld [vmem:[%s12768_s4 + $0x118] sm:$0xf0] }
 0x22a   :  { %4773 = vmatpush.bf16.msra.mxu0 %v7453_v45  ;;  %v12268_v58 = vpop.f32.mrf.mxu0  ;;  %v7397_v7 = vor.u32 %v8479_v2, %v7396_v63  ;;  %v8476_v45 = vld [vmem:[%s12768_s4 + $0x100] sm:$0xf0]  ;;  %v7720_v63 = vld [vmem:[%s12768_s4 + $0x398] sm:$0xf] }
 0x22b   :  { %4786 = vmatpush.bf16.msra.mxu1 %v7549_v42  ;;  %v12273_v25 = vpop.f32.mrf.mxu1  ;;  %v7385_v26 = vor.u32 %v8476_v45, %v7384_v17  ;;  %v3549_v2 = vadd.f32 %v12268_v58, %v585_v41  ;;  %v8584_v58 = vld [vmem:[%s12768_s4 + $0x460] sm:$0xf0]  ;;  %v8557_v17 = vld [vmem:[%s12768_s4 + $0x388] sm:$0xf0]  ;;  %v7468_v45 = vld [vmem:[%s12768_s4 + $0x1a0] sm:$0xf] }
 0x22c   :  { %4757 = vmatpush.bf16.msra.mxu2 %v7393_v14 }
 0x22d   :  { %4799 = vmatpush.bf16.msra.mxu3 %v7645_v4  ;;  %4774 = vmatmul.bf16.vlgmr.msra.gmra.mxu0 %v11877_v18  ;;  %v7381_v4 = vor.u32 %v8474_v31, %v7378_v38  ;;  %v7721_v38 = vor.u32 %v8560_v5, %v7720_v63  ;;  %v3562_v9 = vadd.f32 %v12273_v25, %v3549_v2  ;;  %v7804_v25 = vld [vmem:[%s12768_s4 + $0x440] sm:$0xf]  ;;  %v7822_v63 = vld [vmem:[%s12768_s4 + $0x474] sm:$0xf0] }
 0x22e   :  { %4825 = vmatpush.bf16.msrb.mxu0 %v7837_v54  ;;  %4787 = vmatmul.bf16.vlgmr.msra.gmra.mxu1 %v11879_v44 }
 0x22f   :  { %4831 = vmatpush.bf16.msrb.mxu1 %v7349_v10  ;;  %v7516_v10 = vld [vmem:[%s12768_s4 + $0x200] sm:$0xf] }
 0x230   :  { %4800 = vmatmul.bf16.vlgmr.msra.gmra.mxu3 %v12043_v57  ;;  %4758 = vmatpush.bf16.msra.mxu2 %v7381_v4  ;;  %v8497_v4 = vld [vmem:[%s12768_s4 + $0x1a8] sm:$0xf0] }
 0x231   :  { %4844 = vmatpush.bf16.msrb.mxu3 %v7445_v20  ;;  %v7517_v20 = vor.u32 %v8509_v21, %v7516_v10  ;;  %v8581_v10 = vld [vmem:[%s12768_s4 + $0x448] sm:$0xf0]  ;;  %v7469_v21 = vor.u32 %v8497_v4, %v7468_v45 }
 0x232   :  { %4857 = vmatpush.bf16.msra.mxu0 %v7541_v34  ;;  %v12299_v42 = vpop.f32.mrf.mxu2  ;;  %v3550_v33 = vpop.f32.mrf.mxu0  ;;  %v7828_v34 = vld [vmem:[%s12768_s4 + $0x470] sm:$0xf] }
 0x233   :  { %4832 = vmatpush.bf16.msrb.mxu1 %v7337_v11  ;;  %v12307_v50 = vpop.f32.mrf.mxu3  ;;  %v8449_v11 = vld [vmem:[%s12768_s4 + $0x28] sm:$0xf0]  ;;  %v3563_v36 = vpop.f32.mrf.mxu1  ;;  %v3575_v22 = vadd.f32 %v12299_v42, %v3562_v9  ;;  %v8578_v42 = vld [vmem:[%s12768_s4 + $0x430] sm:$0xf0] }
 0x234   :  { %v7277_v46 = vor.u32 %v8449_v11, %v7276_v15  ;;  %4759 = vmatpush.bf16.msra.mxu2 %v7369_v32  ;;  %v8494_v15 = vld [vmem:[%s12768_s4 + $0x190] sm:$0xf0]  ;;  %v7792_v11 = vld [vmem:[%s12768_s4 + $0x428] sm:$0xf] }
 0x235   :  { %4845 = vmatpush.bf16.msrb.mxu3 %v7433_v35  ;;  %v8473_v35 = vld [vmem:[%s12768_s4 + $0xe8] sm:$0xf0]  ;;  %v7793_v32 = vor.u32 %v8578_v42, %v7792_v11  ;;  %v7774_v42 = vld [vmem:[%s12768_s4 + $0x414] sm:$0xf0] }
 0x236   :  { %4858 = vmatpush.bf16.msra.mxu0 %v7529_v12  ;;  %v7373_v37 = vor.u32 %v8473_v35, %v7372_v30  ;;  %v8500_v12 = vld [vmem:[%s12768_s4 + $0x1c0] sm:$0xf0]  ;;  %v3588_v35 = vadd.f32 %v12307_v50, %v3575_v22  ;;  %v8575_v50 = vld [vmem:[%s12768_s4 + $0x418] sm:$0xf0]  ;;  %v7798_v22 = vld [vmem:[%s12768_s4 + $0x444] sm:$0xf0] }
 0x237   :  { %4833 = vmatpush.bf16.msrb.mxu1 %v7325_v19  ;;  %v7505_v19 = vor.u32 %v8506_v40, %v7504_v39  ;;  %v7481_v31 = vor.u32 %v8500_v12, %v7480_v6  ;;  %v7684_v39 = vld [vmem:[%s12768_s4 + $0x350] sm:$0xf]  ;;  %v8551_v40 = vld [vmem:[%s12768_s4 + $0x358] sm:$0xf0]  ;;  %v8542_v12 = vld [vmem:[%s12768_s4 + $0x310] sm:$0xf0] }
 0x239   :  { %4846 = vmatpush.bf16.msrb.mxu3 %v7421_v47  ;;  %v7354_v47 = vld [vmem:[%s12768_s4 + $0xcc] sm:$0xf0] }
 0x23a   :  { %4859 = vmatpush.bf16.msra.mxu0 %v7517_v20  ;;  %v3576_v53 = vpop.f32.mrf.mxu2  ;;  %v7357_v54 = vor.u32 %v8468_v3, %v7354_v47  ;;  %v7672_v3 = vld [vmem:[%s12768_s4 + $0x338] sm:$0xf]  ;;  %v8548_v47 = vld [vmem:[%s12768_s4 + $0x340] sm:$0xf0] }
 0x23b   :  { %4834 = vmatpush.bf16.msrb.mxu1 %v7313_v59  ;;  %v8587_v59 = vld [vmem:[%s12768_s4 + $0x478] sm:$0xf0]  ;;  %v3589_v60 = vpop.f32.mrf.mxu3  ;;  %v7673_v49 = vor.u32 %v8548_v47, %v7672_v3 }
 0x23c   :  { %v7829_v14 = vor.u32 %v8587_v59, %v7828_v34  ;;  %4760 = vmatpush.bf16.msra.mxu2 %v7357_v54  ;;  %v7660_v34 = vld [vmem:[%s12768_s4 + $0x320] sm:$0xf]  ;;  %v8545_v59 = vld [vmem:[%s12768_s4 + $0x328] sm:$0xf0] }
 0x23d   :  { %4847 = vmatpush.bf16.msrb.mxu3 %v7409_v0  ;;  %v7265_v0 = vor.u32 %v8446_v27, %v7264_v43  ;;  %v7780_v43 = vld [vmem:[%s12768_s4 + $0x410] sm:$0xf]  ;;  %v7661_v2 = vor.u32 %v8545_v59, %v7660_v34 }
 0x23e   :  { %4860 = vmatpush.bf16.msra.mxu0 %v7505_v19  ;;  %v7781_v27 = vor.u32 %v8575_v50, %v7780_v43  ;;  %v8567_v50 = vld [vmem:[%s12768_s4 + $0x3dc] sm:$0xf] }
 0x23f   :  { %4835 = vmatpush.bf16.msrb.mxu1 %v7301_v8  ;;  %v7816_v8 = vld [vmem:[%s12768_s4 + $0x458] sm:$0xf] }
 0x240   :  { %v7817_v61 = vor.u32 %v8584_v58, %v7816_v8  ;;  %v7744_v8 = vld [vmem:[%s12768_s4 + $0x3c8] sm:$0xf] }
 0x241   :  { %4848 = vmatpush.bf16.msrb.mxu3 %v7397_v7  ;;  %v7708_v7 = vld [vmem:[%s12768_s4 + $0x380] sm:$0xf] }
 0x242   :  { %4861 = vmatpush.bf16.msra.mxu0 %v7493_v62  ;;  %v7709_v20 = vor.u32 %v8557_v17, %v7708_v7  ;;  %v7756_v62 = vld [vmem:[%s12768_s4 + $0x3e0] sm:$0xf]  ;;  %v8590_v7 = vld [vmem:[%s12768_s4 + $0x490] sm:$0xf0] }
 0x243   :  { %4836 = vmatpush.bf16.msrb.mxu1 %v7289_v23  ;;  %v7696_v23 = vld [vmem:[%s12768_s4 + $0x368] sm:$0xf]  ;;  %v7810_v17 = vld [vmem:[%s12768_s4 + $0x45c] sm:$0xf0] }
 0x244   :  { %v7697_v33 = vor.u32 %v8554_v24, %v7696_v23  ;;  %v8579_v23 = vld [vmem:[%s12768_s4 + $0x43c] sm:$0xf]  ;;  %v8576_v24 = vld [vmem:[%s12768_s4 + $0x424] sm:$0xf] }
 0x245   :  { %4849 = vmatpush.bf16.msrb.mxu3 %v7385_v26  ;;  %v7456_v26 = vld [vmem:[%s12768_s4 + $0x188] sm:$0xf] }
 0x246   :  { %4862 = vmatpush.bf16.msra.mxu0 %v7481_v31  ;;  %v7457_v30 = vor.u32 %v8494_v15, %v7456_v26  ;;  %v8566_v31 = vld [vmem:[%s12768_s4 + $0x3d0] sm:$0xf0]  ;;  %v7786_v26 = vld [vmem:[%s12768_s4 + $0x42c] sm:$0xf0]  ;;  %v12519_v15 = vld [vmem:[%s12769_s5] sm:$0x7] }
 0x247   :  { %4837 = vmatpush.bf16.msrb.mxu1 %v7277_v46  ;;  %v7685_v46 = vor.u32 %v8551_v40, %v7684_v39  ;;  %v7789_v11 = vor.u32 %v8576_v24, %v7786_v26  ;;  %v7762_v39 = vld [vmem:[%s12768_s4 + $0x3fc] sm:$0xf0]  ;;  %v8597_v24 = vld [vmem:[%s12770_s6 + $0x30] sm:$0xff] }
 0x249   :  { %4850 = vmatpush.bf16.msrb.mxu3 %v7373_v37  ;;  %v7768_v37 = vld [vmem:[%s12768_s4 + $0x3f8] sm:$0xf] }
 0x24a   :  { %4863 = vmatpush.bf16.msra.mxu0 %v7469_v21  ;;  %v3600_v36 = vpop.f32.mrf.mxu0  ;;  %v7769_v52 = vor.u32 %v8572_v48, %v7768_v37  ;;  %v7745_v21 = vor.u32 %v8566_v31, %v7744_v8  ;;  %v7738_v48 = vld [vmem:[%s12768_s4 + $0x3cc] sm:$0xf0]  ;;  %v8524_v8 = vld [vmem:[%s12768_s4 + $0x280] sm:$0xf0] }
 0x24b   :  { %4838 = vmatpush.bf16.msrb.mxu1 %v7265_v0  ;;  %v3613_v41 = vpop.f32.mrf.mxu1  ;;  %v3601_v19 = vadd.f32 %v3600_v36, %v3588_v35  ;;  %v8569_v0 = vld [vmem:[%s12768_s4 + $0x3e8] sm:$0xf0] }
 0x24c   :  { %v7757_v6 = vor.u32 %v8569_v0, %v7756_v62  ;;  %v7612_v62 = vld [vmem:[%s12768_s4 + $0x2c0] sm:$0xf]  ;;  %v8533_v0 = vld [vmem:[%s12768_s4 + $0x2c8] sm:$0xf0] }
 0x24d   :  { %4851 = vmatpush.bf16.msrb.mxu3 %v7361_v56  ;;  %v3614_v28 = vadd.f32 %v3613_v41, %v3601_v19  ;;  %v7750_v19 = vld [vmem:[%s12768_s4 + $0x3e4] sm:$0xf0] }
 0x24e   :  { %4839 = vmatmul.bf16.vlgmr.msrb.gmra.mxu1 %v11873_v13  ;;  %v7805_v13 = vor.u32 %v8581_v10, %v7804_v25  ;;  %4864 = vmatpush.bf16.msra.mxu0 %v7457_v30  ;;  %v3855_v30 = vperm.slane %v12519_v15, 0  ;;  %v7753_v3 = vor.u32 %v8567_v50, %v7750_v19  ;;  %v8606_v19 = vld [vmem:[%s12770_s6 + $0x78] sm:$0xff] }
 0x24f   :  { %4883 = vmatpush.bf16.msra.mxu1 %v7733_v1  ;;  %v8585_v1 = vld [vmem:[%s12768_s4 + $0x46c] sm:$0xf] }
 0x250   :  { %4852 = vmatmul.bf16.vlgmr.msrb.gmra.mxu3 %v11875_v16  ;;  %v7825_v58 = vor.u32 %v8585_v1, %v7822_v63  ;;  %v7600_v1 = vld [vmem:[%s12768_s4 + $0x2a8] sm:$0xf]  ;;  %v8530_v63 = vld [vmem:[%s12768_s4 + $0x2b0] sm:$0xf0] }
 0x251   :  { %4896 = vmatpush.bf16.msra.mxu3 %v7829_v14  ;;  %v7648_v14 = vld [vmem:[%s12768_s4 + $0x308] sm:$0xf] }
 0x252   :  { %v3626_v29 = vpop.f32.mrf.mxu2  ;;  %v3602_v51 = vpop.f32.mrf.mxu0  ;;  %v7649_v25 = vor.u32 %v8542_v12, %v7648_v14  ;;  %v7588_v14 = vld [vmem:[%s12768_s4 + $0x290] sm:$0xf]  ;;  %v7576_v12 = vld [vmem:[%s12768_s4 + $0x278] sm:$0xf] }
 0x253   :  { %4884 = vmatpush.bf16.msra.mxu1 %v7721_v38  ;;  %v3627_v53 = vadd.f32 %v3626_v29, %v3614_v28  ;;  %v3639_v54 = vpop.f32.mrf.mxu3  ;;  %v3615_v60 = vpop.f32.mrf.mxu1  ;;  %v7840_v38 = vld [vmem:[%s12768_s4 + $0x488] sm:$0xf]  ;;  %v7636_v28 = vld [vmem:[%s12768_s4 + $0x2f0] sm:$0xf]  ;;  %v8539_v29 = vld [vmem:[%s12768_s4 + $0x2f8] sm:$0xf0]  ;;  %v7577_v31 = vor.u32 %v8524_v8, %v7576_v12 }
 0x254   :  { %v7841_v45 = vor.u32 %v8590_v7, %v7840_v38  ;;  %v7624_v51 = vld [vmem:[%s12768_s4 + $0x2d8] sm:$0xf]  ;;  %v7564_v38 = vld [vmem:[%s12768_s4 + $0x260] sm:$0xf]  ;;  %v8521_v7 = vld [vmem:[%s12768_s4 + $0x268] sm:$0xf0] }
 0x255   :  { %4897 = vmatpush.bf16.msra.mxu3 %v7817_v61  ;;  %v3640_v56 = vadd.f32 %v3639_v54, %v3627_v53  ;;  %v8582_v61 = vld [vmem:[%s12768_s4 + $0x454] sm:$0xf]  ;;  %v7637_v54 = vor.u32 %v8539_v29, %v7636_v28 }
 0x256   :  { %v8601_v28 = vld [vmem:[%s12770_s6 + $0x50] sm:$0xff] }
 0x257   :  { %4885 = vmatpush.bf16.msra.mxu1 %v7709_v20  ;;  %v3649_v5 = vmax.f32 %v3640_v56, 0.0  ;;  %v7813_v20 = vor.u32 %v8582_v61, %v7810_v17  ;;  %v7613_v56 = vor.u32 %v8533_v0, %v7612_v62  ;;  %v7565_v61 = vor.u32 %v8521_v7, %v7564_v38 }
 0x259   :  { %4898 = vmatpush.bf16.msra.mxu3 %v7805_v13  ;;  %v12490_v9 = vpack.c.bf16 %v3649_v5, %v3649_v5  ;;  %v7801_v13 = vor.u32 %v8579_v23, %v7798_v22 }
 0x25a   :  { %v3628_v4 = vpop.f32.mrf.mxu2 }
 0x25b   :  { %4886 = vmatpush.bf16.msra.mxu1 %v7697_v33  ;;  %v3641_v10 = vpop.f32.mrf.mxu3  ;;  %7842 = vmatmul.msk.bf16.vlgmr.msrb.gmra.mxu2 %vm4645_vm0, %v12490_v9  ;;  %v8518_v4 = vld [vmem:[%s12768_s4 + $0x250] sm:$0xf0] }
 0x25c   :  { %4805 = vmatpush.bf16.msrb.mxu2 %v7825_v58  ;;  %7843 = vmatmul.msk.bf16.vlgmr.msrb.gmra.mxu0 %vm4645_vm0, %v12490_v9 }
 0x25d   :  { %4899 = vmatpush.bf16.msra.mxu3 %v7793_v32  ;;  %4916 = vmatpush.bf16.msrb.mxu0 %v7841_v45  ;;  %v8570_v32 = vld [vmem:[%s12768_s4 + $0x3f4] sm:$0xf]  ;;  %v7552_v45 = vld [vmem:[%s12768_s4 + $0x248] sm:$0xf] }
 0x25e   :  { %v7765_v43 = vor.u32 %v8570_v32, %v7762_v39  ;;  %v8592_v32 = vld [vmem:[%s12770_s6 + $0x8] sm:$0xff] }
 0x25f   :  { %4887 = vmatpush.bf16.msra.mxu1 %v7685_v46 }
 0x260   :  { %4806 = vmatpush.bf16.msrb.mxu2 %v7813_v20 }
 0x261   :  { %4900 = vmatpush.bf16.msra.mxu3 %v7781_v27 }
 0x263   :  { %4888 = vmatpush.bf16.msra.mxu1 %v7673_v49 }
 0x264   :  { %4807 = vmatpush.bf16.msrb.mxu2 %v7801_v13  ;;  %v8598_v13 = vld [vmem:[%s12770_s6 + $0x38] sm:$0xff] }
 0x265   :  { %4901 = vmatpush.bf16.msra.mxu3 %v7769_v52  ;;  %v8536_v52 = vld [vmem:[%s12768_s4 + $0x2e0] sm:$0xf0] }
 0x266   :  { %v7625_v60 = vor.u32 %v8536_v52, %v7624_v51 }
 0x267   :  { %4889 = vmatpush.bf16.msra.mxu1 %v7661_v2  ;;  %v7601_v2 = vor.u32 %v8530_v63, %v7600_v1  ;;  %v3856_v1 = vperm.slane %v12519_v15, 1 }
 0x268   :  { %4808 = vmatpush.bf16.msrb.mxu2 %v7789_v11 }
 0x269   :  { %4902 = vmatpush.bf16.msra.mxu3 %v7757_v6 }
 0x26a   :  { %v4658_v35 = vpop.f32.mrf.mxu0 }
 0x26b   :  { %4890 = vmatpush.bf16.msra.mxu1 %v7649_v25  ;;  %v4671_v36 = vpop.f32.mrf.mxu1  ;;  %v4659_v40 = vadd.f32 %v4658_v35, %v3855_v30  ;;  %4761 = vmatmul.bf16.vlgmr.msra.gmra.mxu2 %v11875_v16  ;;  %v7553_v25 = vor.u32 %v8518_v4, %v7552_v45  ;;  %v8594_v35 = vld [vmem:[%s12770_s6 + $0x18] sm:$0xff] }
 0x26c   :  { %4865 = vmatmul.bf16.vlgmr.msra.gmra.mxu0 %v11877_v18  ;;  %v8564_v18 = vld [vmem:[%s12768_s4 + $0x3c4] sm:$0xf] }
 0x26d   :  { %4903 = vmatpush.bf16.msra.mxu3 %v7745_v21  ;;  %v4672_v41 = vadd.f32 %v4671_v36, %v4659_v40  ;;  %v7741_v53 = vor.u32 %v8564_v18, %v7738_v48  ;;  %v8593_v36 = vld [vmem:[%s12770_s6 + $0x10] sm:$0xff]  ;;  %v8591_v40 = vld [vmem:[%s12770_s6] sm:$0xff]  ;;  %5093 = vmatpush.bf16.msra.mxu0 %v8606_v19  ;;  %v8602_v18 = vld [vmem:[%s12770_s6 + $0x58] sm:$0xff] }
 0x26e   :  { %4891 = vmatmul.bf16.vlgmr.msra.gmra.mxu1 %v12043_v57  ;;  %v8573_v57 = vld [vmem:[%s12768_s4 + $0x40c] sm:$0xf] }
 0x26f   :  { %v7777_v33 = vor.u32 %v8573_v57, %v7774_v42  ;;  %v8595_v42 = vld [vmem:[%s12770_s6 + $0x20] sm:$0xff] }
 0x270   :  { %4904 = vmatmul.bf16.vlgmr.msra.gmra.mxu3 %v12148_v55 }
 0x271   :  { %4809 = vmatpush.bf16.msrb.mxu2 %v7777_v33 }
 0x272   :  { %v4684_v46 = vpop.f32.mrf.mxu2  ;;  %v4660_v37 = vpop.f32.mrf.mxu0 }
 0x273   :  { %v4697_v27 = vpop.f32.mrf.mxu3  ;;  %v4685_v47 = vadd.f32 %v4684_v46, %v4672_v41  ;;  %v4673_v16 = vpop.f32.mrf.mxu1  ;;  %v3857_v41 = vperm.slane %v12519_v15, 2  ;;  %v8604_v37 = vld [vmem:[%s12770_s6 + $0x68] sm:$0xff] }
 0x274   :  { %v8603_v16 = vld [vmem:[%s12770_s6 + $0x60] sm:$0xff] }
 0x275   :  { %4810 = vmatpush.bf16.msrb.mxu2 %v7765_v43  ;;  %v4698_v49 = vadd.f32 %v4697_v27, %v4685_v47 }
 0x279   :  { %4811 = vmatpush.bf16.msrb.mxu2 %v7753_v3  ;;  %v8605_v3 = vld [vmem:[%s12770_s6 + $0x70] sm:$0xff] }
 0x27a   :  { %v4686_v34 = vpop.f32.mrf.mxu2  ;;  %5094 = vmatpush.bf16.msra.mxu0 %v8605_v3 }
 0x27b   :  { %v4699_v59 = vpop.f32.mrf.mxu3 }
 0x27c   :  { %7844 = vmatmul.msk.bf16.vlgmr.msrb.gmra.mxu0 %vm4645_vm0, %v12490_v9  ;;  %v8599_v59 = vld [vmem:[%s12770_s6 + $0x40] sm:$0xff] }
 0x27d   :  { %4812 = vmatpush.bf16.msrb.mxu2 %v7741_v53 }
 0x27e   :  { %5095 = vmatpush.bf16.msra.mxu0 %v8604_v37 }
 0x280   :  { %4813 = vmatmul.bf16.vlgmr.msrb.gmra.mxu2 %v12148_v55  ;;  %v8527_v55 = vld [vmem:[%s12768_s4 + $0x298] sm:$0xf0] }
 0x281   :  { %4870 = vmatpush.bf16.msra.mxu2 %v7637_v54  ;;  %v7589_v5 = vor.u32 %v8527_v55, %v7588_v14  ;;  %v8600_v54 = vld [vmem:[%s12770_s6 + $0x48] sm:$0xff] }
 0x282   :  { %5096 = vmatpush.bf16.msra.mxu0 %v8603_v16 }
 0x285   :  { %4871 = vmatpush.bf16.msra.mxu2 %v7625_v60 }
 0x286   :  { %5097 = vmatpush.bf16.msra.mxu0 %v8602_v18  ;;  %v8616_v18 = vld [vmem:[%s12775_s11 + $0x18] sm:$0xff] }
 0x289   :  { %4872 = vmatpush.bf16.msra.mxu2 %v7613_v56  ;;  %v8608_v56 = vld [vmem:[%s12770_s6 + $0x88] sm:$0xff] }
 0x28a   :  { %v4710_v6 = vpop.f32.mrf.mxu0  ;;  %5098 = vmatpush.bf16.msra.mxu0 %v8601_v28  ;;  %5112 = vmatpush.bf16.msrb.mxu1 %v8608_v56 }
 0x28b   :  { %v4711_v58 = vadd.f32 %v4710_v6, %v4698_v49 }
 0x28d   :  { %4873 = vmatpush.bf16.msra.mxu2 %v7601_v2 }
 0x28e   :  { %5099 = vmatpush.bf16.msra.mxu0 %v8600_v54  ;;  %v8633_v54 = vld [vmem:[%s12774_s10] ss:$0 sm:$0xff]  ;;  %s5453_s10 = sshll.u32 %s12783_s19, 4  ;;  %s5454_s10 = int_to_ptr.hbm [resolvable:$true] %s5453_s10 }
 0x291   :  { %4874 = vmatpush.bf16.msra.mxu2 %v7589_v5 }
 0x292   :  { %v4712_v17 = vpop.f32.mrf.mxu0  ;;  %5100 = vmatpush.bf16.msra.mxu0 %v8599_v59 }
 0x293   :  { %v12593_v9 = vpop.f32.mrf.mxu3 }
 0x294   :  { %v4750_v2 = vadd.f32 %v12593_v9, %v3856_v1  ;;  %v8607_v9 = vld [vmem:[%s12770_s6 + $0x80] sm:$0xff] }
 0x295   :  { %4875 = vmatpush.bf16.msra.mxu2 %v7577_v31  ;;  %5113 = vmatpush.bf16.msrb.mxu1 %v8607_v9  ;;  %v8634_v1 = vld [vmem:[%s12776_s12] ss:$0 sm:$0xff] }
 0x299   :  { %4876 = vmatpush.bf16.msra.mxu2 %v7565_v61  ;;  %v4723_v21 = vpop.f32.mrf.mxu1 }
 0x29a   :  { %v4724_v20 = vadd.f32 %v4723_v21, %v4711_v58 }
 0x29b   :  { %v4751_v10 = vpop.f32.mrf.mxu3 }
 0x29d   :  { %4877 = vmatpush.bf16.msra.mxu2 %v7553_v25 }
 0x2a0   :  { %4878 = vmatmul.bf16.vlgmr.msra.gmra.mxu2 %v11879_v44  ;;  %v8596_v44 = vld [vmem:[%s12770_s6 + $0x28] sm:$0xff] }
 0x2a1   :  { %v4725_v23 = vpop.f32.mrf.mxu1  ;;  %5080 = vmatpush.bf16.msrb.mxu2 %v8598_v13 }
 0x2a5   :  { %5081 = vmatpush.bf16.msrb.mxu2 %v8597_v24 }
 0x2a9   :  { %5082 = vmatpush.bf16.msrb.mxu2 %v8596_v44  ;;  %v8612_v44 = vld [vmem:[%s12773_s9 + $0x18] sm:$0xff] }
 0x2aa   :  { %v12602_v22 = vpop.f32.mrf.mxu0  ;;  %5164 = vmatpush.bf16.msrb.mxu3 %v8612_v44 }
 0x2ab   :  { %v4788_v11 = vpop.f32.mrf.mxu1 }
 0x2ad   :  { %5083 = vmatpush.bf16.msrb.mxu2 %v8595_v42  ;;  %v5122_v42 = vld [vmem:[%s12772_s8] sm:$0xf] }
 0x2b1   :  { %5084 = vmatpush.bf16.msrb.mxu2 %v8594_v35 }
 0x2b2   :  { %v4777_v57 = vpop.f32.mrf.mxu0 }
 0x2b3   :  { %v12610_v26 = vpop.f32.mrf.mxu3  ;;  %v4790_v33 = vpop.f32.mrf.mxu1 }
 0x2b4   :  { %v8611_v33 = vld [vmem:[%s12773_s9 + $0x10] sm:$0xff] }
 0x2b5   :  { %5085 = vmatpush.bf16.msrb.mxu2 %v8593_v36  ;;  %5165 = vmatpush.bf16.msrb.mxu3 %v8611_v33  ;;  %v8610_v36 = vld [vmem:[%s12773_s9 + $0x8] sm:$0xff] }
 0x2b6   :  { %v8624_v33 = vld [vmem:[%s12781_s17 + $0x8] sm:$0xff] }
 0x2b9   :  { %5086 = vmatpush.bf16.msrb.mxu2 %v8592_v32  ;;  %5166 = vmatpush.bf16.msrb.mxu3 %v8610_v36 }
 0x2bb   :  { %v4803_v30 = vpop.f32.mrf.mxu3 }
 0x2bc   :  { %v5179_v30 = vsel %vm5177_vm2, %v5122_v42, 0  ;;  %v8626_v42 = vld [vmem:[%s12781_s17 + $0x18] sm:$0xff] }
 0x2bd   :  { %5087 = vmatpush.bf16.msrb.mxu2 %v8591_v40  ;;  %5188 = vmatpush.bf16.msra.mxu1 %v5179_v30  ;;  %v5120_v40 = vld [vmem:[%s12793_s28] sm:$0x3]  ;;  %v8625_v30 = vld [vmem:[%s12781_s17 + $0x10] sm:$0xff] }
 0x2c1   :  { %5244 = vmatpush.bf16.msra.mxu2 %v8616_v18 }
 0x2cb   :  { %v4840_v39 = vpop.f32.mrf.mxu1 }
 0x2cc   :  { %v4841_v43 = vadd.f32 %v4840_v39, %v3857_v41  ;;  %v8609_v39 = vld [vmem:[%s12773_s9] sm:$0xff]  ;;  %v5121_v41 = vpack.c.bf16 %v5120_v40, %v5120_v40 }
 0x2cd   :  { %5167 = vmatpush.bf16.msrb.mxu3 %v8609_v39 }
 0x2d3   :  { %v4853_v50 = vpop.f32.mrf.mxu3  ;;  %v4842_v27 = vpop.f32.mrf.mxu1 }
 0x2d4   :  { %v4854_v46 = vadd.f32 %v4853_v50, %v4841_v43  ;;  %v8632_v50 = vld [vmem:[%s12771_s7] ss:$0 sm:$0xff] }
 0x2d9   :  { %v4827_v48 = vpop.f32.mrf.mxu0 }
 0x2db   :  { %v4855_v47 = vpop.f32.mrf.mxu3 }
 0x2de   :  { %v4736_v49 = vpop.f32.mrf.mxu2 }
 0x2df   :  { %v4737_v53 = vadd.f32 %v4736_v49, %v4724_v20  ;;  %v8614_v49 = vld [vmem:[%s12775_s11 + $0x8] sm:$0xff] }
 0x2e1   :  { %v4922_v51 = vmax.f32 %v4737_v53, 0.0  ;;  %v4829_v52 = vpop.f32.mrf.mxu0  ;;  %v8613_v53 = vld [vmem:[%s12775_s11] sm:$0xff] }
 0x2e3   :  { %v4925_v34 = vpack.c.bf16 %v4922_v51, %v4922_v51 }
 0x2e5   :  { %5088 = vmatmul.bf16.vlgmr.msrb.gmra.mxu2 %v4925_v34 }
 0x2e6   :  { %v4738_v0 = vpop.f32.mrf.mxu2 }
 0x2e7   :  { %v5253_v0 = vlaneseq }
 0x2e9   :  { %v4866_v63 = vpop.f32.mrf.mxu0  ;;  %v5254_v56 = vand.u32 127, %v5253_v0 }
 0x2ea   :  { %v4867_v10 = vadd.f32 %v4866_v63, %v4854_v46 }
 0x2eb   :  { %v4892_v29 = vpop.f32.mrf.mxu1  ;;  %vm5255_vm5 = vcmp.lt.s32.totalorder %v5254_v56, 32 }
 0x2ee   :  { %v4762_v55 = vpop.f32.mrf.mxu2 }
 0x2ef   :  { %v4763_v5 = vadd.f32 %v4762_v55, %v4750_v2 }
 0x2f1   :  { %v4776_v6 = vadd.f32 %v12602_v22, %v4763_v5  ;;  %v4868_v12 = vpop.f32.mrf.mxu0 }
 0x2f3   :  { %v4905_v60 = vpop.f32.mrf.mxu3  ;;  %v4894_v62 = vpop.f32.mrf.mxu1  ;;  %v4789_v8 = vadd.f32 %v4788_v11, %v4776_v6 }
 0x2f5   :  { %v4802_v38 = vadd.f32 %v12610_v26, %v4789_v8 }
 0x2f6   :  { %v4764_v58 = vpop.f32.mrf.mxu2 }
 0x2f9   :  { %v4918_v31 = vpop.f32.mrf.mxu0 }
 0x2fb   :  { %v4907_v14 = vpop.f32.mrf.mxu3 }
 0x301   :  { %v4920_v45 = vpop.f32.mrf.mxu0 }
 0x303   :  { %v4814_v7 = vpop.f32.mrf.mxu2 }
 0x304   :  { %v4815_v61 = vadd.f32 %v4814_v7, %v4802_v38 }
 0x306   :  { %v4828_v17 = vadd.f32 %v4827_v48, %v4815_v61  ;;  %v8615_v48 = vld [vmem:[%s12775_s11 + $0x10] sm:$0xff] }
 0x307   :  { %5245 = vmatpush.bf16.msra.mxu2 %v8615_v48 }
 0x308   :  { %v4923_v15 = vmax.f32 %v4828_v17, 0.0 }
 0x30a   :  { %v4926_v4 = vpack.c.bf16 %v4923_v15, %v4923_v15 }
 0x30b   :  { %v4816_v25 = vpop.f32.mrf.mxu2  ;;  %5246 = vmatpush.bf16.msra.mxu2 %v8614_v49  ;;  %v8693_v49 = vmov 4.0  }
 0x30c   :  { %5101 = vmatmul.bf16.vlgmr.msra.gmra.mxu0 %v4926_v4  ;;  %v8620_v4 = vld [vmem:[%s12777_s13 + $0x18] sm:$0xff]  ;;  %v8619_v25 = vld [vmem:[%s12777_s13 + $0x10] sm:$0xff] }
 0x30d   :  { %5325 = vmatpush.bf16.msra.mxu3 %v8620_v4 }
 0x30f   :  { %5247 = vmatpush.bf16.msra.mxu2 %v8613_v53 }
 0x311   :  { %5326 = vmatpush.bf16.msra.mxu3 %v8619_v25 }
 0x323   :  { %v4879_v21 = vpop.f32.mrf.mxu2 }
 0x324   :  { %v4880_v20 = vadd.f32 %v4879_v21, %v4867_v10  ;;  %v8618_v10 = vld [vmem:[%s12777_s13 + $0x8] sm:$0xff]  ;;  %v8617_v21 = vld [vmem:[%s12777_s13] sm:$0xff] }
 0x325   :  { %5327 = vmatpush.bf16.msra.mxu3 %v8618_v10 }
 0x326   :  { %v4893_v23 = vadd.f32 %v4892_v29, %v4880_v20  ;;  %v8622_v20 = vld [vmem:[%s12779_s15 + $0x8] sm:$0xff] }
 0x327   :  { %5365 = vmatpush.bf16.msrb.mxu0 %v8622_v20 }
 0x328   :  { %v4906_v22 = vadd.f32 %v4905_v60, %v4893_v23  ;;  %v8621_v23 = vld [vmem:[%s12779_s15] sm:$0xff] }
 0x329   :  { %5328 = vmatpush.bf16.msra.mxu3 %v8617_v21 }
 0x32a   :  { %v4919_v13 = vadd.f32 %v4918_v31, %v4906_v22 }
 0x32b   :  { %v4881_v24 = vpop.f32.mrf.mxu2  ;;  %5366 = vmatpush.bf16.msrb.mxu0 %v8621_v23 }
 0x32c   :  { %v4924_v26 = vmax.f32 %v4919_v13, 0.0 }
 0x32e   :  { %v4927_v11 = vpack.c.bf16 %v4924_v26, %v4924_v26 }
 0x330   :  { %7917 = vmatmul.msk.bf16.vlgmr.msrb.gmra.mxu1 %vm5076_vm1, %v4927_v11 }
 0x331   :  { %5417 = vmatpush.bf16.msrb.mxu1 %v8626_v42 }
 0x335   :  { %5418 = vmatpush.bf16.msrb.mxu1 %v8625_v30 }
 0x339   :  { %5419 = vmatpush.bf16.msrb.mxu1 %v8624_v33 }
 0x340   :  { %7935 = vmatmul.msk.bf16.vlgmr.msra.gmra.mxu1 %vm5173_vm3, %v5121_v41 }
 0x368   :  { %v5089_v57 = vpop.f32.mrf.mxu2 }
 0x369   :  { %v5090_v19 = vadd.f32 %v8632_v50, %v5089_v57  ;;  %v8636_v50 = vld [vmem:[%s12780_s16] ss:$0 sm:$0xff]  ;;  %s8694_s16 = smov [#allocation2]  }
 0x370   :  { %v5091_v35 = vpop.f32.mrf.mxu2 }
 0x371   :  { %v8635_v35 = vld [vmem:[%s12778_s14] ss:$0 sm:$0xff] }
 0x389   :  { %v5102_v32 = vpop.f32.mrf.mxu0 }
 0x38a   :  { %v5103_v46 = vadd.f32 %v5102_v32, %v5090_v19 }
 0x391   :  { %v5104_v43 = vpop.f32.mrf.mxu0 }
 0x392   :  { %v8623_v43 = vld [vmem:[%s12781_s17] sm:$0xff]  ;;  %s5451_s17 = sshll.u32 %s8694_s16, 4  ;;  %s5452_s17 = int_to_ptr.vmem [resolvable:$true] %s5451_s17 }
 0x393   :  { %5420 = vmatpush.bf16.msrb.mxu1 %v8623_v43 }
 0x3ad   :  { %v5115_v27 = vpop.f32.mrf.mxu1 }
 0x3ae   :  { %v5116_v3 = vadd.f32 %v5115_v27, %v5103_v46 }
 0x3b0   :  { %v5119_v47 = vmax.f32 %v5116_v3, 0.0 }
 0x3b2   :  { %v5123_v37 = vpack.c.bf16 %v5119_v47, %v5119_v47 }
 0x3b4   :  { %7934 = vmatmul.msk.bf16.vlgmr.msrb.gmra.mxu3 %vm5156_vm4, %v5123_v37  ;;  %v8692_v37 = vmov 4  }
 0x3b5   :  { %v5117_v16 = vpop.f32.mrf.mxu1  ;;  %8630 = vset.pattern.permute.xlu2 %v8692_v37  ;;  %8631 = vset.pattern.permute.xlu0 %v8692_v37 }
 0x3b6   :  { %v8637_v16 = vld [vmem:[%s12782_s18] ss:$0 sm:$0xff] }
 0x3bd   :  { %v5190_v28 = vpop.f32.mrf.mxu1 }
 0x3c5   :  { %v5192_v29 = vpop.f32.mrf.mxu1 }
 0x437   :  { %v5169_v51 = vpop.f32.mrf.mxu3 }
 0x438   :  { %v5191_v52 = vadd.f32 %v5190_v28, %v5169_v51 }
 0x43a   :  { %v5198_v34 = vadd.f32 %v8633_v54, %v5191_v52 }
 0x43c   :  { %v5199_v59 = vmax.f32 %v5198_v34, 0.0 }
 0x43e   :  { %v5200_v60 = vpack.c.bf16 %v5199_v59, %v5199_v59 }
 0x43f   :  { %v5171_v62 = vpop.f32.mrf.mxu3 }
 0x440   :  { %7952 = vmatmul.msk.bf16.vlgmr.msra.gmra.mxu2 %vm5156_vm4, %v5200_v60 }
 0x4c3   :  { %v5249_v63 = vpop.f32.mrf.mxu2 }
 0x4c4   :  { %v5250_v2 = vadd.f32 %v8634_v1, %v5249_v63 }
 0x4c6   :  { %v5256_v14 = vsel %vm5255_vm5, %v5250_v2, -1e+30  ;;  %v5261_v6 = vsel %vm5255_vm5, -1e+30, %v5250_v2 }
 0x4c7   :  { %v5258_v55 = vsel %vm5257_vm6, %v5256_v14, -inf  ;;  %v5262_v12 = vsel %vm5257_vm6, %v5261_v6, -inf }
 0x4c8   :  { %5259 = vmax.xlane.f32.xlu0 %v5258_v55 }
 0x4cb   :  { %v5251_v5 = vpop.f32.mrf.mxu2 }
 0x4d0   :  { %5263 = vmax.xlane.f32.xlu0 %v5262_v12 }
 0x53b   :  { %v5260_v8 = vpop.xlane.xlu0 %5259 }
 0x543   :  { %v5264_v58 = vpop.xlane.xlu0 %5263 }
 0x544   :  { %v5265_v31 = vsel %vm5255_vm5, %v5260_v8, %v5264_v58 }
 0x545   :  { %v5266_v38 = vsub.f32 %v5250_v2, %v5265_v31 }
 0x547   :  { %v5267_v7 = vmul.f32 1.442695, %v5266_v38 }
 0x549   :  { %8638 = vpow2.f32 %v5267_v7 }
 0x54f   :  { %v8639_v61 = vpop.eup %8638 }
 0x550   :  { %v5269_v17 = vsel %vm5255_vm5, %v8639_v61, 0.0  ;;  %v5273_v15 = vsel %vm5255_vm5, 0.0, %v8639_v61 }
 0x551   :  { %v5270_v45 = vsel %vm5257_vm6, %v5269_v17, 0.0  ;;  %v5274_v9 = vsel %vm5257_vm6, %v5273_v15, 0.0 }
 0x552   :  { %5271 = vadd.xlane.f32.xlu1 %v5270_v45 }
 0x55a   :  { %5275 = vadd.xlane.f32.xlu1 %v5274_v9 }
 0x5c5   :  { %v5272_v22 = vpop.xlane.xlu1 %5271 }
 0x5cd   :  { %v5276_v13 = vpop.xlane.xlu1 %5275 }
 0x5ce   :  { %v5277_v24 = vsel %vm5255_vm5, %v5272_v22, %v5276_v13 }
 0x5cf   :  { %8640 = vrcp.f32 %v5277_v24 }
 0x5d0   :  { %8642 = vrcp.f32 %v8693_v49 }
 0x5d5   :  { %v8641_v26 = vpop.eup %8640 }
 0x5d6   :  { %v5279_v11 = vmul.f32 %v8641_v26, %v8639_v61  ;;  %v8643_v53 = vpop.eup %8642 }
 0x5d7   :  { %v5437_v54 = vmul.f32 4.0, %v8643_v53  ;;  %vm5441_vm8 = vweird.f32 %v8643_v53 }
 0x5d8   :  { %v5280_v57 = vmul.f32 %v5279_v11, %v5199_v59 }
 0x5d9   :  { %v5438_v51 = vsub.f32 1.0, %v5437_v54 }
 0x5da   :  { %v5281_v44 = vpack.c.bf16 %v5280_v57, %v5280_v57 }
 0x5db   :  { %v5439_v52 = vmul.f32 %v8643_v53, %v5438_v51 }
 0x5dc   :  { %7969 = vmatmul.msk.bf16.vlgmr.msra.gmra.mxu3 %vm5156_vm4, %v5281_v44 }
 0x5dd   :  { %v5440_v59 = vadd.f32 %v8643_v53, %v5439_v52 }
 0x5df   :  { %v5442_v60 = vsel %vm5441_vm8, %v8643_v53, %v5440_v59 }
 0x65f   :  { %v5330_v36 = vpop.f32.mrf.mxu3 }
 0x660   :  { %v5331_v32 = vadd.f32 %v8635_v35, %v5330_v36 }
 0x662   :  { %v5334_v39 = vmax.f32 %v5331_v32, 0.0 }
 0x664   :  { %v5335_v40 = vpack.c.bf16 %v5334_v39, %v5334_v39 }
 0x666   :  { %7978 = vmatmul.msk.bf16.vlgmr.msrb.gmra.mxu0 %vm5076_vm1, %v5335_v40 }
 0x667   :  { %v5332_v41 = vpop.f32.mrf.mxu3 }
 0x6e3   :  { %v5368_v19 = vpop.f32.mrf.mxu0 }
 0x6e4   :  { %v5369_v46 = vadd.f32 %v8636_v50, %v5368_v19 }
 0x6e6   :  { %v5372_v27 = vmax.f32 %v5369_v46, 0.0 }
 0x6e8   :  { %v5373_v3 = vpack.c.bf16 %v5372_v27, %v5372_v27 }
 0x6ea   :  { %7995 = vmatmul.msk.bf16.vlgmr.msrb.gmra.mxu1 %vm5156_vm4, %v5373_v3 }
 0x6eb   :  { %v5370_v47 = vpop.f32.mrf.mxu0 }
 0x767   :  { %v5422_v18 = vpop.f32.mrf.mxu1 }
 0x768   :  { %v5423_v48 = vadd.f32 %v8637_v16, %v5422_v18 }
 0x76a   :  { %v5433_v28 = vsel %vm5432_vm7, %v5423_v48, 0.0 }
 0x76b   :  { %5434 = vadd.xlane.f32.xlu2 %v5433_v28 }
 0x76f   :  { %v5424_v29 = vpop.f32.mrf.mxu1 }
 0x783   :  { %5428 = vperm.xlu2 %8630, %v5423_v48  }
 0x7de   :  { %v5435_v34 = vpop.xlane.xlu2 %5434 }
 0x7df   :  { %v5443_v0 = vmul.f32 %v5442_v60, %v5435_v34 }
 0x7e6   :  { %v5429_v62 = vpop.permute.xlu2 %5428 }
 0x7e7   :  { %v5431_v56 = vadd.f32 %v5429_v62, %v5423_v48 }
 0x7e9   :  { %v5444_v1 = vsub.f32 %v5431_v56, %v5443_v0 }
 0x7eb   :  { %5445 = vst.msk [vmem:[#allocation2] sm:$0x3] %vm5432_vm7, %v5444_v1 }
 0x7ec   :  { %5456 = dma.vmem_to_hbm [thread:$0]  %s5452_s17, 32, %s5454_s10, [#allocation3]  }
 0x7ed   :  { %8690 = dma.done.wait [#allocation3], 32  }
 0x7ee   :  { %8691 = vsyncadd [#allocation3], 4294967264 }
 0x7ef   :  { %5461 = vsyncpa [#allocation3], 1 }

</bundles_post_ra>
